<compile_context>
chip_gen: v7x
topology: tpu7x:2x2x1
jax: 0.10.0
libtpu: 0.0.40
codegen_flags: <defaults>
</compile_context>

<pallas_src>
import jax
import jax.numpy as jnp
from jax.experimental import pallas as pl
from jax.experimental.pallas import tpu as pltpu


def _mlp_kernel(x_ref, w1_ref, b1_ref, w2_ref, b2_ref, o_ref):
    # Hidden layer: bf16 operands on the MXU, f32 accumulation.
    h = jnp.dot(x_ref[...], w1_ref[...], preferred_element_type=jnp.float32)
    h = jnp.maximum(h + b1_ref[...], 0.0)                     # f32 bias + ReLU (VPU)
    # Output layer: cast hidden activations to bf16 for the MXU, accumulate f32.
    out = jnp.dot(h.astype(jnp.bfloat16), w2_ref[...],
                  preferred_element_type=jnp.float32)
    o_ref[...] = (out + b2_ref[...]).astype(o_ref.dtype)


def _round_up(a, b):
    return (a + b - 1) // b * b


def _vmem_capacity_bytes():
    try:
        return int(pltpu.get_tpu_info().vmem_capacity_bytes)
    except Exception:
        return 64 * 1024 * 1024   # conservative: v7x has 64 MiB per TensorCore


def _plan_tiles(m, d_in, h_dim, d_out, out_bytes):
    """Pick tile_m and an explicit VMEM limit from working-set arithmetic."""
    cap = _vmem_capacity_bytes()
    # Resident weights/biases (bf16 weights, f32 biases); assume the runtime
    # double-buffers them even though their index_map is constant.
    weight_bytes = 2 * (2 * (d_in * h_dim + h_dim * d_out) + 4 * (h_dim + d_out))
    per_row = (2 * d_in * 2             # x tile (bf16), double-buffered
               + 2 * d_out * out_bytes  # out tile, double-buffered
               + h_dim * (4 + 2)        # f32 hidden + bf16 copy for 2nd matmul
               + d_out * 4)             # f32 pre-cast output tile
    budget = max(cap // 2 - weight_bytes, 16 * per_row)
    tile_m = max(16, min(512, (budget // per_row) // 16 * 16))
    tile_m = min(tile_m, _round_up(m, 16))   # don't tile past the data
    needed = weight_bytes + tile_m * per_row + (16 << 20)     # + headroom
    vmem_limit = int(min(max(needed, 32 << 20), int(cap * 0.9)))
    return int(tile_m), vmem_limit


def clip_adapter_forward(x, w1, b1, w2, b2, *, tile_m=None):
    """Pallas implementation of CLIPAdapter.forward.

    x : (..., D_in)  -> returns (..., D_out)
    w1: (D_in, H), b1: (H,), w2: (H, D_out), b2: (D_out,)
    """
    orig_shape = x.shape
    d_in = orig_shape[-1]
    h_dim = w1.shape[1]
    d_out = w2.shape[1]

    out_dtype = x.dtype
    x2 = x.reshape(-1, d_in).astype(jnp.bfloat16)   # bf16 MXU operands
    m = x2.shape[0]

    auto_tile_m, vmem_limit = _plan_tiles(
        m, d_in, h_dim, d_out, jnp.dtype(out_dtype).itemsize)
    if tile_m is None:
        tile_m = auto_tile_m

    w1b = w1.astype(jnp.bfloat16)
    w2b = w2.astype(jnp.bfloat16)
    b1_2d = b1.reshape(1, h_dim).astype(jnp.float32)
    b2_2d = b2.reshape(1, d_out).astype(jnp.float32)

    grid = (pl.cdiv(m, tile_m),)   # tail block handled by partial-block masking

    in_specs = [
        pl.BlockSpec((tile_m, d_in), lambda i: (i, 0)),    # x rows
        pl.BlockSpec((d_in, h_dim), lambda i: (0, 0)),     # W1 (resident)
        pl.BlockSpec((1, h_dim), lambda i: (0, 0)),        # b1
        pl.BlockSpec((h_dim, d_out), lambda i: (0, 0)),    # W2 (resident)
        pl.BlockSpec((1, d_out), lambda i: (0, 0)),        # b2
    ]

    # Note: if the adapter's weights ever grow past ~VMEM/4 (very large hidden
    # dim), switch to a K-axis ("arbitrary") grid with an f32 accumulator
    # instead of keeping W1/W2 fully resident.
    out = pl.pallas_call(
        _mlp_kernel,
        out_shape=jax.ShapeDtypeStruct((m, d_out), out_dtype),
        grid_spec=pltpu.PrefetchScalarGridSpec(
            num_scalar_prefetch=0,
            grid=grid,
            in_specs=in_specs,
            out_specs=pl.BlockSpec((tile_m, d_out), lambda i: (i, 0)),
        ),
        compiler_params=pltpu.CompilerParams(
            dimension_semantics=("parallel",),   # megacore-shardable row axis
            vmem_limit_bytes=vmem_limit,
        ),
    )(x2, w1b, b1_2d, w2b, b2_2d)

    return out.reshape(*orig_shape[:-1], d_out)


if __name__ == "__main__":
    # Module defaults (768 -> 1024 -> 768), small batch/seq.
    batch, seq = 2, 8
    input_dim, hidden_dim, output_dim = 768, 1024, 768

    key = jax.random.PRNGKey(0)
    kx, kw1, kb1, kw2, kb2 = jax.random.split(key, 5)

    x = jax.random.normal(kx, (batch, seq, input_dim), dtype=jnp.float32)
    w1 = jax.random.normal(kw1, (input_dim, hidden_dim), dtype=jnp.float32) * (1.0 / input_dim ** 0.5)
    b1 = jax.random.normal(kb1, (hidden_dim,), dtype=jnp.float32) * 0.01
    w2 = jax.random.normal(kw2, (hidden_dim, output_dim), dtype=jnp.float32) * (1.0 / hidden_dim ** 0.5)
    b2 = jax.random.normal(kb2, (output_dim,), dtype=jnp.float32) * 0.01

    out = clip_adapter_forward(x, w1, b1, w2, b2)
    out = jax.block_until_ready(out)

    # Reference 1: mirrors the kernel's bf16-operand / f32-accumulate numerics.
    xb = x.reshape(-1, input_dim).astype(jnp.bfloat16)
    h_ref = jnp.maximum(
        jnp.dot(xb, w1.astype(jnp.bfloat16), preferred_element_type=jnp.float32) + b1, 0.0)
    ref_bf16 = (jnp.dot(h_ref.astype(jnp.bfloat16), w2.astype(jnp.bfloat16),
                        preferred_element_type=jnp.float32) + b2
                ).reshape(batch, seq, output_dim)
    # Reference 2: pure fp32 module semantics (looser tolerance for bf16 rounding).
    ref_f32 = jnp.maximum(x @ w1 + b1, 0.0) @ w2 + b2

    assert out.shape == (batch, seq, output_dim)
    assert out.dtype == x.dtype
    assert jnp.allclose(out, ref_bf16, atol=2e-2, rtol=2e-2), \
        float(jnp.max(jnp.abs(out - ref_bf16)))
    assert jnp.allclose(out, ref_f32, atol=1e-1, rtol=1e-1), \
        float(jnp.max(jnp.abs(out - ref_f32)))

    print("KERNEL_OK")
</pallas_src>

<mosaic_0001>
module attributes {stable_mosaic.version = 11 : i64} {
  func.func @_mlp_kernel(%arg0: i32, %arg1: memref<16x768xbf16, #tpu.memory_space<vmem>>, %arg2: memref<768x1024xbf16, #tpu.memory_space<vmem>>, %arg3: memref<1x1024xf32, #tpu.memory_space<vmem>>, %arg4: memref<1024x768xbf16, #tpu.memory_space<vmem>>, %arg5: memref<1x768xf32, #tpu.memory_space<vmem>>, %arg6: memref<16x768xf32, #tpu.memory_space<vmem>>) attributes {dimension_semantics = [#tpu.dimension_semantics<parallel>], iteration_bounds = array<i64: 1>, scalar_prefetch = 0 : i64, scratch_operands = 0 : i64, tpu.core_type = #tpu.core_type<tc>, window_params = [{transform_indices = @transform_0, window_bounds = array<i64: 16, 768>}, {pipeline_mode = #tpu.pipeline_mode<synchronous>, transform_indices = @transform_1, window_bounds = array<i64: 768, 1024>}, {pipeline_mode = #tpu.pipeline_mode<synchronous>, transform_indices = @transform_2, window_bounds = array<i64: 1, 1024>}, {pipeline_mode = #tpu.pipeline_mode<synchronous>, transform_indices = @transform_3, window_bounds = array<i64: 1024, 768>}, {pipeline_mode = #tpu.pipeline_mode<synchronous>, transform_indices = @transform_4, window_bounds = array<i64: 1, 768>}, {transform_indices = @transform_5, window_bounds = array<i64: 16, 768>}]} {
    %c0 = arith.constant 0 : index
    %c0_0 = arith.constant 0 : index
    %0 = vector.load %arg1[%c0, %c0_0] : memref<16x768xbf16, #tpu.memory_space<vmem>>, vector<16x768xbf16>
    %c0_1 = arith.constant 0 : index
    %c0_2 = arith.constant 0 : index
    %1 = vector.load %arg2[%c0_1, %c0_2] : memref<768x1024xbf16, #tpu.memory_space<vmem>>, vector<768x1024xbf16>
    %cst = arith.constant dense<0.000000e+00> : vector<16x1024xf32>
    %2 = tpu.matmul %0, %1, %cst {dimension_numbers = #tpu.dot_dimension_numbers<[1], [0], [0], [1], [0, 0, 1, 1], [], []>} : vector<16x768xbf16>, vector<768x1024xbf16>, vector<16x1024xf32> -> vector<16x1024xf32>
    %c0_3 = arith.constant 0 : index
    %c0_4 = arith.constant 0 : index
    %3 = vector.load %arg3[%c0_3, %c0_4] : memref<1x1024xf32, #tpu.memory_space<vmem>>, vector<1x1024xf32>
    %4 = vector.broadcast %3 : vector<1x1024xf32> to vector<16x1024xf32>
    %5 = arith.addf %2, %4 : vector<16x1024xf32>
    %cst_5 = arith.constant 0.000000e+00 : f32
    %6 = vector.broadcast %cst_5 : f32 to vector<16x1024xf32>
    %7 = arith.maximumf %5, %6 : vector<16x1024xf32>
    %8 = arith.truncf %7 : vector<16x1024xf32> to vector<16x1024xbf16>
    %c0_6 = arith.constant 0 : index
    %c0_7 = arith.constant 0 : index
    %9 = vector.load %arg4[%c0_6, %c0_7] : memref<1024x768xbf16, #tpu.memory_space<vmem>>, vector<1024x768xbf16>
    %cst_8 = arith.constant dense<0.000000e+00> : vector<16x768xf32>
    %10 = tpu.matmul %8, %9, %cst_8 {dimension_numbers = #tpu.dot_dimension_numbers<[1], [0], [0], [1], [0, 0, 1, 1], [], []>} : vector<16x1024xbf16>, vector<1024x768xbf16>, vector<16x768xf32> -> vector<16x768xf32>
    %c0_9 = arith.constant 0 : index
    %c0_10 = arith.constant 0 : index
    %11 = vector.load %arg5[%c0_9, %c0_10] : memref<1x768xf32, #tpu.memory_space<vmem>>, vector<1x768xf32>
    %12 = vector.broadcast %11 : vector<1x768xf32> to vector<16x768xf32>
    %13 = arith.addf %10, %12 : vector<16x768xf32>
    %c0_11 = arith.constant 0 : index
    %c0_12 = arith.constant 0 : index
    %14 = vector.load %arg6[%c0_11, %c0_12] : memref<16x768xf32, #tpu.memory_space<vmem>>, vector<16x768xf32>
    tpu.vector_store %arg6[%c0_11, %c0_12], %13 {strides = array<i32>} : memref<16x768xf32, #tpu.memory_space<vmem>>, vector<16x768xf32>,
    return
  }
  func.func @transform_0(%arg0: i32) -> (i32, i32) {
    %c0_i32 = arith.constant 0 : i32
    %c0_i32_0 = arith.constant 0 : i32
    return %arg0, %c0_i32 : i32, i32
  }
  func.func @transform_1(%arg0: i32) -> (i32, i32) {
    %c0_i32 = arith.constant 0 : i32
    %c0_i32_0 = arith.constant 0 : i32
    %c0_i32_1 = arith.constant 0 : i32
    return %c0_i32, %c0_i32_0 : i32, i32
  }
  func.func @transform_2(%arg0: i32) -> (i32, i32) {
    %c0_i32 = arith.constant 0 : i32
    %c0_i32_0 = arith.constant 0 : i32
    %c0_i32_1 = arith.constant 0 : i32
    return %c0_i32, %c0_i32_0 : i32, i32
  }
  func.func @transform_3(%arg0: i32) -> (i32, i32) {
    %c0_i32 = arith.constant 0 : i32
    %c0_i32_0 = arith.constant 0 : i32
    %c0_i32_1 = arith.constant 0 : i32
    return %c0_i32, %c0_i32_0 : i32, i32
  }
  func.func @transform_4(%arg0: i32) -> (i32, i32) {
    %c0_i32 = arith.constant 0 : i32
    %c0_i32_0 = arith.constant 0 : i32
    %c0_i32_1 = arith.constant 0 : i32
    return %c0_i32, %c0_i32_0 : i32, i32
  }
  func.func @transform_5(%arg0: i32) -> (i32, i32) {
    %c0_i32 = arith.constant 0 : i32
    %c0_i32_0 = arith.constant 0 : i32
    return %arg0, %c0_i32 : i32, i32
  }
}

</mosaic_0001>

<bundles_post_ra>
// kernel: tpu_custom_call.1
= control target key start
LH: loop header
LB: loop body
LE: loop exit
PB: predicated region body
PF: predicated region fallthrough
CT: control target
= control target key end

     0   :  { %10 = vsyncpa [#allocation3], 0  ;;  %s7753_s0 = inlined_call_operand.hbm [shape: bf16[16,768], index: 0, kind: input, shape index: {}]   ;;  %s7754_s1 = inlined_call_operand.hbm [shape: bf16[768,1024], index: 1, kind: input, shape index: {}]   ;;  %s7755_s2 = inlined_call_operand.hbm [shape: f32[1,1024], index: 2, kind: input, shape index: {}]   ;;  %s7756_s3 = inlined_call_operand.hbm [shape: bf16[1024,768], index: 3, kind: input, shape index: {}]   ;;  %s7757_s4 = inlined_call_operand.hbm [shape: f32[1,768], index: 4, kind: input, shape index: {}]   ;;  %s7758_s5 = inlined_call_operand.hbm [shape: f32[16,768], index: 5, kind: output, shape index: {}]  }
   0x1   :  { %11 = vsyncpa [#allocation6], 0 }
   0x2   :  { %12 = vsyncpa [#allocation9], 0 }
   0x3   :  { %13 = vsyncpa [#allocation4], 0  ;;  %s7508_s18 = smov [#allocation5]   ;;  %s7368_s22 = scalar_lea.hbm %s7754_s1, 49152 }
   0x4   :  { %s31_s19 = sshll.u32 %s7508_s18, 4  ;;  %p7369_p0 = scmp.ne.s32.totalorder %s7754_s1, %s7368_s22  ;;  %s32_s19 = int_to_ptr.vmem [resolvable:$true] %s31_s19 }
   0x5   :  { %p7372_p1 = scmp.lt.u32.totalorder %s7368_s22, %s7754_s1 }
   0x7   :  { %p7374_p2 = pnand %p7372_p1, %p7369_p0 }
   0x9   :  { %7377 = shalt.err (!%p7374_p2)
}
   0xa   :  { %s7378_s27 = scalar_lea.vmem %s32_s19, 49152  ;;  %p7383_p4 = scmp.lt.s32.totalorder %s32_s19, %s32_s19 }
   0xb   :  { %p7379_p3 = scmp.ne.s32.totalorder %s32_s19, %s7378_s27  ;;  %p7384_p5 = scmp.lt.s32.totalorder %s7378_s27, %s7378_s27 }
   0xd   :  { %p7385_p6 = por %p7384_p5, %p7383_p4 }
   0xf   :  { %p7386_p7 = pnand %p7385_p6, %p7379_p3 }
  0x11   :  { %7389 = shalt.err (!%p7386_p7)
}
  0x12   :  { %s7509_s28 = smov 512   ;;  %s7510_s29 = smov 32  }
  0x13   :  { %37 = dma.hbm_to_vmem [thread:$0]  %s7754_s1, 49152, %s32_s19, [#allocation6], %s7509_s28, %s7509_s28, %s7510_s29  }
  0x14   :  { %s7511_s7 = smov [#allocation8]   ;;  %s7512_s9 = smov [#allocation2]  }
  0x15   :  { %s53_s8 = sshll.u32 %s7511_s7, 4  ;;  %s19_s10 = sshll.u32 %s7512_s9, 4  ;;  %s54_s8 = int_to_ptr.vmem [resolvable:$true] %s53_s8  ;;  %s20_s10 = int_to_ptr.vmem [resolvable:$true] %s19_s10 }
  0x16   :  { %s7390_s13 = scalar_lea.hbm %s7756_s3, 49152 }
  0x17   :  { %p7391_p8 = scmp.ne.s32.totalorder %s7756_s3, %s7390_s13  ;;  %p7394_p9 = scmp.lt.u32.totalorder %s7390_s13, %s7756_s3 }
  0x19   :  { %p7396_p10 = pnand %p7394_p9, %p7391_p8 }
  0x1b   :  { %7399 = shalt.err (!%p7396_p10)
}
  0x1c   :  { %s7400_s1 = scalar_lea.vmem %s54_s8, 49152  ;;  %p7405_p12 = scmp.lt.s32.totalorder %s54_s8, %s54_s8 }
  0x1d   :  { %p7401_p11 = scmp.ne.s32.totalorder %s54_s8, %s7400_s1  ;;  %p7406_p13 = scmp.lt.s32.totalorder %s7400_s1, %s7400_s1 }
  0x1f   :  { %p7407_p0 = por %p7406_p13, %p7405_p12 }
  0x21   :  { %p7408_p1 = pnand %p7407_p0, %p7401_p11 }
  0x23   :  { %7411 = shalt.err (!%p7408_p1)
}
  0x24   :  { %s7513_s18 = smov 384   ;;  %s7514_s19 = smov 24  }
  0x25   :  { %59 = dma.hbm_to_vmem [thread:$0]  %s7756_s3, 49152, %s54_s8, [#allocation9], %s7513_s18, %s7513_s18, %s7514_s19  }
  0x26   :  { %s7412_s24 = scalar_lea.hbm %s7753_s0, 768 }
  0x27   :  { %p7413_p2 = scmp.ne.s32.totalorder %s7753_s0, %s7412_s24  ;;  %p7416_p3 = scmp.lt.u32.totalorder %s7412_s24, %s7753_s0 }
  0x29   :  { %p7418_p4 = pnand %p7416_p3, %p7413_p2 }
  0x2b   :  { %7421 = shalt.err (!%p7418_p4)
}
  0x2c   :  { %s7422_s29 = scalar_lea.vmem %s20_s10, 768  ;;  %p7427_p6 = scmp.lt.s32.totalorder %s20_s10, %s20_s10 }
  0x2d   :  { %p7423_p5 = scmp.ne.s32.totalorder %s20_s10, %s7422_s29  ;;  %p7428_p7 = scmp.lt.s32.totalorder %s7422_s29, %s7422_s29 }
  0x2f   :  { %p7429_p8 = por %p7428_p7, %p7427_p6 }
  0x31   :  { %p7430_p9 = pnand %p7429_p8, %p7423_p5 }
  0x33   :  { %7433 = shalt.err (!%p7430_p9)
}
  0x34   :  { %25 = dma.hbm_to_vmem [thread:$0]  %s7753_s0, 768, %s20_s10, [#allocation3], %s7513_s18, %s7513_s18, %s7514_s19  }
  0x35   :  { %s7515_s6 = smov [#allocation7]   ;;  %s7516_s8 = smov [#allocation10]  }
  0x36   :  { %s44_s7 = sshll.u32 %s7515_s6, 4  ;;  %s66_s9 = sshll.u32 %s7516_s8, 4  ;;  %s45_s7 = int_to_ptr.vmem [resolvable:$true] %s44_s7  ;;  %s67_s9 = int_to_ptr.vmem [resolvable:$true] %s66_s9 }
  0x37   :  { %s7434_s13 = scalar_lea.hbm %s7755_s2, 128 }
  0x38   :  { %p7435_p10 = scmp.ne.s32.totalorder %s7755_s2, %s7434_s13  ;;  %p7438_p11 = scmp.lt.u32.totalorder %s7434_s13, %s7755_s2 }
  0x3a   :  { %p7440_p12 = pnand %p7438_p11, %p7435_p10 }
  0x3c   :  { %7443 = shalt.err (!%p7440_p12)
}
  0x3d   :  { %s7444_s0 = scalar_lea.vmem %s45_s7, 128  ;;  %p7449_p0 = scmp.lt.s32.totalorder %s45_s7, %s45_s7 }
  0x3e   :  { %p7445_p13 = scmp.ne.s32.totalorder %s45_s7, %s7444_s0  ;;  %p7450_p1 = scmp.lt.s32.totalorder %s7444_s0, %s7444_s0 }
  0x40   :  { %p7451_p2 = por %p7450_p1, %p7449_p0 }
  0x42   :  { %p7452_p3 = pnand %p7451_p2, %p7445_p13 }
  0x44   :  { %7455 = shalt.err (!%p7452_p3)
}
  0x45   :  { %47 = dma.hbm_to_vmem [thread:$0]  %s7755_s2, 128, %s45_s7, [#allocation6]  }
  0x46   :  { %s7456_s20 = scalar_lea.hbm %s7757_s4, 96 }
  0x47   :  { %p7457_p4 = scmp.ne.s32.totalorder %s7757_s4, %s7456_s20  ;;  %p7460_p5 = scmp.lt.u32.totalorder %s7456_s20, %s7757_s4 }
  0x49   :  { %p7462_p6 = pnand %p7460_p5, %p7457_p4 }
  0x4b   :  { %7465 = shalt.err (!%p7462_p6)
}
  0x4c   :  { %s7466_s25 = scalar_lea.vmem %s67_s9, 96  ;;  %p7471_p8 = scmp.lt.s32.totalorder %s67_s9, %s67_s9 }
  0x4d   :  { %p7467_p7 = scmp.ne.s32.totalorder %s67_s9, %s7466_s25  ;;  %p7472_p9 = scmp.lt.s32.totalorder %s7466_s25, %s7466_s25 }
  0x4f   :  { %p7473_p10 = por %p7472_p9, %p7471_p8 }
  0x51   :  { %p7474_p11 = pnand %p7473_p10, %p7467_p7 }
  0x53   :  { %7477 = shalt.err (!%p7474_p11)
}
  0x54   :  { %69 = dma.hbm_to_vmem [thread:$0]  %s7757_s4, 96, %s67_s9, [#allocation9]  }
  0x55   :  { %7500 = dma.done.wait [#allocation3], 768  }
  0x56   :  { %7501 = vsyncadd [#allocation3], 4294966528 }
  0x57   :  { %7502 = dma.done.wait [#allocation6], 49280  }
  0x58   :  { %7503 = vsyncadd [#allocation6], 4294918016 }
  0x59   :  { %7504 = dma.done.wait [#allocation9], 49248  }
  0x5a   :  { %7505 = vsyncadd [#allocation9], 4294918048  ;;  %v91_v0 = vld [vmem:[#allocation5] sm:$0xff]  ;;  %v7610_v39 = vld [vmem:[#allocation2 + $0x4] ss:$24 sps:$4 sm:$0xff]   ;;  %s7517_s4 = smov [#allocation11]  }
  0x5b   :  { %v95_v1 = vld [vmem:[#allocation5 + $0x20] sm:$0xff]  ;;  %2499 = vmatprep.mubr.bf16.mxu1 %v7610_v39  ;;  %s5876_s27 = sshll.u32 %s7517_s4, 4  ;;  %s5877_s27 = int_to_ptr.vmem [resolvable:$true] %s5876_s27 }
  0x5c   :  { %v99_v2 = vld [vmem:[#allocation5 + $0x40] sm:$0xff]  ;;  %v5897_v3 = vcombine.high %v91_v0, %v95_v1  ;;  %v5896_v4 = vcombine.low %v91_v0, %v95_v1  ;;  %s7478_s28 = scalar_lea.vmem %s5877_s27, 1536  ;;  %p7483_p13 = scmp.lt.s32.totalorder %s5877_s27, %s5877_s27 }
  0x5d   :  { %v103_v5 = vld [vmem:[#allocation5 + $0x60] sm:$0xff]  ;;  %p7479_p12 = scmp.ne.s32.totalorder %s5877_s27, %s7478_s28  ;;  %p7484_p0 = scmp.lt.s32.totalorder %s7478_s28, %s7478_s28 }
  0x5e   :  { %v5905_v6 = vcombine.high %v99_v2, %v103_v5  ;;  %v107_v7 = vld [vmem:[#allocation5 + $0x80] sm:$0xff]  ;;  %2467 = vmatprep.subr.bf16.mxu1 %v5897_v3  ;;  %v5904_v9 = vcombine.low %v99_v2, %v103_v5 }
  0x5f   :  { %v111_v8 = vld [vmem:[#allocation5 + $0xa0] sm:$0xff]  ;;  %2468 = vmatpush1.bf16.msra.mxu1 %v5896_v4  ;;  %p7485_p1 = por %p7484_p0, %p7483_p13 }
  0x60   :  { %2469 = vmatprep.subr.bf16.mxu1 %v5905_v6  ;;  %v5913_v10 = vcombine.high %v107_v7, %v111_v8  ;;  %v115_v11 = vld [vmem:[#allocation5 + $0xc0] sm:$0xff]  ;;  %v5912_v19 = vcombine.low %v107_v7, %v111_v8 }
  0x61   :  { %v119_v12 = vld [vmem:[#allocation5 + $0xe0] sm:$0xff]  ;;  %p7486_p2 = pnand %p7485_p1, %p7479_p12 }
  0x62   :  { %v347_v13 = vld [vmem:[#allocation5 + $0x800] sm:$0xff]  ;;  %v5921_v22 = vcombine.high %v115_v11, %v119_v12  ;;  %v5920_v28 = vcombine.low %v115_v11, %v119_v12 }
  0x63   :  { %v351_v14 = vld [vmem:[#allocation5 + $0x820] sm:$0xff]  ;;  %2470 = vmatpush1.bf16.msra.mxu1 %v5904_v9 }
  0x64   :  { %v6153_v15 = vcombine.high %v347_v13, %v351_v14  ;;  %v6152_v16 = vcombine.low %v347_v13, %v351_v14  ;;  %v355_v17 = vld [vmem:[#allocation5 + $0x840] sm:$0xff]  ;;  %2471 = vmatprep.subr.bf16.mxu1 %v5913_v10 }
  0x65   :  { %v359_v18 = vld [vmem:[#allocation5 + $0x860] sm:$0xff] }
  0x66   :  { %v6161_v20 = vcombine.high %v355_v17, %v359_v18  ;;  %v363_v21 = vld [vmem:[#allocation5 + $0x880] sm:$0xff]  ;;  %2553 = vmatprep.subr.bf16.mxu0 %v6153_v15  ;;  %v6160_v26 = vcombine.low %v355_v17, %v359_v18 }
  0x67   :  { %v367_v23 = vld [vmem:[#allocation5 + $0x8a0] sm:$0xff]  ;;  %2554 = vmatpush1.bf16.msra.mxu0 %v6152_v16  ;;  %2472 = vmatpush1.bf16.msra.mxu1 %v5912_v19 }
  0x68   :  { %v123_v24 = vld [vmem:[#allocation5 + $0x100] sm:$0xff]  ;;  %2555 = vmatprep.subr.bf16.mxu0 %v6161_v20  ;;  %v6169_v27 = vcombine.high %v363_v21, %v367_v23  ;;  %2473 = vmatprep.subr.bf16.mxu1 %v5921_v22  ;;  %v6168_v34 = vcombine.low %v363_v21, %v367_v23 }
  0x69   :  { %v127_v25 = vld [vmem:[#allocation5 + $0x120] sm:$0xff] }
  0x6a   :  { %v371_v29 = vld [vmem:[#allocation5 + $0x8c0] sm:$0xff]  ;;  %v5929_v31 = vcombine.high %v123_v24, %v127_v25  ;;  %v5928_v38 = vcombine.low %v123_v24, %v127_v25 }
  0x6b   :  { %v375_v30 = vld [vmem:[#allocation5 + $0x8e0] sm:$0xff]  ;;  %2556 = vmatpush1.bf16.msra.mxu0 %v6160_v26  ;;  %2474 = vmatpush1.bf16.msra.mxu1 %v5920_v28 }
  0x6c   :  { %v131_v32 = vld [vmem:[#allocation5 + $0x140] sm:$0xff]  ;;  %2557 = vmatprep.subr.bf16.mxu0 %v6169_v27  ;;  %v6177_v35 = vcombine.high %v371_v29, %v375_v30  ;;  %2475 = vmatprep.subr.bf16.mxu1 %v5929_v31  ;;  %v6176_v43 = vcombine.low %v371_v29, %v375_v30 }
  0x6d   :  { %v135_v33 = vld [vmem:[#allocation5 + $0x160] sm:$0xff] }
  0x6e   :  { %v379_v36 = vld [vmem:[#allocation5 + $0x900] sm:$0xff]  ;;  %v5937_v40 = vcombine.high %v131_v32, %v135_v33  ;;  %v5936_v45 = vcombine.low %v131_v32, %v135_v33 }
  0x6f   :  { %v383_v37 = vld [vmem:[#allocation5 + $0x920] sm:$0xff]  ;;  %2558 = vmatpush1.bf16.msra.mxu0 %v6168_v34  ;;  %2476 = vmatpush1.bf16.msra.mxu1 %v5928_v38 }
  0x70   :  { %v139_v41 = vld [vmem:[#allocation5 + $0x180] sm:$0xff]  ;;  %2559 = vmatprep.subr.bf16.mxu0 %v6177_v35  ;;  %v6185_v44 = vcombine.high %v379_v36, %v383_v37  ;;  %2477 = vmatprep.subr.bf16.mxu1 %v5937_v40  ;;  %v6184_v51 = vcombine.low %v379_v36, %v383_v37 }
  0x71   :  { %v143_v42 = vld [vmem:[#allocation5 + $0x1a0] sm:$0xff] }
  0x72   :  { %v387_v46 = vld [vmem:[#allocation5 + $0x940] sm:$0xff]  ;;  %v5945_v48 = vcombine.high %v139_v41, %v143_v42  ;;  %v5944_v53 = vcombine.low %v139_v41, %v143_v42 }
  0x73   :  { %v391_v47 = vld [vmem:[#allocation5 + $0x960] sm:$0xff]  ;;  %2560 = vmatpush1.bf16.msra.mxu0 %v6176_v43  ;;  %2478 = vmatpush1.bf16.msra.mxu1 %v5936_v45 }
  0x74   :  { %v147_v49 = vld [vmem:[#allocation5 + $0x1c0] sm:$0xff]  ;;  %2561 = vmatprep.subr.bf16.mxu0 %v6185_v44  ;;  %v6193_v52 = vcombine.high %v387_v46, %v391_v47  ;;  %2479 = vmatprep.subr.bf16.mxu1 %v5945_v48  ;;  %v6192_v59 = vcombine.low %v387_v46, %v391_v47 }
  0x75   :  { %v151_v50 = vld [vmem:[#allocation5 + $0x1e0] sm:$0xff] }
  0x76   :  { %v395_v54 = vld [vmem:[#allocation5 + $0x980] sm:$0xff]  ;;  %v5953_v56 = vcombine.high %v147_v49, %v151_v50  ;;  %v5952_v61 = vcombine.low %v147_v49, %v151_v50 }
  0x77   :  { %v399_v55 = vld [vmem:[#allocation5 + $0x9a0] sm:$0xff]  ;;  %2562 = vmatpush1.bf16.msra.mxu0 %v6184_v51  ;;  %2480 = vmatpush1.bf16.msra.mxu1 %v5944_v53 }
  0x78   :  { %v155_v57 = vld [vmem:[#allocation5 + $0x200] sm:$0xff]  ;;  %2563 = vmatprep.subr.bf16.mxu0 %v6193_v52  ;;  %v6201_v60 = vcombine.high %v395_v54, %v399_v55  ;;  %2481 = vmatprep.subr.bf16.mxu1 %v5953_v56  ;;  %v6200_v4 = vcombine.low %v395_v54, %v399_v55 }
  0x79   :  { %v159_v58 = vld [vmem:[#allocation5 + $0x220] sm:$0xff] }
  0x7a   :  { %v403_v62 = vld [vmem:[#allocation5 + $0x9c0] sm:$0xff]  ;;  %v5961_v0 = vcombine.high %v155_v57, %v159_v58  ;;  %v5960_v6 = vcombine.low %v155_v57, %v159_v58 }
  0x7b   :  { %v407_v63 = vld [vmem:[#allocation5 + $0x9e0] sm:$0xff]  ;;  %2564 = vmatpush1.bf16.msra.mxu0 %v6192_v59  ;;  %2482 = vmatpush1.bf16.msra.mxu1 %v5952_v61 }
  0x7c   :  { %v6775_v1 = vld [vmem:[#allocation2 + $0x14] ss:$24 sps:$4 sm:$0xff]   ;;  %2565 = vmatprep.subr.bf16.mxu0 %v6201_v60  ;;  %v6209_v5 = vcombine.high %v403_v62, %v407_v63  ;;  %2483 = vmatprep.subr.bf16.mxu1 %v5961_v0  ;;  %v6208_v12 = vcombine.low %v403_v62, %v407_v63 }
  0x7d   :  { %v163_v2 = vld [vmem:[#allocation5 + $0x240] sm:$0xff]  ;;  %2585 = vmatprep.mubr.bf16.mxu0 %v6775_v1 }
  0x7e   :  { %v167_v3 = vld [vmem:[#allocation5 + $0x260] sm:$0xff] }
  0x7f   :  { %v411_v7 = vld [vmem:[#allocation5 + $0xa00] sm:$0xff]  ;;  %v5969_v9 = vcombine.high %v163_v2, %v167_v3  ;;  %2566 = vmatpush1.bf16.msra.mxu0 %v6200_v4  ;;  %2484 = vmatpush1.bf16.msra.mxu1 %v5960_v6  ;;  %v5968_v14 = vcombine.low %v163_v2, %v167_v3  ;;  %v7613_v3 = vld [vmem:[#allocation2] ss:$24 sps:$4 sm:$0xff]  }
  0x80   :  { %v415_v8 = vld [vmem:[#allocation5 + $0xa20] sm:$0xff]  ;;  %2567 = vmatprep.subr.bf16.mxu0 %v6209_v5 }
  0x81   :  { %v171_v10 = vld [vmem:[#allocation5 + $0x280] sm:$0xff]  ;;  %v6217_v13 = vcombine.high %v411_v7, %v415_v8  ;;  %2485 = vmatprep.subr.bf16.mxu1 %v5969_v9  ;;  %v6216_v20 = vcombine.low %v411_v7, %v415_v8 }
  0x82   :  { %v175_v11 = vld [vmem:[#allocation5 + $0x2a0] sm:$0xff] }
  0x83   :  { %v419_v15 = vld [vmem:[#allocation5 + $0xa40] sm:$0xff]  ;;  %v5977_v17 = vcombine.high %v171_v10, %v175_v11  ;;  %2568 = vmatpush1.bf16.msra.mxu0 %v6208_v12  ;;  %2486 = vmatpush1.bf16.msra.mxu1 %v5968_v14  ;;  %v5976_v23 = vcombine.low %v171_v10, %v175_v11  ;;  %v93_v10 = vld [vmem:[#allocation5 + $0x10] sm:$0xff] }
  0x84   :  { %v423_v16 = vld [vmem:[#allocation5 + $0xa60] sm:$0xff]  ;;  %2569 = vmatprep.subr.bf16.mxu0 %v6217_v13  ;;  %v97_v11 = vld [vmem:[#allocation5 + $0x30] sm:$0xff] }
  0x85   :  { %v179_v18 = vld [vmem:[#allocation5 + $0x2c0] sm:$0xff]  ;;  %v6225_v21 = vcombine.high %v419_v15, %v423_v16  ;;  %2487 = vmatprep.subr.bf16.mxu1 %v5977_v17  ;;  %v6224_v28 = vcombine.low %v419_v15, %v423_v16  ;;  %v7615_v12 = vld [vmem:[#allocation2 + $0xc] ss:$24 sps:$4 sm:$0xff]   ;;  %v5901_v16 = vcombine.high %v93_v10, %v97_v11 }
  0x86   :  { %v183_v19 = vld [vmem:[#allocation5 + $0x2e0] sm:$0xff] }
  0x87   :  { %v427_v22 = vld [vmem:[#allocation5 + $0xa80] sm:$0xff]  ;;  %v5985_v25 = vcombine.high %v179_v18, %v183_v19  ;;  %2570 = vmatpush1.bf16.msra.mxu0 %v6216_v20  ;;  %2488 = vmatpush1.bf16.msra.mxu1 %v5976_v23  ;;  %v5984_v30 = vcombine.low %v179_v18, %v183_v19  ;;  %v101_v20 = vld [vmem:[#allocation5 + $0x50] sm:$0xff] }
  0x88   :  { %v431_v24 = vld [vmem:[#allocation5 + $0xaa0] sm:$0xff]  ;;  %2571 = vmatprep.subr.bf16.mxu0 %v6225_v21  ;;  %v105_v21 = vld [vmem:[#allocation5 + $0x70] sm:$0xff] }
  0x89   :  { %v187_v26 = vld [vmem:[#allocation5 + $0x300] sm:$0xff]  ;;  %v6233_v29 = vcombine.high %v427_v22, %v431_v24  ;;  %2489 = vmatprep.subr.bf16.mxu1 %v5985_v25  ;;  %v6232_v36 = vcombine.low %v427_v22, %v431_v24  ;;  %v5900_v24 = vcombine.low %v93_v10, %v97_v11  ;;  %v5909_v25 = vcombine.high %v101_v20, %v105_v21 }
  0x8a   :  { %v191_v27 = vld [vmem:[#allocation5 + $0x320] sm:$0xff] }
  0x8b   :  { %v435_v31 = vld [vmem:[#allocation5 + $0xac0] sm:$0xff]  ;;  %v5993_v33 = vcombine.high %v187_v26, %v191_v27  ;;  %2572 = vmatpush1.bf16.msra.mxu0 %v6224_v28  ;;  %2490 = vmatpush1.bf16.msra.mxu1 %v5984_v30  ;;  %v5992_v38 = vcombine.low %v187_v26, %v191_v27  ;;  %v109_v28 = vld [vmem:[#allocation5 + $0x90] sm:$0xff] }
  0x8c   :  { %v439_v32 = vld [vmem:[#allocation5 + $0xae0] sm:$0xff]  ;;  %2573 = vmatprep.subr.bf16.mxu0 %v6233_v29  ;;  %v113_v29 = vld [vmem:[#allocation5 + $0xb0] sm:$0xff] }
  0x8d   :  { %v195_v34 = vld [vmem:[#allocation5 + $0x340] sm:$0xff]  ;;  %v6241_v37 = vcombine.high %v435_v31, %v439_v32  ;;  %2491 = vmatprep.subr.bf16.mxu1 %v5993_v33  ;;  %v6240_v45 = vcombine.low %v435_v31, %v439_v32  ;;  %v5908_v32 = vcombine.low %v101_v20, %v105_v21  ;;  %v5917_v33 = vcombine.high %v109_v28, %v113_v29 }
  0x8e   :  { %v199_v35 = vld [vmem:[#allocation5 + $0x360] sm:$0xff] }
  0x8f   :  { %v443_v40 = vld [vmem:[#allocation5 + $0xb00] sm:$0xff]  ;;  %v6001_v42 = vcombine.high %v195_v34, %v199_v35  ;;  %2574 = vmatpush1.bf16.msra.mxu0 %v6232_v36  ;;  %2492 = vmatpush1.bf16.msra.mxu1 %v5992_v38  ;;  %v6000_v47 = vcombine.low %v195_v34, %v199_v35  ;;  %v117_v36 = vld [vmem:[#allocation5 + $0xd0] sm:$0xff] }
  0x90   :  { %v447_v41 = vld [vmem:[#allocation5 + $0xb20] sm:$0xff]  ;;  %2575 = vmatprep.subr.bf16.mxu0 %v6241_v37  ;;  %v121_v37 = vld [vmem:[#allocation5 + $0xf0] sm:$0xff] }
  0x91   :  { %v203_v43 = vld [vmem:[#allocation5 + $0x380] sm:$0xff]  ;;  %v6249_v46 = vcombine.high %v443_v40, %v447_v41  ;;  %2493 = vmatprep.subr.bf16.mxu1 %v6001_v42  ;;  %v6248_v53 = vcombine.low %v443_v40, %v447_v41  ;;  %v5916_v41 = vcombine.low %v109_v28, %v113_v29  ;;  %v5925_v42 = vcombine.high %v117_v36, %v121_v37 }
  0x92   :  { %v207_v44 = vld [vmem:[#allocation5 + $0x3a0] sm:$0xff] }
  0x93   :  { %v451_v48 = vld [vmem:[#allocation5 + $0xb40] sm:$0xff]  ;;  %v6009_v50 = vcombine.high %v203_v43, %v207_v44  ;;  %2576 = vmatpush1.bf16.msra.mxu0 %v6240_v45  ;;  %2494 = vmatpush1.bf16.msra.mxu1 %v6000_v47  ;;  %v6008_v55 = vcombine.low %v203_v43, %v207_v44  ;;  %v125_v45 = vld [vmem:[#allocation5 + $0x110] sm:$0xff] }
  0x94   :  { %v455_v49 = vld [vmem:[#allocation5 + $0xb60] sm:$0xff]  ;;  %2577 = vmatprep.subr.bf16.mxu0 %v6249_v46  ;;  %v129_v46 = vld [vmem:[#allocation5 + $0x130] sm:$0xff] }
  0x95   :  { %v211_v51 = vld [vmem:[#allocation5 + $0x3c0] sm:$0xff]  ;;  %v6257_v54 = vcombine.high %v451_v48, %v455_v49  ;;  %2495 = vmatprep.subr.bf16.mxu1 %v6009_v50  ;;  %v6256_v61 = vcombine.low %v451_v48, %v455_v49  ;;  %v5924_v49 = vcombine.low %v117_v36, %v121_v37  ;;  %v5933_v50 = vcombine.high %v125_v45, %v129_v46 }
  0x96   :  { %v215_v52 = vld [vmem:[#allocation5 + $0x3e0] sm:$0xff] }
  0x97   :  { %v459_v56 = vld [vmem:[#allocation5 + $0xb80] sm:$0xff]  ;;  %v6017_v58 = vcombine.high %v211_v51, %v215_v52  ;;  %2578 = vmatpush1.bf16.msra.mxu0 %v6248_v53  ;;  %2496 = vmatpush1.bf16.msra.mxu1 %v6008_v55  ;;  %v6016_v63 = vcombine.low %v211_v51, %v215_v52  ;;  %v133_v53 = vld [vmem:[#allocation5 + $0x150] sm:$0xff] }
  0x98   :  { %v463_v57 = vld [vmem:[#allocation5 + $0xba0] sm:$0xff]  ;;  %2579 = vmatprep.subr.bf16.mxu0 %v6257_v54  ;;  %v137_v54 = vld [vmem:[#allocation5 + $0x170] sm:$0xff] }
  0x99   :  { %v219_v59 = vld [vmem:[#allocation5 + $0x400] sm:$0xff]  ;;  %v6265_v62 = vcombine.high %v459_v56, %v463_v57  ;;  %2497 = vmatprep.subr.bf16.mxu1 %v6017_v58  ;;  %v6264_v6 = vcombine.low %v459_v56, %v463_v57  ;;  %v5932_v57 = vcombine.low %v125_v45, %v129_v46  ;;  %v5941_v58 = vcombine.high %v133_v53, %v137_v54 }
  0x9a   :  { %v223_v60 = vld [vmem:[#allocation5 + $0x420] sm:$0xff] }
  0x9b   :  { %v467_v0 = vld [vmem:[#allocation5 + $0xbc0] sm:$0xff]  ;;  %v6025_v2 = vcombine.high %v219_v59, %v223_v60  ;;  %2580 = vmatpush1.bf16.msra.mxu0 %v6256_v61  ;;  %2498 = vmatpush1.bf16.msra.mxu1 %v6016_v63  ;;  %v6024_v8 = vcombine.low %v219_v59, %v223_v60  ;;  %v141_v61 = vld [vmem:[#allocation5 + $0x190] sm:$0xff] }
  0x9c   :  { %v471_v1 = vld [vmem:[#allocation5 + $0xbe0] sm:$0xff]  ;;  %2581 = vmatprep.subr.bf16.mxu0 %v6265_v62  ;;  %v145_v62 = vld [vmem:[#allocation5 + $0x1b0] sm:$0xff] }
  0x9d   :  { %v227_v4 = vld [vmem:[#allocation5 + $0x440] sm:$0xff]  ;;  %v6273_v7 = vcombine.high %v467_v0, %v471_v1  ;;  %2510 = vmatprep.subr.bf16.mxu1 %v6025_v2  ;;  %v6272_v15 = vcombine.low %v467_v0, %v471_v1  ;;  %v5940_v1 = vcombine.low %v133_v53, %v137_v54  ;;  %v5949_v2 = vcombine.high %v141_v61, %v145_v62 }
  0x9e   :  { %v231_v5 = vld [vmem:[#allocation5 + $0x460] sm:$0xff]  ;;  %2500 = vmatmul.mubr.bf16.vlgmr.msra.gmra.mrb[0].mxu1 %v7613_v3  ;;  %v5948_v10 = vcombine.low %v141_v61, %v145_v62 }
  0x9f   :  { %v235_v9 = vld [vmem:[#allocation5 + $0x480] sm:$0xff]  ;;  %v6033_v13 = vcombine.high %v227_v4, %v231_v5  ;;  %2582 = vmatpush1.bf16.msra.mxu0 %v6264_v6  ;;  %2511 = vmatpush1.bf16.msra.mxu1 %v6024_v8  ;;  %v6032_v17 = vcombine.low %v227_v4, %v231_v5  ;;  %v149_v6 = vld [vmem:[#allocation5 + $0x1d0] sm:$0xff] }
  0xa0   :  { %v239_v14 = vld [vmem:[#allocation5 + $0x4a0] sm:$0xff]  ;;  %2583 = vmatprep.subr.bf16.mxu0 %v6273_v7  ;;  %2542 = vmatprep.mubr.bf16.mxu1 %v7615_v12  ;;  %v153_v7 = vld [vmem:[#allocation5 + $0x1f0] sm:$0xff] }
  0xa1   :  { %v243_v18 = vld [vmem:[#allocation5 + $0x4c0] sm:$0xff]  ;;  %2512 = vmatprep.subr.bf16.mxu1 %v6033_v13  ;;  %v6041_v22 = vcombine.high %v235_v9, %v239_v14  ;;  %v6040_v26 = vcombine.low %v235_v9, %v239_v14  ;;  %v5957_v11 = vcombine.high %v149_v6, %v153_v7 }
  0xa2   :  { %v247_v19 = vld [vmem:[#allocation5 + $0x4e0] sm:$0xff] }
  0xa3   :  { %v6777_v23 = vld [vmem:[#allocation2 + $0x10] ss:$24 sps:$4 sm:$0xff]   ;;  %2584 = vmatpush1.bf16.msra.mxu0 %v6272_v15  ;;  %2513 = vmatpush1.bf16.msra.mxu1 %v6032_v17  ;;  %v6049_v30 = vcombine.high %v243_v18, %v247_v19  ;;  %v6048_v34 = vcombine.low %v243_v18, %v247_v19  ;;  %v157_v15 = vld [vmem:[#allocation5 + $0x210] sm:$0xff]  ;;  %v5956_v19 = vcombine.low %v149_v6, %v153_v7 }
  0xa4   :  { %2725 = vmatprep.subr.bf16.mxu0 %v5901_v16  ;;  %v251_v27 = vld [vmem:[#allocation5 + $0x500] sm:$0xff]  ;;  %2514 = vmatprep.subr.bf16.mxu1 %v6041_v22  ;;  %v161_v16 = vld [vmem:[#allocation5 + $0x230] sm:$0xff] }
  0xa5   :  { %v255_v31 = vld [vmem:[#allocation5 + $0x520] sm:$0xff]  ;;  %v5965_v20 = vcombine.high %v157_v15, %v161_v16 }
  0xa6   :  { %2586 = vmatmul.mubr.bf16.vlgmr.msra.gmra.mrb[0].mxu0 %v6777_v23  ;;  %v259_v35 = vld [vmem:[#allocation5 + $0x540] sm:$0xff]  ;;  %v6057_v38 = vcombine.high %v251_v27, %v255_v31  ;;  %v6056_v43 = vcombine.low %v251_v27, %v255_v31  ;;  %v165_v23 = vld [vmem:[#allocation5 + $0x250] sm:$0xff]  ;;  %v5964_v27 = vcombine.low %v157_v15, %v161_v16 }
  0xa7   :  { %2726 = vmatpush1.bf16.msra.mxu0 %v5900_v24  ;;  %2757 = vmatprep.mubr.bf16.mxu0 %v7610_v39  ;;  %v263_v40 = vld [vmem:[#allocation5 + $0x560] sm:$0xff]  ;;  %v169_v24 = vld [vmem:[#allocation5 + $0x270] sm:$0xff] }
  0xa8   :  { %2727 = vmatprep.subr.bf16.mxu0 %v5909_v25  ;;  %2515 = vmatpush1.bf16.msra.mxu1 %v6040_v26  ;;  %v267_v44 = vld [vmem:[#allocation5 + $0x580] sm:$0xff]  ;;  %v6065_v47 = vcombine.high %v259_v35, %v263_v40  ;;  %v6064_v51 = vcombine.low %v259_v35, %v263_v40  ;;  %v5973_v28 = vcombine.high %v165_v23, %v169_v24  ;;  %v173_v31 = vld [vmem:[#allocation5 + $0x290] sm:$0xff] }
  0xa9   :  { %2516 = vmatprep.subr.bf16.mxu1 %v6049_v30  ;;  %v271_v48 = vld [vmem:[#allocation5 + $0x5a0] sm:$0xff]  ;;  %v5972_v35 = vcombine.low %v165_v23, %v169_v24  ;;  %v181_v40 = vld [vmem:[#allocation5 + $0x2d0] sm:$0xff] }
  0xaa   :  { %v275_v52 = vld [vmem:[#allocation5 + $0x5c0] sm:$0xff]  ;;  %v6073_v55 = vcombine.high %v267_v44, %v271_v48  ;;  %v6072_v59 = vcombine.low %v267_v44, %v271_v48  ;;  %v189_v48 = vld [vmem:[#allocation5 + $0x310] sm:$0xff] }
  0xab   :  { %2728 = vmatpush1.bf16.msra.mxu0 %v5908_v32  ;;  %v279_v56 = vld [vmem:[#allocation5 + $0x5e0] sm:$0xff]  ;;  %v177_v32 = vld [vmem:[#allocation5 + $0x2b0] sm:$0xff] }
  0xac   :  { %2729 = vmatprep.subr.bf16.mxu0 %v5917_v33  ;;  %2517 = vmatpush1.bf16.msra.mxu1 %v6048_v34  ;;  %v283_v60 = vld [vmem:[#allocation5 + $0x600] sm:$0xff]  ;;  %v6081_v63 = vcombine.high %v275_v52, %v279_v56  ;;  %v6080_v4 = vcombine.low %v275_v52, %v279_v56  ;;  %v5981_v36 = vcombine.high %v173_v31, %v177_v32  ;;  %v197_v56 = vld [vmem:[#allocation5 + $0x350] sm:$0xff] }
  0xad   :  { %2518 = vmatprep.subr.bf16.mxu1 %v6057_v38  ;;  %v287_v0 = vld [vmem:[#allocation5 + $0x620] sm:$0xff]  ;;  %v5980_v44 = vcombine.low %v173_v31, %v177_v32 }
  0xae   :  { %v291_v5 = vld [vmem:[#allocation5 + $0x640] sm:$0xff]  ;;  %v6089_v8 = vcombine.high %v283_v60, %v287_v0  ;;  %v6088_v13 = vcombine.low %v283_v60, %v287_v0  ;;  %v205_v0 = vld [vmem:[#allocation5 + $0x390] sm:$0xff] }
  0xaf   :  { %2730 = vmatpush1.bf16.msra.mxu0 %v5916_v41  ;;  %v295_v9 = vld [vmem:[#allocation5 + $0x660] sm:$0xff]  ;;  %v185_v41 = vld [vmem:[#allocation5 + $0x2f0] sm:$0xff] }
  0xb0   :  { %2731 = vmatprep.subr.bf16.mxu0 %v5925_v42  ;;  %2519 = vmatpush1.bf16.msra.mxu1 %v6056_v43  ;;  %v299_v14 = vld [vmem:[#allocation5 + $0x680] sm:$0xff]  ;;  %v6097_v17 = vcombine.high %v291_v5, %v295_v9  ;;  %v6096_v21 = vcombine.low %v291_v5, %v295_v9  ;;  %v5989_v45 = vcombine.high %v181_v40, %v185_v41  ;;  %v213_v9 = vld [vmem:[#allocation5 + $0x3d0] sm:$0xff] }
  0xb1   :  { %2520 = vmatprep.subr.bf16.mxu1 %v6065_v47  ;;  %v303_v18 = vld [vmem:[#allocation5 + $0x6a0] sm:$0xff]  ;;  %v5988_v52 = vcombine.low %v181_v40, %v185_v41 }
  0xb2   :  { %v307_v22 = vld [vmem:[#allocation5 + $0x6c0] sm:$0xff]  ;;  %v6105_v25 = vcombine.high %v299_v14, %v303_v18  ;;  %v6104_v29 = vcombine.low %v299_v14, %v303_v18  ;;  %v104_v14 = vld [vmem:[#allocation5 + $0x68] sm:$0xff] }
  0xb3   :  { %2732 = vmatpush1.bf16.msra.mxu0 %v5924_v49  ;;  %v311_v26 = vld [vmem:[#allocation5 + $0x6e0] sm:$0xff]  ;;  %v193_v49 = vld [vmem:[#allocation5 + $0x330] sm:$0xff]  ;;  %v108_v18 = vld [vmem:[#allocation5 + $0x88] sm:$0xff] }
  0xb4   :  { %2733 = vmatprep.subr.bf16.mxu0 %v5933_v50  ;;  %2521 = vmatpush1.bf16.msra.mxu1 %v6064_v51  ;;  %v315_v30 = vld [vmem:[#allocation5 + $0x700] sm:$0xff]  ;;  %v6113_v33 = vcombine.high %v307_v22, %v311_v26  ;;  %v6112_v37 = vcombine.low %v307_v22, %v311_v26  ;;  %v5997_v53 = vcombine.high %v189_v48, %v193_v49  ;;  %v112_v22 = vld [vmem:[#allocation5 + $0xa8] sm:$0xff] }
  0xb5   :  { %2522 = vmatprep.subr.bf16.mxu1 %v6073_v55  ;;  %v319_v34 = vld [vmem:[#allocation5 + $0x720] sm:$0xff]  ;;  %v5996_v60 = vcombine.low %v189_v48, %v193_v49  ;;  %v116_v26 = vld [vmem:[#allocation5 + $0xc8] sm:$0xff] }
  0xb6   :  { %v323_v38 = vld [vmem:[#allocation5 + $0x740] sm:$0xff]  ;;  %v6121_v42 = vcombine.high %v315_v30, %v319_v34  ;;  %v6120_v46 = vcombine.low %v315_v30, %v319_v34  ;;  %v120_v30 = vld [vmem:[#allocation5 + $0xe8] sm:$0xff] }
  0xb7   :  { %2734 = vmatpush1.bf16.msra.mxu0 %v5932_v57  ;;  %v327_v43 = vld [vmem:[#allocation5 + $0x760] sm:$0xff]  ;;  %v201_v57 = vld [vmem:[#allocation5 + $0x370] sm:$0xff]  ;;  %v124_v34 = vld [vmem:[#allocation5 + $0x108] sm:$0xff]  ;;  %v5922_v41 = vcombine.low %v116_v26, %v120_v30 }
  0xb8   :  { %2735 = vmatprep.subr.bf16.mxu0 %v5941_v58  ;;  %2523 = vmatpush1.bf16.msra.mxu1 %v6072_v59  ;;  %v331_v47 = vld [vmem:[#allocation5 + $0x780] sm:$0xff]  ;;  %v6129_v50 = vcombine.high %v323_v38, %v327_v43  ;;  %v6128_v54 = vcombine.low %v323_v38, %v327_v43  ;;  %v6005_v61 = vcombine.high %v197_v56, %v201_v57  ;;  %v128_v38 = vld [vmem:[#allocation5 + $0x128] sm:$0xff]  ;;  %v245_v43 = vld [vmem:[#allocation5 + $0x4d0] sm:$0xff] }
  0xb9   :  { %2524 = vmatprep.subr.bf16.mxu1 %v6081_v63  ;;  %v335_v51 = vld [vmem:[#allocation5 + $0x7a0] sm:$0xff]  ;;  %v92_v63 = vld [vmem:[#allocation5 + $0x8] sm:$0xff]  ;;  %v6004_v5 = vcombine.low %v197_v56, %v201_v57  ;;  %v261_v57 = vld [vmem:[#allocation5 + $0x550] sm:$0xff] }
  0xba   :  { %v339_v55 = vld [vmem:[#allocation5 + $0x7c0] sm:$0xff]  ;;  %v6137_v58 = vcombine.high %v331_v47, %v335_v51  ;;  %v6136_v62 = vcombine.low %v331_v47, %v335_v51  ;;  %v140_v49 = vld [vmem:[#allocation5 + $0x188] sm:$0xff]  ;;  %v257_v51 = vld [vmem:[#allocation5 + $0x530] sm:$0xff] }
  0xbb   :  { %2736 = vmatpush1.bf16.msra.mxu0 %v5940_v1  ;;  %v343_v59 = vld [vmem:[#allocation5 + $0x7e0] sm:$0xff]  ;;  %v209_v1 = vld [vmem:[#allocation5 + $0x3b0] sm:$0xff]  ;;  %v148_v56 = vld [vmem:[#allocation5 + $0x1c8] sm:$0xff] }
  0xbc   :  { %2737 = vmatprep.subr.bf16.mxu0 %v5949_v2  ;;  %2525 = vmatpush1.bf16.msra.mxu1 %v6080_v4  ;;  %v6145_v2 = vcombine.high %v339_v55, %v343_v59  ;;  %v96_v4 = vld [vmem:[#allocation5 + $0x28] sm:$0xff]  ;;  %v6013_v6 = vcombine.high %v205_v0, %v209_v1  ;;  %v6144_v7 = vcombine.low %v339_v55, %v343_v59 }
  0xbd   :  { %2526 = vmatprep.subr.bf16.mxu1 %v6089_v8  ;;  %v100_v8 = vld [vmem:[#allocation5 + $0x48] sm:$0xff]  ;;  %v6012_v15 = vcombine.low %v205_v0, %v209_v1  ;;  %v269_v1 = vld [vmem:[#allocation5 + $0x590] sm:$0xff] }
  0xbe   :  { %v156_v0 = vld [vmem:[#allocation5 + $0x208] sm:$0xff] }
  0xbf   :  { %2738 = vmatpush1.bf16.msra.mxu0 %v5948_v10  ;;  %v217_v10 = vld [vmem:[#allocation5 + $0x3f0] sm:$0xff] }
  0xc0   :  { %2739 = vmatprep.subr.bf16.mxu0 %v5957_v11  ;;  %2527 = vmatpush1.bf16.msra.mxu1 %v6088_v13  ;;  %v7620_v11 = vld [vmem:[#allocation2 + $0x8] ss:$24 sps:$4 sm:$0xff]   ;;  %v5899_v13 = vcombine.high %v92_v63, %v96_v4  ;;  %v6021_v16 = vcombine.high %v213_v9, %v217_v10  ;;  %v6020_v23 = vcombine.low %v213_v9, %v217_v10  ;;  %v164_v9 = vld [vmem:[#allocation5 + $0x248] sm:$0xff] }
  0xc1   :  { %2528 = vmatprep.subr.bf16.mxu1 %v6097_v17  ;;  %v5898_v17 = vcombine.low %v92_v63, %v96_v4  ;;  %v277_v10 = vld [vmem:[#allocation5 + $0x5d0] sm:$0xff] }
  0xc3   :  { %2740 = vmatpush1.bf16.msra.mxu0 %v5956_v19  ;;  %v221_v19 = vld [vmem:[#allocation5 + $0x410] sm:$0xff] }
  0xc4   :  { %2741 = vmatprep.subr.bf16.mxu0 %v5965_v20  ;;  %2529 = vmatpush1.bf16.msra.mxu1 %v6096_v21  ;;  %v225_v20 = vld [vmem:[#allocation5 + $0x430] sm:$0xff]  ;;  %v5907_v21 = vcombine.high %v100_v8, %v104_v14 }
  0xc5   :  { %2530 = vmatprep.subr.bf16.mxu1 %v6105_v25  ;;  %v6029_v24 = vcombine.high %v221_v19, %v225_v20  ;;  %v5906_v25 = vcombine.low %v100_v8, %v104_v14  ;;  %v6028_v31 = vcombine.low %v221_v19, %v225_v20  ;;  %v285_v19 = vld [vmem:[#allocation5 + $0x610] sm:$0xff] }
  0xc6   :  { %v289_v20 = vld [vmem:[#allocation5 + $0x630] sm:$0xff] }
  0xc7   :  { %2742 = vmatpush1.bf16.msra.mxu0 %v5964_v27  ;;  %v229_v27 = vld [vmem:[#allocation5 + $0x450] sm:$0xff] }
  0xc8   :  { %2743 = vmatprep.subr.bf16.mxu0 %v5973_v28  ;;  %2531 = vmatpush1.bf16.msra.mxu1 %v6104_v29  ;;  %v233_v28 = vld [vmem:[#allocation5 + $0x470] sm:$0xff]  ;;  %v5915_v29 = vcombine.high %v108_v18, %v112_v22 }
  0xc9   :  { %2532 = vmatprep.subr.bf16.mxu1 %v6113_v33  ;;  %v6037_v32 = vcombine.high %v229_v27, %v233_v28  ;;  %v5914_v33 = vcombine.low %v108_v18, %v112_v22  ;;  %v6036_v40 = vcombine.low %v229_v27, %v233_v28  ;;  %v172_v22 = vld [vmem:[#allocation5 + $0x288] sm:$0xff]  ;;  %v293_v27 = vld [vmem:[#allocation5 + $0x650] sm:$0xff] }
  0xca   :  { %v297_v28 = vld [vmem:[#allocation5 + $0x670] sm:$0xff] }
  0xcb   :  { %2744 = vmatpush1.bf16.msra.mxu0 %v5972_v35  ;;  %v237_v35 = vld [vmem:[#allocation5 + $0x490] sm:$0xff] }
  0xcc   :  { %2745 = vmatprep.subr.bf16.mxu0 %v5981_v36  ;;  %2533 = vmatpush1.bf16.msra.mxu1 %v6112_v37  ;;  %v241_v36 = vld [vmem:[#allocation5 + $0x4b0] sm:$0xff]  ;;  %v5923_v37 = vcombine.high %v116_v26, %v120_v30  ;;  %v180_v30 = vld [vmem:[#allocation5 + $0x2c8] sm:$0xff] }
  0xcd   :  { %2534 = vmatprep.subr.bf16.mxu1 %v6121_v42  ;;  %v132_v42 = vld [vmem:[#allocation5 + $0x148] sm:$0xff]  ;;  %v6044_v47 = vcombine.low %v237_v35, %v241_v36 }
  0xcf   :  { %2746 = vmatpush1.bf16.msra.mxu0 %v5980_v44  ;;  %v249_v44 = vld [vmem:[#allocation5 + $0x4f0] sm:$0xff] }
  0xd0   :  { %2747 = vmatprep.subr.bf16.mxu0 %v5989_v45  ;;  %2535 = vmatpush1.bf16.msra.mxu1 %v6120_v46  ;;  %v5931_v45 = vcombine.high %v124_v34, %v128_v38  ;;  %v136_v46 = vld [vmem:[#allocation5 + $0x168] sm:$0xff]  ;;  %v6053_v48 = vcombine.high %v245_v43, %v249_v44 }
  0xd1   :  { %2536 = vmatprep.subr.bf16.mxu1 %v6129_v50  ;;  %v253_v50 = vld [vmem:[#allocation5 + $0x510] sm:$0xff]  ;;  %v5938_v55 = vcombine.low %v132_v42, %v136_v46 }
  0xd3   :  { %2748 = vmatpush1.bf16.msra.mxu0 %v5988_v52  ;;  %v144_v52 = vld [vmem:[#allocation5 + $0x1a8] sm:$0xff] }
  0xd4   :  { %2749 = vmatprep.subr.bf16.mxu0 %v5997_v53  ;;  %2537 = vmatpush1.bf16.msra.mxu1 %v6128_v54  ;;  %v6052_v53 = vcombine.low %v245_v43, %v249_v44  ;;  %v6061_v54 = vcombine.high %v253_v50, %v257_v51  ;;  %v5947_v59 = vcombine.high %v140_v49, %v144_v52  ;;  %v309_v43 = vld [vmem:[#allocation5 + $0x6d0] sm:$0xff] }
  0xd5   :  { %2538 = vmatprep.subr.bf16.mxu1 %v6137_v58  ;;  %v265_v58 = vld [vmem:[#allocation5 + $0x570] sm:$0xff]  ;;  %v5946_v63 = vcombine.low %v140_v49, %v144_v52  ;;  %v204_v52 = vld [vmem:[#allocation5 + $0x388] sm:$0xff] }
  0xd6   :  { %v313_v44 = vld [vmem:[#allocation5 + $0x6f0] sm:$0xff] }
  0xd7   :  { %2750 = vmatpush1.bf16.msra.mxu0 %v5996_v60  ;;  %v152_v60 = vld [vmem:[#allocation5 + $0x1e8] sm:$0xff] }
  0xd8   :  { %2751 = vmatprep.subr.bf16.mxu0 %v6005_v61  ;;  %2539 = vmatpush1.bf16.msra.mxu1 %v6136_v62  ;;  %v6060_v61 = vcombine.low %v253_v50, %v257_v51  ;;  %v6069_v62 = vcombine.high %v261_v57, %v265_v58  ;;  %v5955_v4 = vcombine.high %v148_v56, %v152_v60  ;;  %v317_v50 = vld [vmem:[#allocation5 + $0x710] sm:$0xff] }
  0xd9   :  { %2540 = vmatprep.subr.bf16.mxu1 %v6145_v2  ;;  %v273_v2 = vld [vmem:[#allocation5 + $0x5b0] sm:$0xff]  ;;  %v5954_v8 = vcombine.low %v148_v56, %v152_v60  ;;  %v212_v60 = vld [vmem:[#allocation5 + $0x3c8] sm:$0xff] }
  0xda   :  { %v321_v51 = vld [vmem:[#allocation5 + $0x730] sm:$0xff] }
  0xdb   :  { %2752 = vmatpush1.bf16.msra.mxu0 %v6004_v5  ;;  %v160_v5 = vld [vmem:[#allocation5 + $0x228] sm:$0xff] }
  0xdc   :  { %2753 = vmatprep.subr.bf16.mxu0 %v6013_v6  ;;  %2541 = vmatpush1.bf16.msra.mxu1 %v6144_v7  ;;  %v6068_v6 = vcombine.low %v261_v57, %v265_v58  ;;  %v6077_v7 = vcombine.high %v269_v1, %v273_v2  ;;  %v5963_v14 = vcombine.high %v156_v0, %v160_v5  ;;  %v325_v57 = vld [vmem:[#allocation5 + $0x750] sm:$0xff] }
  0xdd   :  { %2596 = vmatprep.subr.bf16.mxu1 %v5899_v13  ;;  %v281_v13 = vld [vmem:[#allocation5 + $0x5f0] sm:$0xff]  ;;  %v5962_v18 = vcombine.low %v156_v0, %v160_v5  ;;  %v220_v5 = vld [vmem:[#allocation5 + $0x408] sm:$0xff] }
  0xde   :  { %v329_v58 = vld [vmem:[#allocation5 + $0x770] sm:$0xff] }
  0xdf   :  { %2754 = vmatpush1.bf16.msra.mxu0 %v6012_v15  ;;  %2543 = vmatmul.mubr.bf16.vlgmr.msra.gmra.mrb[0].mxu1 %v7620_v11  ;;  %v168_v15 = vld [vmem:[#allocation5 + $0x268] sm:$0xff] }
  0xe0   :  { %2755 = vmatprep.subr.bf16.mxu0 %v6021_v16  ;;  %2597 = vmatpush1.bf16.msra.mxu1 %v5898_v17  ;;  %v6076_v16 = vcombine.low %v269_v1, %v273_v2  ;;  %v6085_v17 = vcombine.high %v277_v10, %v281_v13  ;;  %v5970_v26 = vcombine.low %v164_v9, %v168_v15  ;;  %v333_v1 = vld [vmem:[#allocation5 + $0x790] sm:$0xff] }
  0xe1   :  { %2628 = vmatprep.mubr.bf16.mxu1 %v7610_v39  ;;  %2598 = vmatprep.subr.bf16.mxu1 %v5907_v21  ;;  %v6045_v39 = vcombine.high %v237_v35, %v241_v36  ;;  %v5971_v21 = vcombine.high %v164_v9, %v168_v15  ;;  %v301_v35 = vld [vmem:[#allocation5 + $0x690] sm:$0xff]  ;;  %v228_v15 = vld [vmem:[#allocation5 + $0x448] sm:$0xff] }
  0xe2   :  { %v305_v36 = vld [vmem:[#allocation5 + $0x6b0] sm:$0xff] }
  0xe3   :  { %2756 = vmatpush1.bf16.msra.mxu0 %v6020_v23  ;;  %v176_v23 = vld [vmem:[#allocation5 + $0x2a8] sm:$0xff]  ;;  %v337_v2 = vld [vmem:[#allocation5 + $0x7b0] sm:$0xff] }
  0xe4   :  { %2768 = vmatprep.subr.bf16.mxu0 %v6029_v24  ;;  %2599 = vmatpush1.bf16.msra.mxu1 %v5906_v25  ;;  %v6084_v24 = vcombine.low %v277_v10, %v281_v13  ;;  %v6093_v25 = vcombine.high %v285_v19, %v289_v20  ;;  %v341_v10 = vld [vmem:[#allocation5 + $0x7d0] sm:$0xff] }
  0xe5   :  { %2600 = vmatprep.subr.bf16.mxu1 %v5915_v29  ;;  %v5979_v29 = vcombine.high %v172_v22, %v176_v23  ;;  %v345_v13 = vld [vmem:[#allocation5 + $0x7f0] sm:$0xff] }
  0xe6   :  { %2758 = vmatmul.mubr.bf16.vlgmr.msra.gmra.mrb[4].mxu0 %v7613_v3  ;;  %v5930_v3 = vcombine.low %v124_v34, %v128_v38  ;;  %v5978_v34 = vcombine.low %v172_v22, %v176_v23  ;;  %v188_v38 = vld [vmem:[#allocation5 + $0x308] sm:$0xff] }
  0xe7   :  { %2769 = vmatpush1.bf16.msra.mxu0 %v6028_v31  ;;  %2800 = vmatprep.mubr.bf16.mxu0 %v7615_v12  ;;  %v5939_v12 = vcombine.high %v132_v42, %v136_v46  ;;  %v184_v31 = vld [vmem:[#allocation5 + $0x2e8] sm:$0xff] }
  0xe8   :  { %2770 = vmatprep.subr.bf16.mxu0 %v6037_v32  ;;  %2601 = vmatpush1.bf16.msra.mxu1 %v5914_v33  ;;  %v6092_v32 = vcombine.low %v285_v19, %v289_v20  ;;  %v6101_v33 = vcombine.high %v293_v27, %v297_v28  ;;  %v5986_v42 = vcombine.low %v180_v30, %v184_v31  ;;  %v196_v46 = vld [vmem:[#allocation5 + $0x348] sm:$0xff]  ;;  %v349_v20 = vld [vmem:[#allocation5 + $0x810] sm:$0xff] }
  0xe9   :  { %2602 = vmatprep.subr.bf16.mxu1 %v5923_v37  ;;  %v5987_v37 = vcombine.high %v180_v30, %v184_v31  ;;  %v236_v23 = vld [vmem:[#allocation5 + $0x488] sm:$0xff]  ;;  %v361_v30 = vld [vmem:[#allocation5 + $0x870] sm:$0xff] }
  0xea   :  { %v7358_v31 = vld [vmem:[#allocation2 + $0xc] ss:$24 sps:$4 sm:$0xff]  }
  0xeb   :  { %2771 = vmatpush1.bf16.msra.mxu0 %v6036_v40  ;;  %v192_v40 = vld [vmem:[#allocation5 + $0x328] sm:$0xff] }
  0xec   :  { %2772 = vmatprep.subr.bf16.mxu0 %v6045_v39  ;;  %2603 = vmatpush1.bf16.msra.mxu1 %v5922_v41  ;;  %v6100_v39 = vcombine.low %v293_v27, %v297_v28  ;;  %v6109_v41 = vcombine.high %v301_v35, %v305_v36  ;;  %v5994_v49 = vcombine.low %v188_v38, %v192_v40 }
  0xed   :  { %2604 = vmatprep.subr.bf16.mxu1 %v5931_v45  ;;  %v5995_v45 = vcombine.high %v188_v38, %v192_v40  ;;  %v365_v38 = vld [vmem:[#allocation5 + $0x890] sm:$0xff] }
  0xee   :  { %v369_v40 = vld [vmem:[#allocation5 + $0x8b0] sm:$0xff] }
  0xef   :  { %2773 = vmatpush1.bf16.msra.mxu0 %v6044_v47  ;;  %v200_v47 = vld [vmem:[#allocation5 + $0x368] sm:$0xff] }
  0xf0   :  { %2774 = vmatprep.subr.bf16.mxu0 %v6053_v48  ;;  %2605 = vmatpush1.bf16.msra.mxu1 %v5930_v3  ;;  %v6108_v48 = vcombine.low %v301_v35, %v305_v36  ;;  %v6117_v3 = vcombine.high %v309_v43, %v313_v44  ;;  %v6002_v56 = vcombine.low %v196_v46, %v200_v47 }
  0xf1   :  { %2606 = vmatprep.subr.bf16.mxu1 %v5939_v12  ;;  %v6003_v12 = vcombine.high %v196_v46, %v200_v47  ;;  %v373_v47 = vld [vmem:[#allocation5 + $0x8d0] sm:$0xff] }
  0xf3   :  { %2775 = vmatpush1.bf16.msra.mxu0 %v6052_v53  ;;  %v208_v53 = vld [vmem:[#allocation5 + $0x3a8] sm:$0xff] }
  0xf4   :  { %2776 = vmatprep.subr.bf16.mxu0 %v6061_v54  ;;  %2607 = vmatpush1.bf16.msra.mxu1 %v5938_v55  ;;  %v6116_v54 = vcombine.low %v309_v43, %v313_v44  ;;  %v6125_v55 = vcombine.high %v317_v50, %v321_v51  ;;  %v6010_v0 = vcombine.low %v204_v52, %v208_v53  ;;  %v7627_v44 = vld [vmem:[#allocation2 + $0x14] ss:$24 sps:$4 sm:$0xff]  }
  0xf5   :  { %2608 = vmatprep.subr.bf16.mxu1 %v5947_v59  ;;  %v6011_v59 = vcombine.high %v204_v52, %v208_v53  ;;  %v381_v52 = vld [vmem:[#allocation5 + $0x910] sm:$0xff] }
  0xf6   :  { %v385_v53 = vld [vmem:[#allocation5 + $0x930] sm:$0xff] }
  0xf7   :  { %2777 = vmatpush1.bf16.msra.mxu0 %v6060_v61  ;;  %v216_v61 = vld [vmem:[#allocation5 + $0x3e8] sm:$0xff] }
  0xf8   :  { %2778 = vmatprep.subr.bf16.mxu0 %v6069_v62  ;;  %2609 = vmatpush1.bf16.msra.mxu1 %v5946_v63  ;;  %v6124_v62 = vcombine.low %v317_v50, %v321_v51  ;;  %v6133_v63 = vcombine.high %v325_v57, %v329_v58  ;;  %v6018_v9 = vcombine.low %v212_v60, %v216_v61  ;;  %v264_v50 = vld [vmem:[#allocation5 + $0x568] sm:$0xff] }
  0xf9   :  { %2610 = vmatprep.subr.bf16.mxu1 %v5955_v4  ;;  %v6019_v4 = vcombine.high %v212_v60, %v216_v61  ;;  %v6172_v51 = vcombine.low %v365_v38, %v369_v40  ;;  %v389_v60 = vld [vmem:[#allocation5 + $0x950] sm:$0xff] }
  0xfa   :  { %v393_v61 = vld [vmem:[#allocation5 + $0x970] sm:$0xff] }
  0xfb   :  { %2779 = vmatpush1.bf16.msra.mxu0 %v6068_v6  ;;  %v224_v6 = vld [vmem:[#allocation5 + $0x428] sm:$0xff] }
  0xfc   :  { %2780 = vmatprep.subr.bf16.mxu0 %v6077_v7  ;;  %2611 = vmatpush1.bf16.msra.mxu1 %v5954_v8  ;;  %v6132_v7 = vcombine.low %v325_v57, %v329_v58  ;;  %v6141_v8 = vcombine.high %v333_v1, %v337_v2  ;;  %v6026_v19 = vcombine.low %v220_v5, %v224_v6 }
  0xfd   :  { %2612 = vmatprep.subr.bf16.mxu1 %v5963_v14  ;;  %v6027_v14 = vcombine.high %v220_v5, %v224_v6  ;;  %v6189_v58 = vcombine.high %v381_v52, %v385_v53  ;;  %v397_v5 = vld [vmem:[#allocation5 + $0x990] sm:$0xff] }
  0xfe   :  { %v401_v6 = vld [vmem:[#allocation5 + $0x9b0] sm:$0xff] }
  0xff   :  { %2781 = vmatpush1.bf16.msra.mxu0 %v6076_v16  ;;  %v232_v16 = vld [vmem:[#allocation5 + $0x468] sm:$0xff] }
 0x100   :  { %2782 = vmatprep.subr.bf16.mxu0 %v6085_v17  ;;  %2613 = vmatpush1.bf16.msra.mxu1 %v5962_v18  ;;  %v6140_v17 = vcombine.low %v333_v1, %v337_v2  ;;  %v6149_v18 = vcombine.high %v341_v10, %v345_v13  ;;  %v6035_v22 = vcombine.high %v228_v15, %v232_v16 }
 0x101   :  { %2614 = vmatprep.subr.bf16.mxu1 %v5971_v21  ;;  %v353_v21 = vld [vmem:[#allocation5 + $0x830] sm:$0xff]  ;;  %v6034_v28 = vcombine.low %v228_v15, %v232_v16  ;;  %v6188_v1 = vcombine.low %v381_v52, %v385_v53  ;;  %v6197_v2 = vcombine.high %v389_v60, %v393_v61  ;;  %v332_v53 = vld [vmem:[#allocation5 + $0x788] sm:$0xff] }
 0x102   :  { %v6157_v27 = vcombine.high %v349_v20, %v353_v21  ;;  %v6156_v35 = vcombine.low %v349_v20, %v353_v21  ;;  %v405_v15 = vld [vmem:[#allocation5 + $0x9d0] sm:$0xff]  ;;  %v6204_v20 = vcombine.low %v397_v5, %v401_v6 }
 0x103   :  { %2783 = vmatpush1.bf16.msra.mxu0 %v6084_v24  ;;  %v240_v24 = vld [vmem:[#allocation5 + $0x4a8] sm:$0xff]  ;;  %v409_v16 = vld [vmem:[#allocation5 + $0x9f0] sm:$0xff] }
 0x104   :  { %2784 = vmatprep.subr.bf16.mxu0 %v6093_v25  ;;  %2615 = vmatpush1.bf16.msra.mxu1 %v5970_v26  ;;  %v6148_v25 = vcombine.low %v341_v10, %v345_v13  ;;  %v7357_v26 = vld [vmem:[#allocation2] ss:$24 sps:$4 sm:$0xff]   ;;  %v6196_v10 = vcombine.low %v389_v60, %v393_v61  ;;  %v6205_v13 = vcombine.high %v397_v5, %v401_v6 }
 0x105   :  { %2616 = vmatprep.subr.bf16.mxu1 %v5979_v29  ;;  %v357_v29 = vld [vmem:[#allocation5 + $0x850] sm:$0xff]  ;;  %v6213_v21 = vcombine.high %v405_v15, %v409_v16  ;;  %v340_v61 = vld [vmem:[#allocation5 + $0x7c8] sm:$0xff] }
 0x106   :  { %v6165_v36 = vcombine.high %v357_v29, %v361_v30  ;;  %v6164_v43 = vcombine.low %v357_v29, %v361_v30  ;;  %v461_v6 = vld [vmem:[#allocation5 + $0xb90] sm:$0xff] }
 0x107   :  { %2785 = vmatpush1.bf16.msra.mxu0 %v6092_v32  ;;  %v6043_v32 = vcombine.high %v236_v23, %v240_v24 }
 0x108   :  { %2786 = vmatprep.subr.bf16.mxu0 %v6101_v33  ;;  %2617 = vmatpush1.bf16.msra.mxu1 %v5978_v34  ;;  %v244_v33 = vld [vmem:[#allocation5 + $0x4c8] sm:$0xff] }
 0x109   :  { %2618 = vmatprep.subr.bf16.mxu1 %v5987_v37  ;;  %v248_v34 = vld [vmem:[#allocation5 + $0x4e8] sm:$0xff]  ;;  %v6042_v37 = vcombine.low %v236_v23, %v240_v24 }
 0x10a   :  { %v6050_v46 = vcombine.low %v244_v33, %v248_v34  ;;  %v300_v23 = vld [vmem:[#allocation5 + $0x688] sm:$0xff] }
 0x10b   :  { %2787 = vmatpush1.bf16.msra.mxu0 %v6100_v39  ;;  %v6051_v39 = vcombine.high %v244_v33, %v248_v34  ;;  %v304_v24 = vld [vmem:[#allocation5 + $0x6a8] sm:$0xff]  ;;  %v421_v33 = vld [vmem:[#allocation5 + $0xa50] sm:$0xff] }
 0x10c   :  { %2788 = vmatprep.subr.bf16.mxu0 %v6109_v41  ;;  %2619 = vmatpush1.bf16.msra.mxu1 %v5986_v42  ;;  %v252_v41 = vld [vmem:[#allocation5 + $0x508] sm:$0xff]  ;;  %v425_v34 = vld [vmem:[#allocation5 + $0xa70] sm:$0xff] }
 0x10d   :  { %2620 = vmatprep.subr.bf16.mxu1 %v5995_v45  ;;  %v256_v42 = vld [vmem:[#allocation5 + $0x528] sm:$0xff]  ;;  %v6173_v45 = vcombine.high %v365_v38, %v369_v40  ;;  %v6106_v38 = vcombine.low %v300_v23, %v304_v24 }
 0x10e   :  { %v316_v40 = vld [vmem:[#allocation5 + $0x708] sm:$0xff] }
 0x10f   :  { %2789 = vmatpush1.bf16.msra.mxu0 %v6108_v48  ;;  %v377_v48 = vld [vmem:[#allocation5 + $0x8f0] sm:$0xff] }
 0x110   :  { %2790 = vmatprep.subr.bf16.mxu0 %v6117_v3  ;;  %2621 = vmatpush1.bf16.msra.mxu1 %v5994_v49  ;;  %v6059_v3 = vcombine.high %v252_v41, %v256_v42  ;;  %v260_v49 = vld [vmem:[#allocation5 + $0x548] sm:$0xff]  ;;  %v6180_v57 = vcombine.low %v373_v47, %v377_v48 }
 0x111   :  { %2622 = vmatprep.subr.bf16.mxu1 %v6003_v12  ;;  %v6058_v12 = vcombine.low %v252_v41, %v256_v42  ;;  %v429_v41 = vld [vmem:[#allocation5 + $0xa90] sm:$0xff] }
 0x112   :  { %v433_v42 = vld [vmem:[#allocation5 + $0xab0] sm:$0xff] }
 0x113   :  { %2791 = vmatpush1.bf16.msra.mxu0 %v6116_v54  ;;  %v6067_v54 = vcombine.high %v260_v49, %v264_v50 }
 0x114   :  { %2792 = vmatprep.subr.bf16.mxu0 %v6125_v55  ;;  %2623 = vmatpush1.bf16.msra.mxu1 %v6002_v56  ;;  %v268_v55 = vld [vmem:[#allocation5 + $0x588] sm:$0xff] }
 0x115   :  { %2624 = vmatprep.subr.bf16.mxu1 %v6011_v59  ;;  %v272_v56 = vld [vmem:[#allocation5 + $0x5a8] sm:$0xff]  ;;  %v6066_v59 = vcombine.low %v260_v49, %v264_v50  ;;  %v437_v49 = vld [vmem:[#allocation5 + $0xad0] sm:$0xff] }
 0x116   :  { %v441_v50 = vld [vmem:[#allocation5 + $0xaf0] sm:$0xff] }
 0x117   :  { %2793 = vmatpush1.bf16.msra.mxu0 %v6124_v62  ;;  %v6075_v62 = vcombine.high %v268_v55, %v272_v56 }
 0x118   :  { %2794 = vmatprep.subr.bf16.mxu0 %v6133_v63  ;;  %2625 = vmatpush1.bf16.msra.mxu1 %v6010_v0  ;;  %v276_v63 = vld [vmem:[#allocation5 + $0x5c8] sm:$0xff] }
 0x119   :  { %2626 = vmatprep.subr.bf16.mxu1 %v6019_v4  ;;  %v280_v0 = vld [vmem:[#allocation5 + $0x5e8] sm:$0xff]  ;;  %v6074_v4 = vcombine.low %v268_v55, %v272_v56  ;;  %v445_v55 = vld [vmem:[#allocation5 + $0xb10] sm:$0xff] }
 0x11a   :  { %v449_v56 = vld [vmem:[#allocation5 + $0xb30] sm:$0xff] }
 0x11b   :  { %2795 = vmatpush1.bf16.msra.mxu0 %v6132_v7  ;;  %v6083_v7 = vcombine.high %v276_v63, %v280_v0 }
 0x11c   :  { %2796 = vmatprep.subr.bf16.mxu0 %v6141_v8  ;;  %2627 = vmatpush1.bf16.msra.mxu1 %v6018_v9  ;;  %v284_v8 = vld [vmem:[#allocation5 + $0x608] sm:$0xff] }
 0x11d   :  { %2639 = vmatprep.subr.bf16.mxu1 %v6027_v14  ;;  %v288_v9 = vld [vmem:[#allocation5 + $0x628] sm:$0xff]  ;;  %v6082_v14 = vcombine.low %v276_v63, %v280_v0  ;;  %v453_v63 = vld [vmem:[#allocation5 + $0xb50] sm:$0xff] }
 0x11e   :  { %v457_v0 = vld [vmem:[#allocation5 + $0xb70] sm:$0xff] }
 0x11f   :  { %2797 = vmatpush1.bf16.msra.mxu0 %v6140_v17  ;;  %2629 = vmatmul.mubr.bf16.vlgmr.msra.gmra.mrb[4].mxu1 %v7357_v26  ;;  %v6091_v17 = vcombine.high %v284_v8, %v288_v9  ;;  %v417_v26 = vld [vmem:[#allocation5 + $0xa30] sm:$0xff] }
 0x120   :  { %2798 = vmatprep.subr.bf16.mxu0 %v6149_v18  ;;  %2640 = vmatpush1.bf16.msra.mxu1 %v6026_v19  ;;  %v292_v18 = vld [vmem:[#allocation5 + $0x648] sm:$0xff] }
 0x121   :  { %2671 = vmatprep.mubr.bf16.mxu1 %v7358_v31  ;;  %2641 = vmatprep.subr.bf16.mxu1 %v6035_v22  ;;  %v296_v19 = vld [vmem:[#allocation5 + $0x668] sm:$0xff]  ;;  %v6090_v22 = vcombine.low %v284_v8, %v288_v9 }
 0x122   :  { %v6098_v30 = vcombine.low %v292_v18, %v296_v19  ;;  %v308_v31 = vld [vmem:[#allocation5 + $0x6c8] sm:$0xff] }
 0x123   :  { %2799 = vmatpush1.bf16.msra.mxu0 %v6148_v25  ;;  %v413_v25 = vld [vmem:[#allocation5 + $0xa10] sm:$0xff]  ;;  %v348_v9 = vld [vmem:[#allocation5 + $0x808] sm:$0xff] }
 0x124   :  { %2811 = vmatprep.subr.bf16.mxu0 %v6157_v27  ;;  %2642 = vmatpush1.bf16.msra.mxu1 %v6034_v28  ;;  %v6099_v27 = vcombine.high %v292_v18, %v296_v19  ;;  %v6212_v28 = vcombine.low %v405_v15, %v409_v16  ;;  %v6221_v29 = vcombine.high %v413_v25, %v417_v26  ;;  %v469_v16 = vld [vmem:[#allocation5 + $0xbd0] sm:$0xff]  ;;  %v356_v19 = vld [vmem:[#allocation5 + $0x848] sm:$0xff] }
 0x125   :  { %2643 = vmatprep.subr.bf16.mxu1 %v6043_v32  ;;  %v312_v32 = vld [vmem:[#allocation5 + $0x6e8] sm:$0xff] }
 0x126   :  { %2801 = vmatmul.mubr.bf16.vlgmr.msra.gmra.mrb[4].mxu0 %v7620_v11  ;;  %v6181_v11 = vcombine.high %v373_v47, %v377_v48  ;;  %v6114_v47 = vcombine.low %v308_v31, %v312_v32  ;;  %v324_v48 = vld [vmem:[#allocation5 + $0x748] sm:$0xff] }
 0x127   :  { %2812 = vmatpush1.bf16.msra.mxu0 %v6156_v35  ;;  %2843 = vmatprep.mubr.bf16.mxu0 %v7627_v44  ;;  %v6107_v35 = vcombine.high %v300_v23, %v304_v24 }
 0x128   :  { %2813 = vmatprep.subr.bf16.mxu0 %v6165_v36  ;;  %2644 = vmatpush1.bf16.msra.mxu1 %v6042_v37  ;;  %v6220_v36 = vcombine.low %v413_v25, %v417_v26  ;;  %v6229_v37 = vcombine.high %v421_v33, %v425_v34  ;;  %v364_v25 = vld [vmem:[#allocation5 + $0x888] sm:$0xff] }
 0x129   :  { %2645 = vmatprep.subr.bf16.mxu1 %v6051_v39  ;;  %v320_v39 = vld [vmem:[#allocation5 + $0x728] sm:$0xff] }
 0x12a   :  { %v6122_v52 = vcombine.low %v316_v40, %v320_v39  ;;  %v368_v26 = vld [vmem:[#allocation5 + $0x8a8] sm:$0xff] }
 0x12b   :  { %2814 = vmatpush1.bf16.msra.mxu0 %v6164_v43  ;;  %v6115_v43 = vcombine.high %v308_v31, %v312_v32  ;;  %v6171_v31 = vcombine.high %v364_v25, %v368_v26  ;;  %v372_v32 = vld [vmem:[#allocation5 + $0x8c8] sm:$0xff] }
 0x12c   :  { %2815 = vmatprep.subr.bf16.mxu0 %v6173_v45  ;;  %2646 = vmatpush1.bf16.msra.mxu1 %v6050_v46  ;;  %v6228_v45 = vcombine.low %v421_v33, %v425_v34  ;;  %v6237_v46 = vcombine.high %v429_v41, %v433_v42  ;;  %v376_v33 = vld [vmem:[#allocation5 + $0x8e8] sm:$0xff] }
 0x12d   :  { %2647 = vmatprep.subr.bf16.mxu1 %v6059_v3  ;;  %v328_v3 = vld [vmem:[#allocation5 + $0x768] sm:$0xff] }
 0x12e   :  { %v6130_v60 = vcombine.low %v324_v48, %v328_v3  ;;  %v6781_v34 = vld [vmem:[#allocation8] ss:$24 sps:$4 sm:$0xff]  }
 0x12f   :  { %2816 = vmatpush1.bf16.msra.mxu0 %v6172_v51  ;;  %v6123_v51 = vcombine.high %v316_v40, %v320_v39  ;;  %v380_v40 = vld [vmem:[#allocation5 + $0x908] sm:$0xff] }
 0x130   :  { %2817 = vmatprep.subr.bf16.mxu0 %v6181_v11  ;;  %2648 = vmatpush1.bf16.msra.mxu1 %v6058_v12  ;;  %v6236_v11 = vcombine.low %v429_v41, %v433_v42  ;;  %v6245_v12 = vcombine.high %v437_v49, %v441_v50  ;;  %v384_v39 = vld [vmem:[#allocation5 + $0x928] sm:$0xff]  ;;  %v6178_v42 = vcombine.low %v372_v32, %v376_v33 }
 0x131   :  { %2649 = vmatprep.subr.bf16.mxu1 %v6067_v54  ;;  %v336_v54 = vld [vmem:[#allocation5 + $0x7a8] sm:$0xff] }
 0x132   :  { %v6138_v5 = vcombine.low %v332_v53, %v336_v54  ;;  %v6789_v41 = vld [vmem:[#allocation8 + $0x64] ss:$24 sps:$4 sm:$0xff]  }
 0x133   :  { %2818 = vmatpush1.bf16.msra.mxu0 %v6180_v57  ;;  %v6131_v57 = vcombine.high %v324_v48, %v328_v3  ;;  %v6792_v48 = vld [vmem:[#allocation8 + $0x94] ss:$24 sps:$4 sm:$0xff]   ;;  %v6186_v3 = vcombine.low %v380_v40, %v384_v39 }
 0x134   :  { %2819 = vmatprep.subr.bf16.mxu0 %v6189_v58  ;;  %2650 = vmatpush1.bf16.msra.mxu1 %v6066_v59  ;;  %v6244_v58 = vcombine.low %v437_v49, %v441_v50  ;;  %v6253_v59 = vcombine.high %v445_v55, %v449_v56  ;;  %v396_v50 = vld [vmem:[#allocation5 + $0x988] sm:$0xff] }
 0x135   :  { %2651 = vmatprep.subr.bf16.mxu1 %v6075_v62  ;;  %v344_v62 = vld [vmem:[#allocation5 + $0x7e8] sm:$0xff] }
 0x136   :  { %v6147_v8 = vcombine.high %v340_v61, %v344_v62  ;;  %v6146_v15 = vcombine.low %v340_v61, %v344_v62  ;;  %v416_v61 = vld [vmem:[#allocation5 + $0xa28] sm:$0xff]  ;;  %v6796_v62 = vld [vmem:[#allocation8 + $0xf0] ss:$24 sps:$4 sm:$0xff]  }
 0x137   :  { %2820 = vmatpush1.bf16.msra.mxu0 %v6188_v1  ;;  %v6139_v1 = vcombine.high %v332_v53, %v336_v54  ;;  %v404_v54 = vld [vmem:[#allocation5 + $0x9c8] sm:$0xff] }
 0x138   :  { %2821 = vmatprep.subr.bf16.mxu0 %v6197_v2  ;;  %2652 = vmatpush1.bf16.msra.mxu1 %v6074_v4  ;;  %v6252_v2 = vcombine.low %v445_v55, %v449_v56  ;;  %v6261_v4 = vcombine.high %v453_v63, %v457_v0  ;;  %v408_v55 = vld [vmem:[#allocation5 + $0x9e8] sm:$0xff] }
 0x139   :  { %2653 = vmatprep.subr.bf16.mxu1 %v6083_v7  ;;  %v465_v7 = vld [vmem:[#allocation5 + $0xbb0] sm:$0xff]  ;;  %v6793_v56 = vld [vmem:[#allocation8 + $0xc0] ss:$24 sps:$4 sm:$0xff]  }
 0x13b   :  { %2822 = vmatpush1.bf16.msra.mxu0 %v6196_v10  ;;  %v352_v10 = vld [vmem:[#allocation5 + $0x828] sm:$0xff] }
 0x13c   :  { %2823 = vmatprep.subr.bf16.mxu0 %v6205_v13  ;;  %2654 = vmatpush1.bf16.msra.mxu1 %v6082_v14  ;;  %v6260_v13 = vcombine.low %v453_v63, %v457_v0  ;;  %v6269_v14 = vcombine.high %v461_v6, %v465_v7  ;;  %v6155_v18 = vcombine.high %v348_v9, %v352_v10  ;;  %v6801_v63 = vld [vmem:[#allocation8 + $0x124] ss:$24 sps:$4 sm:$0xff]  }
 0x13d   :  { %2655 = vmatprep.subr.bf16.mxu1 %v6091_v17  ;;  %v473_v17 = vld [vmem:[#allocation5 + $0xbf0] sm:$0xff]  ;;  %v6154_v23 = vcombine.low %v348_v9, %v352_v10  ;;  %v6210_v0 = vcombine.low %v404_v54, %v408_v55 }
 0x13e   :  { %v6804_v9 = vld [vmem:[#allocation8 + $0x154] ss:$24 sps:$4 sm:$0xff]  }
 0x13f   :  { %2824 = vmatpush1.bf16.msra.mxu0 %v6204_v20  ;;  %v360_v20 = vld [vmem:[#allocation5 + $0x868] sm:$0xff] }
 0x140   :  { %2825 = vmatprep.subr.bf16.mxu0 %v6213_v21  ;;  %2656 = vmatpush1.bf16.msra.mxu1 %v6090_v22  ;;  %v6268_v21 = vcombine.low %v461_v6, %v465_v7  ;;  %v6277_v22 = vcombine.high %v469_v16, %v473_v17  ;;  %v6163_v24 = vcombine.high %v356_v19, %v360_v20  ;;  %v424_v6 = vld [vmem:[#allocation5 + $0xa68] sm:$0xff] }
 0x141   :  { %2657 = vmatprep.subr.bf16.mxu1 %v6099_v27  ;;  %v6276_v27 = vcombine.low %v469_v16, %v473_v17  ;;  %v6799_v7 = vld [vmem:[#allocation8 + $0x120] ss:$24 sps:$4 sm:$0xff]   ;;  %v6802_v17 = vld [vmem:[#allocation8 + $0x150] ss:$24 sps:$4 sm:$0xff]  }
 0x142   :  { %v432_v16 = vld [vmem:[#allocation5 + $0xaa8] sm:$0xff] }
 0x143   :  { %2826 = vmatpush1.bf16.msra.mxu0 %v6212_v28  ;;  %v7630_v28 = vld [vmem:[#allocation2 + $0x8] ss:$24 sps:$4 sm:$0xff]  }
 0x144   :  { %2827 = vmatprep.subr.bf16.mxu0 %v6221_v29  ;;  %2658 = vmatpush1.bf16.msra.mxu1 %v6098_v30  ;;  %v6783_v29 = vld [vmem:[#allocation8 + $0x4] ss:$24 sps:$4 sm:$0xff]   ;;  %v6162_v30 = vcombine.low %v356_v19, %v360_v20 }
 0x145   :  { %2659 = vmatprep.subr.bf16.mxu1 %v6107_v35  ;;  %v6786_v35 = vld [vmem:[#allocation8 + $0x34] ss:$24 sps:$4 sm:$0xff]  }
 0x147   :  { %2828 = vmatpush1.bf16.msra.mxu0 %v6220_v36  ;;  %v6170_v36 = vcombine.low %v364_v25, %v368_v26 }
 0x148   :  { %2829 = vmatprep.subr.bf16.mxu0 %v6229_v37  ;;  %2660 = vmatpush1.bf16.msra.mxu1 %v6106_v38  ;;  %v6179_v37 = vcombine.high %v372_v32, %v376_v33  ;;  %v7634_v38 = vld [vmem:[#allocation2 + $0x10] ss:$24 sps:$4 sm:$0xff]  }
 0x149   :  { %2661 = vmatprep.subr.bf16.mxu1 %v6115_v43  ;;  %v6187_v43 = vcombine.high %v380_v40, %v384_v39 }
 0x14b   :  { %2830 = vmatpush1.bf16.msra.mxu0 %v6228_v45  ;;  %v388_v45 = vld [vmem:[#allocation5 + $0x948] sm:$0xff] }
 0x14c   :  { %2831 = vmatprep.subr.bf16.mxu0 %v6237_v46  ;;  %2662 = vmatpush1.bf16.msra.mxu1 %v6114_v47  ;;  %v392_v46 = vld [vmem:[#allocation5 + $0x968] sm:$0xff] }
 0x14d   :  { %2663 = vmatprep.subr.bf16.mxu1 %v6123_v51  ;;  %v6787_v47 = vld [vmem:[#allocation8 + $0x60] ss:$24 sps:$4 sm:$0xff]   ;;  %v6195_v49 = vcombine.high %v388_v45, %v392_v46 }
 0x14e   :  { %v400_v51 = vld [vmem:[#allocation5 + $0x9a8] sm:$0xff] }
 0x14f   :  { %2832 = vmatpush1.bf16.msra.mxu0 %v6236_v11  ;;  %v6790_v11 = vld [vmem:[#allocation8 + $0x90] ss:$24 sps:$4 sm:$0xff]   ;;  %v6203_v53 = vcombine.high %v396_v50, %v400_v51 }
 0x150   :  { %2833 = vmatprep.subr.bf16.mxu0 %v6245_v12  ;;  %2664 = vmatpush1.bf16.msra.mxu1 %v6122_v52  ;;  %v6795_v12 = vld [vmem:[#allocation8 + $0xc4] ss:$24 sps:$4 sm:$0xff]   ;;  %v6194_v52 = vcombine.low %v388_v45, %v392_v46 }
 0x151   :  { %2665 = vmatprep.subr.bf16.mxu1 %v6131_v57  ;;  %v6798_v57 = vld [vmem:[#allocation8 + $0xf4] ss:$24 sps:$4 sm:$0xff]  }
 0x153   :  { %2834 = vmatpush1.bf16.msra.mxu0 %v6244_v58  ;;  %v6202_v58 = vcombine.low %v396_v50, %v400_v51 }
 0x154   :  { %2835 = vmatprep.subr.bf16.mxu0 %v6253_v59  ;;  %2666 = vmatpush1.bf16.msra.mxu1 %v6130_v60  ;;  %v6211_v59 = vcombine.high %v404_v54, %v408_v55  ;;  %v412_v60 = vld [vmem:[#allocation5 + $0xa08] sm:$0xff] }
 0x155   :  { %2667 = vmatprep.subr.bf16.mxu1 %v6139_v1 }
 0x157   :  { %2836 = vmatpush1.bf16.msra.mxu0 %v6252_v2  ;;  %v6219_v2 = vcombine.high %v412_v60, %v416_v61 }
 0x158   :  { %2837 = vmatprep.subr.bf16.mxu0 %v6261_v4  ;;  %2668 = vmatpush1.bf16.msra.mxu1 %v6138_v5  ;;  %v420_v5 = vld [vmem:[#allocation5 + $0xa48] sm:$0xff] }
 0x159   :  { %2669 = vmatprep.subr.bf16.mxu1 %v6147_v8  ;;  %v6226_v19 = vcombine.low %v420_v5, %v424_v6 }
 0x15b   :  { %2838 = vmatpush1.bf16.msra.mxu0 %v6260_v13  ;;  %v6218_v13 = vcombine.low %v412_v60, %v416_v61 }
 0x15c   :  { %2839 = vmatprep.subr.bf16.mxu0 %v6269_v14  ;;  %2670 = vmatpush1.bf16.msra.mxu1 %v6146_v15  ;;  %v6227_v14 = vcombine.high %v420_v5, %v424_v6  ;;  %v428_v15 = vld [vmem:[#allocation5 + $0xa88] sm:$0xff] }
 0x15d   :  { %2682 = vmatprep.subr.bf16.mxu1 %v6155_v18  ;;  %v6807_v18 = vld [vmem:[#allocation8 + $0x184] ss:$24 sps:$4 sm:$0xff]   ;;  %v6235_v20 = vcombine.high %v428_v15, %v432_v16  ;;  %v6234_v25 = vcombine.low %v428_v15, %v432_v16  ;;  %v126_v16 = vld [vmem:[#allocation5 + $0x118] sm:$0xff] }
 0x15e   :  { %v7362_v5 = vld [vmem:[#allocation2 + $0x4] ss:$24 sps:$4 sm:$0xff]  }
 0x15f   :  { %2840 = vmatpush1.bf16.msra.mxu0 %v6268_v21  ;;  %2672 = vmatmul.mubr.bf16.vlgmr.msra.gmra.mrb[4].mxu1 %v7630_v28  ;;  %v436_v21 = vld [vmem:[#allocation5 + $0xac8] sm:$0xff] }
 0x160   :  { %2841 = vmatprep.subr.bf16.mxu0 %v6277_v22  ;;  %2683 = vmatpush1.bf16.msra.mxu1 %v6154_v23  ;;  %v440_v22 = vld [vmem:[#allocation5 + $0xae8] sm:$0xff] }
 0x161   :  { %2714 = vmatprep.mubr.bf16.mxu1 %v7627_v44  ;;  %2684 = vmatprep.subr.bf16.mxu1 %v6163_v24  ;;  %v6784_v44 = vld [vmem:[#allocation8 + $0x30] ss:$24 sps:$4 sm:$0xff]   ;;  %v6805_v23 = vld [vmem:[#allocation8 + $0x180] ss:$24 sps:$4 sm:$0xff]   ;;  %v6810_v24 = vld [vmem:[#allocation8 + $0x1b4] ss:$24 sps:$4 sm:$0xff]   ;;  %v6243_v26 = vcombine.high %v436_v21, %v440_v22  ;;  %v6242_v32 = vcombine.low %v436_v21, %v440_v22 }
 0x162   :  { %v138_v21 = vld [vmem:[#allocation5 + $0x178] sm:$0xff] }
 0x163   :  { %2842 = vmatpush1.bf16.msra.mxu0 %v6276_v27  ;;  %v444_v27 = vld [vmem:[#allocation5 + $0xb08] sm:$0xff] }
 0x164   :  { %5343 = vmatprep.subr.bf16.mxu0 %v6783_v29  ;;  %2685 = vmatpush1.bf16.msra.mxu1 %v6162_v30  ;;  %v448_v29 = vld [vmem:[#allocation5 + $0xb28] sm:$0xff]  ;;  %v6808_v30 = vld [vmem:[#allocation8 + $0x1b0] ss:$24 sps:$4 sm:$0xff]  }
 0x165   :  { %2686 = vmatprep.subr.bf16.mxu1 %v6171_v31  ;;  %v6813_v31 = vld [vmem:[#allocation8 + $0x1e4] ss:$24 sps:$4 sm:$0xff]   ;;  %v6251_v33 = vcombine.high %v444_v27, %v448_v29  ;;  %v6250_v40 = vcombine.low %v444_v27, %v448_v29  ;;  %v142_v27 = vld [vmem:[#allocation5 + $0x198] sm:$0xff] }
 0x166   :  { %2844 = vmatmul.mubr.bf16.vlgmr.msra.gmra.mrb[4].mxu0 %v7634_v38  ;;  %v146_v29 = vld [vmem:[#allocation5 + $0x1b8] sm:$0xff] }
 0x167   :  { %5344 = vmatpush1.bf16.msra.mxu0 %v6781_v34  ;;  %v452_v34 = vld [vmem:[#allocation5 + $0xb48] sm:$0xff] }
 0x168   :  { %5345 = vmatprep.subr.bf16.mxu0 %v6786_v35  ;;  %2687 = vmatpush1.bf16.msra.mxu1 %v6170_v36  ;;  %v456_v35 = vld [vmem:[#allocation5 + $0xb68] sm:$0xff] }
 0x169   :  { %2688 = vmatprep.subr.bf16.mxu1 %v6179_v37  ;;  %v6811_v36 = vld [vmem:[#allocation8 + $0x1e0] ss:$24 sps:$4 sm:$0xff]   ;;  %v6816_v37 = vld [vmem:[#allocation8 + $0x214] ss:$24 sps:$4 sm:$0xff]   ;;  %v6259_v39 = vcombine.high %v452_v34, %v456_v35  ;;  %v6258_v45 = vcombine.low %v452_v34, %v456_v35 }
 0x16a   :  { %v150_v35 = vld [vmem:[#allocation5 + $0x1d8] sm:$0xff] }
 0x16b   :  { %5346 = vmatpush1.bf16.msra.mxu0 %v6784_v44  ;;  %v460_v44 = vld [vmem:[#allocation5 + $0xb88] sm:$0xff] }
 0x16c   :  { %5347 = vmatprep.subr.bf16.mxu0 %v6789_v41  ;;  %2689 = vmatpush1.bf16.msra.mxu1 %v6178_v42  ;;  %v464_v41 = vld [vmem:[#allocation5 + $0xba8] sm:$0xff]  ;;  %v6814_v42 = vld [vmem:[#allocation8 + $0x210] ss:$24 sps:$4 sm:$0xff]  }
 0x16d   :  { %2690 = vmatprep.subr.bf16.mxu1 %v6187_v43  ;;  %v6819_v43 = vld [vmem:[#allocation8 + $0x244] ss:$24 sps:$4 sm:$0xff]   ;;  %v6267_v46 = vcombine.high %v460_v44, %v464_v41  ;;  %v6266_v50 = vcombine.low %v460_v44, %v464_v41  ;;  %v5950_v41 = vcombine.low %v142_v27, %v146_v29 }
 0x16f   :  { %5348 = vmatpush1.bf16.msra.mxu0 %v6787_v47  ;;  %v468_v47 = vld [vmem:[#allocation5 + $0xbc8] sm:$0xff] }
 0x170   :  { %5349 = vmatprep.subr.bf16.mxu0 %v6792_v48  ;;  %2691 = vmatpush1.bf16.msra.mxu1 %v6186_v3  ;;  %v472_v48 = vld [vmem:[#allocation5 + $0xbe8] sm:$0xff] }
 0x171   :  { %2692 = vmatprep.subr.bf16.mxu1 %v6195_v49  ;;  %v6817_v3 = vld [vmem:[#allocation8 + $0x240] ss:$24 sps:$4 sm:$0xff]   ;;  %v6822_v49 = vld [vmem:[#allocation8 + $0x274] ss:$24 sps:$4 sm:$0xff]   ;;  %v6275_v51 = vcombine.high %v468_v47, %v472_v48  ;;  %v6274_v54 = vcombine.low %v468_v47, %v472_v48 }
 0x173   :  { %5350 = vmatpush1.bf16.msra.mxu0 %v6790_v11  ;;  %v94_v11 = vld [vmem:[#allocation5 + $0x18] sm:$0xff] }
 0x174   :  { %5351 = vmatprep.subr.bf16.mxu0 %v6795_v12  ;;  %2693 = vmatpush1.bf16.msra.mxu1 %v6194_v52  ;;  %v98_v12 = vld [vmem:[#allocation5 + $0x38] sm:$0xff] }
 0x175   :  { %2694 = vmatprep.subr.bf16.mxu1 %v6203_v53  ;;  %v6820_v52 = vld [vmem:[#allocation8 + $0x270] ss:$24 sps:$4 sm:$0xff]   ;;  %v6825_v53 = vld [vmem:[#allocation8 + $0x2a4] ss:$24 sps:$4 sm:$0xff]   ;;  %v5903_v55 = vcombine.high %v94_v11, %v98_v12  ;;  %v5902_v60 = vcombine.low %v94_v11, %v98_v12 }
 0x177   :  { %5352 = vmatpush1.bf16.msra.mxu0 %v6793_v56  ;;  %v102_v56 = vld [vmem:[#allocation5 + $0x58] sm:$0xff] }
 0x178   :  { %5353 = vmatprep.subr.bf16.mxu0 %v6798_v57  ;;  %2695 = vmatpush1.bf16.msra.mxu1 %v6202_v58  ;;  %v106_v57 = vld [vmem:[#allocation5 + $0x78] sm:$0xff]  ;;  %v6823_v58 = vld [vmem:[#allocation8 + $0x2a0] ss:$24 sps:$4 sm:$0xff]  }
 0x179   :  { %v7637_v1 = vpop.f32.mrb[0].mxu0  ;;  %2696 = vmatprep.subr.bf16.mxu1 %v6211_v59  ;;  %v6828_v59 = vld [vmem:[#allocation8 + $0x2d4] ss:$24 sps:$4 sm:$0xff]   ;;  %v5911_v61 = vcombine.high %v102_v56, %v106_v57 }
 0x17a   :  { %v7639_v4 = vpop.f32.mrb[1].mxu0 }
 0x17b   :  { %5354 = vmatpush1.bf16.msra.mxu0 %v6796_v62  ;;  %v7641_v8 = vpop.f32.mrb[2].mxu0  ;;  %v110_v62 = vld [vmem:[#allocation5 + $0x98] sm:$0xff] }
 0x17c   :  { %5355 = vmatprep.subr.bf16.mxu0 %v6801_v63  ;;  %v7643_v10 = vpop.f32.mrb[3].mxu0  ;;  %2697 = vmatpush1.bf16.msra.mxu1 %v6210_v0  ;;  %v114_v63 = vld [vmem:[#allocation5 + $0xb8] sm:$0xff] }
 0x17d   :  { %2698 = vmatprep.subr.bf16.mxu1 %v6219_v2  ;;  %v6826_v0 = vld [vmem:[#allocation8 + $0x2d0] ss:$24 sps:$4 sm:$0xff]   ;;  %v5910_v2 = vcombine.low %v102_v56, %v106_v57  ;;  %v5919_v6 = vcombine.high %v110_v62, %v114_v63  ;;  %v6831_v57 = vld [vmem:[#allocation8 + $0x304] ss:$24 sps:$4 sm:$0xff]  }
 0x17e   :  { %v170_v56 = vld [vmem:[#allocation5 + $0x278] sm:$0xff] }
 0x17f   :  { %5356 = vmatpush1.bf16.msra.mxu0 %v6799_v7  ;;  %v118_v7 = vld [vmem:[#allocation5 + $0xd8] sm:$0xff] }
 0x180   :  { %5357 = vmatprep.subr.bf16.mxu0 %v6804_v9  ;;  %2699 = vmatpush1.bf16.msra.mxu1 %v6218_v13  ;;  %v122_v9 = vld [vmem:[#allocation5 + $0xf8] sm:$0xff]  ;;  %v477_v13 = vlaneseq }
 0x181   :  { %2700 = vmatprep.subr.bf16.mxu1 %v6227_v14  ;;  %v5918_v14 = vcombine.low %v110_v62, %v114_v63  ;;  %v5927_v15 = vcombine.high %v118_v7, %v122_v9  ;;  %v6834_v62 = vld [vmem:[#allocation8 + $0x334] ss:$24 sps:$4 sm:$0xff]  }
 0x183   :  { %5358 = vmatpush1.bf16.msra.mxu0 %v6802_v17  ;;  %v130_v17 = vld [vmem:[#allocation5 + $0x138] sm:$0xff] }
 0x184   :  { %5359 = vmatprep.subr.bf16.mxu0 %v6807_v18  ;;  %2701 = vmatpush1.bf16.msra.mxu1 %v6226_v19  ;;  %v7646_v18 = vshrl.u32 %v477_v13, 7  ;;  %v5935_v19 = vcombine.high %v126_v16, %v130_v17  ;;  %v6835_v13 = vld [vmem:[#allocation8 + $0x360] ss:$24 sps:$4 sm:$0xff]  }
 0x185   :  { %2702 = vmatprep.subr.bf16.mxu1 %v6235_v20  ;;  %v134_v20 = vld [vmem:[#allocation5 + $0x158] sm:$0xff] }
 0x186   :  { %v479_v22 = vsub.s32 0, %v7646_v18 }
 0x187   :  { %5360 = vmatpush1.bf16.msra.mxu0 %v6805_v23  ;;  %v5934_v23 = vcombine.low %v126_v16, %v130_v17  ;;  %v194_v16 = vld [vmem:[#allocation5 + $0x338] sm:$0xff] }
 0x188   :  { %5361 = vmatprep.subr.bf16.mxu0 %v6810_v24  ;;  %2703 = vmatpush1.bf16.msra.mxu1 %v6234_v25  ;;  %v7649_v24 = vld [vmem:[#allocation7] sm:$0xff]  ;;  %v483_v25 = vsub.s32 1, %v7646_v18  ;;  %v6840_v17 = vld [vmem:[#allocation8 + $0x394] ss:$24 sps:$4 sm:$0xff]  }
 0x189   :  { %2704 = vmatprep.subr.bf16.mxu1 %v6243_v26  ;;  %v5943_v26 = vcombine.high %v134_v20, %v138_v21 }
 0x18b   :  { %5362 = vmatpush1.bf16.msra.mxu0 %v6808_v30  ;;  %v480_v30 = vrot.slane %v7649_v24, %v479_v22 }
 0x18c   :  { %5363 = vmatprep.subr.bf16.mxu0 %v6813_v31  ;;  %2705 = vmatpush1.bf16.msra.mxu1 %v6242_v32  ;;  %v484_v31 = vrot.slane %v7649_v24, %v483_v25  ;;  %v5942_v32 = vcombine.low %v134_v20, %v138_v21  ;;  %v198_v21 = vld [vmem:[#allocation5 + $0x358] sm:$0xff] }
 0x18d   :  { %2706 = vmatprep.subr.bf16.mxu1 %v6251_v33  ;;  %v5951_v33 = vcombine.high %v142_v27, %v146_v29  ;;  %v6841_v29 = vld [vmem:[#allocation8 + $0x3c0] ss:$24 sps:$4 sm:$0xff]  }
 0x18f   :  { %5364 = vmatpush1.bf16.msra.mxu0 %v6811_v36  ;;  %v154_v36 = vld [vmem:[#allocation5 + $0x1f8] sm:$0xff] }
 0x190   :  { %5365 = vmatprep.subr.bf16.mxu0 %v6816_v37  ;;  %2707 = vmatpush1.bf16.msra.mxu1 %v6250_v40  ;;  %v5958_v11 = vcombine.low %v150_v35, %v154_v36 }
 0x191   :  { %2708 = vmatprep.subr.bf16.mxu1 %v6259_v39 }
 0x193   :  { %5366 = vmatpush1.bf16.msra.mxu0 %v6814_v42 }
 0x194   :  { %5367 = vmatprep.subr.bf16.mxu0 %v6819_v43  ;;  %2709 = vmatpush1.bf16.msra.mxu1 %v6258_v45 }
 0x195   :  { %2710 = vmatprep.subr.bf16.mxu1 %v6267_v46  ;;  %v5959_v46 = vcombine.high %v150_v35, %v154_v36  ;;  %v6844_v35 = vld [vmem:[#allocation8 + $0x3f0] ss:$24 sps:$4 sm:$0xff]  }
 0x197   :  { %5368 = vmatpush1.bf16.msra.mxu0 %v6817_v3  ;;  %v158_v3 = vld [vmem:[#allocation5 + $0x218] sm:$0xff] }
 0x198   :  { %5369 = vmatprep.subr.bf16.mxu0 %v6822_v49  ;;  %2711 = vmatpush1.bf16.msra.mxu1 %v6266_v50  ;;  %v162_v49 = vld [vmem:[#allocation5 + $0x238] sm:$0xff] }
 0x199   :  { %2712 = vmatprep.subr.bf16.mxu1 %v6275_v51 }
 0x19b   :  { %5370 = vmatpush1.bf16.msra.mxu0 %v6820_v52 }
 0x19c   :  { %5371 = vmatprep.subr.bf16.mxu0 %v6825_v53  ;;  %2713 = vmatpush1.bf16.msra.mxu1 %v6274_v54  ;;  %v5967_v53 = vcombine.high %v158_v3, %v162_v49 }
 0x19d   :  { %2854 = vmatprep.subr.bf16.mxu1 %v5903_v55  ;;  %v166_v55 = vld [vmem:[#allocation5 + $0x258] sm:$0xff] }
 0x19e   :  { %v5974_v63 = vcombine.low %v166_v55, %v170_v56 }
 0x19f   :  { %5372 = vmatpush1.bf16.msra.mxu0 %v6823_v58  ;;  %2715 = vmatmul.mubr.bf16.vlgmr.msra.gmra.mrb[4].mxu1 %v7634_v38  ;;  %v5926_v38 = vcombine.low %v118_v7, %v122_v9  ;;  %v6837_v7 = vld [vmem:[#allocation8 + $0x364] ss:$24 sps:$4 sm:$0xff]  }
 0x1a0   :  { %5373 = vmatprep.subr.bf16.mxu0 %v6828_v59  ;;  %2855 = vmatpush1.bf16.msra.mxu1 %v5902_v60  ;;  %v5966_v59 = vcombine.low %v158_v3, %v162_v49  ;;  %v174_v60 = vld [vmem:[#allocation5 + $0x298] sm:$0xff] }
 0x1a1   :  { %2886 = vmatprep.mubr.bf16.mxu1 %v7362_v5  ;;  %2856 = vmatprep.subr.bf16.mxu1 %v5911_v61  ;;  %v178_v61 = vld [vmem:[#allocation5 + $0x2b8] sm:$0xff] }
 0x1a2   :  { %v182_v5 = vld [vmem:[#allocation5 + $0x2d8] sm:$0xff]  ;;  %v5982_v9 = vcombine.low %v174_v60, %v178_v61 }
 0x1a3   :  { %5374 = vmatpush1.bf16.msra.mxu0 %v6826_v0  ;;  %v6832_v0 = vld [vmem:[#allocation8 + $0x330] ss:$24 sps:$4 sm:$0xff]  }
 0x1a4   :  { %2857 = vmatpush1.bf16.msra.mxu1 %v5910_v2  ;;  %5386 = vmatprep.subr.bf16.mxu0 %v6831_v57  ;;  %v5983_v2 = vcombine.high %v174_v60, %v178_v61  ;;  %v230_v49 = vld [vmem:[#allocation5 + $0x458] sm:$0xff]  ;;  %v6867_v61 = vld [vmem:[#allocation8 + $0x4e4] ss:$24 sps:$4 sm:$0xff]  }
 0x1a5   :  { %2858 = vmatprep.subr.bf16.mxu1 %v5919_v6  ;;  %v186_v6 = vld [vmem:[#allocation5 + $0x2f8] sm:$0xff] }
 0x1a6   :  { %v7364_v57 = vld [vmem:[#allocation2 + $0xc] ss:$24 sps:$4 sm:$0xff]  }
 0x1a7   :  { %v250_v60 = vld [vmem:[#allocation5 + $0x4f8] sm:$0xff] }
 0x1a8   :  { %2859 = vmatpush1.bf16.msra.mxu1 %v5918_v14  ;;  %v5991_v14 = vcombine.high %v182_v5, %v186_v6 }
 0x1a9   :  { %2860 = vmatprep.subr.bf16.mxu1 %v5927_v15  ;;  %v190_v15 = vld [vmem:[#allocation5 + $0x318] sm:$0xff] }
 0x1aa   :  { %v5999_v20 = vcombine.high %v190_v15, %v194_v16  ;;  %v5998_v27 = vcombine.low %v190_v15, %v194_v16  ;;  %v266_v15 = vld [vmem:[#allocation5 + $0x578] sm:$0xff]  ;;  %v6879_v16 = vld [vmem:[#allocation8 + $0x544] ss:$24 sps:$4 sm:$0xff]  }
 0x1ac   :  { %2861 = vmatpush1.bf16.msra.mxu1 %v5926_v38  ;;  %v5990_v38 = vcombine.low %v182_v5, %v186_v6  ;;  %v258_v5 = vld [vmem:[#allocation5 + $0x538] sm:$0xff] }
 0x1ad   :  { %2862 = vmatprep.subr.bf16.mxu1 %v5935_v19  ;;  %v6838_v19 = vld [vmem:[#allocation8 + $0x390] ss:$24 sps:$4 sm:$0xff]   ;;  %v6873_v6 = vld [vmem:[#allocation8 + $0x514] ss:$24 sps:$4 sm:$0xff]  }
 0x1b0   :  { %2863 = vmatpush1.bf16.msra.mxu1 %v5934_v23  ;;  %v202_v23 = vld [vmem:[#allocation5 + $0x378] sm:$0xff] }
 0x1b1   :  { %2864 = vmatprep.subr.bf16.mxu1 %v5943_v26  ;;  %v6843_v26 = vld [vmem:[#allocation8 + $0x3c4] ss:$24 sps:$4 sm:$0xff]  }
 0x1b2   :  { %v2544_v34 = vpop.f32.mrb[0].mxu1 }
 0x1b3   :  { %v6664_v37 = vadd.f32 %v2544_v34, %v480_v30  ;;  %v2546_v40 = vpop.f32.mrb[1].mxu1  ;;  %v6006_v34 = vcombine.low %v198_v21, %v202_v23 }
 0x1b4   :  { %v6666_v39 = vadd.f32 %v2546_v40, %v484_v31  ;;  %v2548_v44 = vpop.f32.mrb[2].mxu1  ;;  %2865 = vmatpush1.bf16.msra.mxu1 %v5942_v32  ;;  %v210_v32 = vld [vmem:[#allocation5 + $0x3b8] sm:$0xff] }
 0x1b5   :  { %v6668_v42 = vadd.f32 %v2548_v44, %v480_v30  ;;  %v6665_v43 = vadd.f32 %v6664_v37, %v7637_v1  ;;  %v2550_v45 = vpop.f32.mrb[3].mxu1  ;;  %2866 = vmatprep.subr.bf16.mxu1 %v5951_v33  ;;  %v6007_v30 = vcombine.high %v198_v21, %v202_v23  ;;  %v6846_v33 = vld [vmem:[#allocation8 + $0x3f4] ss:$24 sps:$4 sm:$0xff]  }
 0x1b6   :  { %v6670_v47 = vadd.f32 %v2550_v45, %v484_v31  ;;  %v6667_v48 = vadd.f32 %v6666_v39, %v7639_v4  ;;  %v206_v31 = vld [vmem:[#allocation5 + $0x398] sm:$0xff]  ;;  %v6849_v39 = vld [vmem:[#allocation8 + $0x424] ss:$24 sps:$4 sm:$0xff]  }
 0x1b7   :  { %v6669_v50 = vadd.f32 %v6668_v42, %v7641_v8  ;;  %v2983_v12 = vmax.f32 %v6665_v43, 0.0  ;;  %v6829_v8 = vld [vmem:[#allocation8 + $0x300] ss:$24 sps:$4 sm:$0xff]   ;;  %v6015_v36 = vcombine.high %v206_v31, %v210_v32  ;;  %v214_v37 = vld [vmem:[#allocation5 + $0x3d8] sm:$0xff]  ;;  %v6014_v44 = vcombine.low %v206_v31, %v210_v32  ;;  %v6891_v32 = vld [vmem:[#allocation8 + $0x5a4] ss:$24 sps:$4 sm:$0xff]  }
 0x1b8   :  { %v6671_v51 = vadd.f32 %v6670_v47, %v7643_v10  ;;  %2867 = vmatpush1.bf16.msra.mxu1 %v5950_v41  ;;  %v2984_v54 = vmax.f32 %v6667_v48, 0.0  ;;  %v5975_v10 = vcombine.high %v166_v55, %v170_v56  ;;  %v218_v40 = vld [vmem:[#allocation5 + $0x3f8] sm:$0xff]  ;;  %v6847_v41 = vld [vmem:[#allocation8 + $0x420] ss:$24 sps:$4 sm:$0xff]  }
 0x1b9   :  { %v2991_v52 = vmax.f32 %v6669_v50, 0.0  ;;  %2868 = vmatprep.subr.bf16.mxu1 %v5959_v46  ;;  %v6023_v42 = vcombine.high %v214_v37, %v218_v40  ;;  %v222_v43 = vld [vmem:[#allocation5 + $0x418] sm:$0xff]  ;;  %v6022_v47 = vcombine.low %v214_v37, %v218_v40  ;;  %v7363_v55 = vld [vmem:[#allocation2] ss:$24 sps:$4 sm:$0xff]  }
 0x1ba   :  { %v2992_v1 = vmax.f32 %v6671_v51, 0.0  ;;  %v226_v45 = vld [vmem:[#allocation5 + $0x438] sm:$0xff]  ;;  %v6855_v51 = vld [vmem:[#allocation8 + $0x484] ss:$24 sps:$4 sm:$0xff]  }
 0x1bb   :  { %v7662_v58 = vpack.c.bf16 %v2991_v52, %v2983_v12  ;;  %v6852_v46 = vld [vmem:[#allocation8 + $0x454] ss:$24 sps:$4 sm:$0xff]   ;;  %v6850_v48 = vld [vmem:[#allocation8 + $0x450] ss:$24 sps:$4 sm:$0xff]   ;;  %v6031_v3 = vcombine.high %v222_v43, %v226_v45  ;;  %v6853_v52 = vld [vmem:[#allocation8 + $0x480] ss:$24 sps:$4 sm:$0xff]  }
 0x1bc   :  { %v7664_v4 = vpack.c.bf16 %v2992_v1, %v2984_v54  ;;  %2869 = vmatpush1.bf16.msra.mxu1 %v5958_v11  ;;  %v234_v50 = vld [vmem:[#allocation5 + $0x478] sm:$0xff]  ;;  %v6030_v11 = vcombine.low %v222_v43, %v226_v45  ;;  %v6903_v45 = vld [vmem:[#allocation8 + $0x604] ss:$24 sps:$4 sm:$0xff]  }
 0x1bd   :  { %2870 = vmatprep.subr.bf16.mxu1 %v5967_v53  ;;  %v6039_v12 = vcombine.high %v230_v49, %v234_v50  ;;  %v238_v53 = vld [vmem:[#allocation5 + $0x498] sm:$0xff]  ;;  %v6038_v56 = vcombine.low %v230_v49, %v234_v50 }
 0x1be   :  { %5375 = vmatprep.mubr.bf16.mxu0 %v7664_v4  ;;  %v242_v54 = vld [vmem:[#allocation5 + $0x4b8] sm:$0xff] }
 0x1bf   :  { %5376 = vmatmul.mubr.bf16.vlgmr.msra.gmra.mrb[8].mxu0 %v7662_v58  ;;  %v6861_v1 = vld [vmem:[#allocation8 + $0x4b4] ss:$24 sps:$4 sm:$0xff]  }
 0x1c0   :  { %2871 = vmatpush1.bf16.msra.mxu1 %v5966_v59  ;;  %5387 = vmatpush1.bf16.msra.mxu0 %v6829_v8  ;;  %v6047_v59 = vcombine.high %v238_v53, %v242_v54  ;;  %v6859_v8 = vld [vmem:[#allocation8 + $0x4b0] ss:$24 sps:$4 sm:$0xff]   ;;  %v6885_v23 = vld [vmem:[#allocation8 + $0x574] ss:$24 sps:$4 sm:$0xff]  }
 0x1c1   :  { %2872 = vmatprep.subr.bf16.mxu1 %v5975_v10  ;;  %5388 = vmatprep.subr.bf16.mxu0 %v6834_v62  ;;  %v246_v10 = vld [vmem:[#allocation5 + $0x4d8] sm:$0xff]  ;;  %v6046_v62 = vcombine.low %v238_v53, %v242_v54 }
 0x1c2   :  { %v274_v21 = vld [vmem:[#allocation5 + $0x5b8] sm:$0xff] }
 0x1c3   :  { %v282_v31 = vld [vmem:[#allocation5 + $0x5f8] sm:$0xff] }
 0x1c4   :  { %2873 = vmatpush1.bf16.msra.mxu1 %v5974_v63  ;;  %5389 = vmatpush1.bf16.msra.mxu0 %v6832_v0  ;;  %v6055_v63 = vcombine.high %v246_v10, %v250_v60  ;;  %v6865_v0 = vld [vmem:[#allocation8 + $0x4e0] ss:$24 sps:$4 sm:$0xff]   ;;  %v290_v37 = vld [vmem:[#allocation5 + $0x638] sm:$0xff] }
 0x1c5   :  { %2874 = vmatprep.subr.bf16.mxu1 %v5983_v2  ;;  %5390 = vmatprep.subr.bf16.mxu0 %v6837_v7  ;;  %v254_v2 = vld [vmem:[#allocation5 + $0x518] sm:$0xff]  ;;  %v6054_v7 = vcombine.low %v246_v10, %v250_v60 }
 0x1c6   :  { %v6897_v40 = vld [vmem:[#allocation8 + $0x5d4] ss:$24 sps:$4 sm:$0xff]  }
 0x1c7   :  { %v298_v43 = vld [vmem:[#allocation5 + $0x678] sm:$0xff] }
 0x1c8   :  { %2875 = vmatpush1.bf16.msra.mxu1 %v5982_v9  ;;  %5391 = vmatpush1.bf16.msra.mxu0 %v6835_v13  ;;  %v6063_v9 = vcombine.high %v254_v2, %v258_v5  ;;  %v6871_v13 = vld [vmem:[#allocation8 + $0x510] ss:$24 sps:$4 sm:$0xff]  }
 0x1c9   :  { %2876 = vmatprep.subr.bf16.mxu1 %v5991_v14  ;;  %5392 = vmatprep.subr.bf16.mxu0 %v6840_v17  ;;  %v262_v14 = vld [vmem:[#allocation5 + $0x558] sm:$0xff]  ;;  %v6062_v17 = vcombine.low %v254_v2, %v258_v5 }
 0x1ca   :  { %v318_v53 = vld [vmem:[#allocation5 + $0x718] sm:$0xff] }
 0x1cb   :  { %v322_v54 = vld [vmem:[#allocation5 + $0x738] sm:$0xff] }
 0x1cc   :  { %2877 = vmatpush1.bf16.msra.mxu1 %v5990_v38  ;;  %5393 = vmatpush1.bf16.msra.mxu0 %v6838_v19  ;;  %v6071_v38 = vcombine.high %v262_v14, %v266_v15  ;;  %v6877_v19 = vld [vmem:[#allocation8 + $0x540] ss:$24 sps:$4 sm:$0xff]   ;;  %v334_v10 = vld [vmem:[#allocation5 + $0x798] sm:$0xff] }
 0x1cd   :  { %2878 = vmatprep.subr.bf16.mxu1 %v5999_v20  ;;  %5394 = vmatprep.subr.bf16.mxu0 %v6843_v26  ;;  %v270_v20 = vld [vmem:[#allocation5 + $0x598] sm:$0xff]  ;;  %v6070_v26 = vcombine.low %v262_v14, %v266_v15 }
 0x1ce   :  { %v338_v60 = vld [vmem:[#allocation5 + $0x7b8] sm:$0xff] }
 0x1cf   :  { %v6142_v2 = vcombine.low %v334_v10, %v338_v60  ;;  %v358_v14 = vld [vmem:[#allocation5 + $0x858] sm:$0xff] }
 0x1d0   :  { %2879 = vmatpush1.bf16.msra.mxu1 %v5998_v27  ;;  %5395 = vmatpush1.bf16.msra.mxu0 %v6841_v29  ;;  %v6079_v27 = vcombine.high %v270_v20, %v274_v21  ;;  %v6883_v29 = vld [vmem:[#allocation8 + $0x570] ss:$24 sps:$4 sm:$0xff]  }
 0x1d1   :  { %2880 = vmatprep.subr.bf16.mxu1 %v6007_v30  ;;  %5396 = vmatprep.subr.bf16.mxu0 %v6846_v33  ;;  %v278_v30 = vld [vmem:[#allocation5 + $0x5d8] sm:$0xff]  ;;  %v6078_v33 = vcombine.low %v270_v20, %v274_v21 }
 0x1d2   :  { %v362_v15 = vld [vmem:[#allocation5 + $0x878] sm:$0xff] }
 0x1d3   :  { %v6166_v20 = vcombine.low %v358_v14, %v362_v15  ;;  %v7365_v21 = vld [vmem:[#allocation2 + $0x14] ss:$24 sps:$4 sm:$0xff]  }
 0x1d4   :  { %2881 = vmatpush1.bf16.msra.mxu1 %v6006_v34  ;;  %5397 = vmatpush1.bf16.msra.mxu0 %v6844_v35  ;;  %v6087_v34 = vcombine.high %v278_v30, %v282_v31  ;;  %v6889_v35 = vld [vmem:[#allocation8 + $0x5a0] ss:$24 sps:$4 sm:$0xff]  }
 0x1d5   :  { %2882 = vmatprep.subr.bf16.mxu1 %v6015_v36  ;;  %5398 = vmatprep.subr.bf16.mxu0 %v6849_v39  ;;  %v286_v36 = vld [vmem:[#allocation5 + $0x618] sm:$0xff]  ;;  %v6086_v39 = vcombine.low %v278_v30, %v282_v31 }
 0x1d6   :  { %v382_v31 = vld [vmem:[#allocation5 + $0x918] sm:$0xff] }
 0x1d8   :  { %2883 = vmatpush1.bf16.msra.mxu1 %v6014_v44  ;;  %5399 = vmatpush1.bf16.msra.mxu0 %v6847_v41  ;;  %v6095_v44 = vcombine.high %v286_v36, %v290_v37  ;;  %v6895_v41 = vld [vmem:[#allocation8 + $0x5d0] ss:$24 sps:$4 sm:$0xff]  }
 0x1d9   :  { %2884 = vmatprep.subr.bf16.mxu1 %v6023_v42  ;;  %5400 = vmatprep.subr.bf16.mxu0 %v6852_v46  ;;  %v294_v42 = vld [vmem:[#allocation5 + $0x658] sm:$0xff]  ;;  %v6094_v46 = vcombine.low %v286_v36, %v290_v37 }
 0x1da   :  { %v6102_v49 = vcombine.low %v294_v42, %v298_v43 }
 0x1dc   :  { %2885 = vmatpush1.bf16.msra.mxu1 %v6022_v47  ;;  %5401 = vmatpush1.bf16.msra.mxu0 %v6850_v48  ;;  %v6103_v47 = vcombine.high %v294_v42, %v298_v43  ;;  %v302_v48 = vld [vmem:[#allocation5 + $0x698] sm:$0xff]  ;;  %v495_v42 = vsub.s32 4, %v7646_v18 }
 0x1dd   :  { %2897 = vmatprep.subr.bf16.mxu1 %v6031_v3  ;;  %5402 = vmatprep.subr.bf16.mxu0 %v6855_v51  ;;  %v306_v3 = vld [vmem:[#allocation5 + $0x6b8] sm:$0xff] }
 0x1de   :  { %v6111_v50 = vcombine.high %v302_v48, %v306_v3  ;;  %v310_v51 = vld [vmem:[#allocation5 + $0x6d8] sm:$0xff] }
 0x1df   :  { %2887 = vmatmul.mubr.bf16.vlgmr.msra.gmra.mrb[8].mxu1 %v7363_v55  ;;  %v6127_v55 = vcombine.high %v318_v53, %v322_v54  ;;  %v406_v43 = vld [vmem:[#allocation5 + $0x9d8] sm:$0xff] }
 0x1e0   :  { %2898 = vmatpush1.bf16.msra.mxu1 %v6030_v11  ;;  %2929 = vmatprep.mubr.bf16.mxu1 %v7364_v57  ;;  %v314_v11 = vld [vmem:[#allocation5 + $0x6f8] sm:$0xff] }
 0x1e1   :  { %2899 = vmatprep.subr.bf16.mxu1 %v6039_v12  ;;  %5403 = vmatpush1.bf16.msra.mxu0 %v6853_v52  ;;  %v6110_v12 = vcombine.low %v302_v48, %v306_v3  ;;  %v6119_v52 = vcombine.high %v310_v51, %v314_v11  ;;  %v330_v57 = vld [vmem:[#allocation5 + $0x778] sm:$0xff]  ;;  %v496_v3 = vrot.slane %v7649_v24, %v495_v42 }
 0x1e2   :  { %5404 = vmatprep.subr.bf16.mxu0 %v6861_v1  ;;  %v6118_v1 = vcombine.low %v310_v51, %v314_v11 }
 0x1e4   :  { %2900 = vmatpush1.bf16.msra.mxu1 %v6038_v56  ;;  %v326_v56 = vld [vmem:[#allocation5 + $0x758] sm:$0xff] }
 0x1e5   :  { %2901 = vmatprep.subr.bf16.mxu1 %v6047_v59  ;;  %5405 = vmatpush1.bf16.msra.mxu0 %v6859_v8  ;;  %v6126_v59 = vcombine.low %v318_v53, %v322_v54  ;;  %v6135_v8 = vcombine.high %v326_v56, %v330_v57 }
 0x1e6   :  { %5406 = vmatprep.subr.bf16.mxu0 %v6867_v61  ;;  %v6134_v61 = vcombine.low %v326_v56, %v330_v57 }
 0x1e8   :  { %2902 = vmatpush1.bf16.msra.mxu1 %v6046_v62  ;;  %v6143_v62 = vcombine.high %v334_v10, %v338_v60 }
 0x1e9   :  { %2903 = vmatprep.subr.bf16.mxu1 %v6055_v63  ;;  %5407 = vmatpush1.bf16.msra.mxu0 %v6865_v0  ;;  %v342_v63 = vld [vmem:[#allocation5 + $0x7d8] sm:$0xff] }
 0x1ea   :  { %5408 = vmatprep.subr.bf16.mxu0 %v6873_v6  ;;  %v346_v0 = vld [vmem:[#allocation5 + $0x7f8] sm:$0xff] }
 0x1eb   :  { %v6151_v5 = vcombine.high %v342_v63, %v346_v0  ;;  %v350_v6 = vld [vmem:[#allocation5 + $0x818] sm:$0xff] }
 0x1ec   :  { %2904 = vmatpush1.bf16.msra.mxu1 %v6054_v7  ;;  %v354_v7 = vld [vmem:[#allocation5 + $0x838] sm:$0xff] }
 0x1ed   :  { %2905 = vmatprep.subr.bf16.mxu1 %v6063_v9  ;;  %5409 = vmatpush1.bf16.msra.mxu0 %v6871_v13  ;;  %v6150_v9 = vcombine.low %v342_v63, %v346_v0  ;;  %v6159_v13 = vcombine.high %v350_v6, %v354_v7 }
 0x1ee   :  { %5410 = vmatprep.subr.bf16.mxu0 %v6879_v16  ;;  %v6158_v16 = vcombine.low %v350_v6, %v354_v7 }
 0x1f0   :  { %2906 = vmatpush1.bf16.msra.mxu1 %v6062_v17  ;;  %v6167_v17 = vcombine.high %v358_v14, %v362_v15  ;;  %v438_v15 = vld [vmem:[#allocation5 + $0xad8] sm:$0xff] }
 0x1f1   :  { %2907 = vmatprep.subr.bf16.mxu1 %v6071_v38  ;;  %5411 = vmatpush1.bf16.msra.mxu0 %v6877_v19  ;;  %v366_v38 = vld [vmem:[#allocation5 + $0x898] sm:$0xff] }
 0x1f2   :  { %5412 = vmatprep.subr.bf16.mxu0 %v6885_v23  ;;  %v370_v19 = vld [vmem:[#allocation5 + $0x8b8] sm:$0xff] }
 0x1f3   :  { %v6175_v23 = vcombine.high %v366_v38, %v370_v19 }
 0x1f4   :  { %2908 = vmatpush1.bf16.msra.mxu1 %v6070_v26  ;;  %v374_v26 = vld [vmem:[#allocation5 + $0x8d8] sm:$0xff] }
 0x1f5   :  { %2909 = vmatprep.subr.bf16.mxu1 %v6079_v27  ;;  %5413 = vmatpush1.bf16.msra.mxu0 %v6883_v29  ;;  %v378_v27 = vld [vmem:[#allocation5 + $0x8f8] sm:$0xff]  ;;  %v6174_v29 = vcombine.low %v366_v38, %v370_v19 }
 0x1f6   :  { %5414 = vmatprep.subr.bf16.mxu0 %v6891_v32  ;;  %v6183_v30 = vcombine.high %v374_v26, %v378_v27  ;;  %v386_v32 = vld [vmem:[#allocation5 + $0x938] sm:$0xff] }
 0x1f7   :  { %v6190_v36 = vcombine.low %v382_v31, %v386_v32  ;;  %v446_v19 = vld [vmem:[#allocation5 + $0xb18] sm:$0xff] }
 0x1f8   :  { %2910 = vmatpush1.bf16.msra.mxu1 %v6078_v33  ;;  %v6182_v33 = vcombine.low %v374_v26, %v378_v27  ;;  %v454_v26 = vld [vmem:[#allocation5 + $0xb58] sm:$0xff] }
 0x1f9   :  { %2911 = vmatprep.subr.bf16.mxu1 %v6087_v34  ;;  %5415 = vmatpush1.bf16.msra.mxu0 %v6889_v35  ;;  %v6191_v34 = vcombine.high %v382_v31, %v386_v32  ;;  %v390_v35 = vld [vmem:[#allocation5 + $0x958] sm:$0xff] }
 0x1fa   :  { %5416 = vmatprep.subr.bf16.mxu0 %v6897_v40  ;;  %v398_v40 = vld [vmem:[#allocation5 + $0x998] sm:$0xff] }
 0x1fb   :  { %v458_v27 = vld [vmem:[#allocation5 + $0xb78] sm:$0xff] }
 0x1fc   :  { %2912 = vmatpush1.bf16.msra.mxu1 %v6086_v39  ;;  %v402_v39 = vld [vmem:[#allocation5 + $0x9b8] sm:$0xff] }
 0x1fd   :  { %2913 = vmatprep.subr.bf16.mxu1 %v6095_v44  ;;  %5417 = vmatpush1.bf16.msra.mxu0 %v6895_v41  ;;  %v6207_v41 = vcombine.high %v398_v40, %v402_v39  ;;  %v462_v31 = vld [vmem:[#allocation5 + $0xb98] sm:$0xff] }
 0x1fe   :  { %5429 = vmatprep.subr.bf16.mxu0 %v6903_v45  ;;  %v410_v45 = vld [vmem:[#allocation5 + $0x9f8] sm:$0xff] }
 0x1ff   :  { %v6215_v48 = vcombine.high %v406_v43, %v410_v45  ;;  %v6214_v11 = vcombine.low %v406_v43, %v410_v45  ;;  %v466_v32 = vld [vmem:[#allocation5 + $0xbb8] sm:$0xff] }
 0x200   :  { %2914 = vmatpush1.bf16.msra.mxu1 %v6094_v46  ;;  %v499_v46 = vsub.s32 5, %v7646_v18  ;;  %v7366_v43 = vld [vmem:[#allocation2 + $0x10] ss:$24 sps:$4 sm:$0xff]  }
 0x201   :  { %2915 = vmatprep.subr.bf16.mxu1 %v6103_v47  ;;  %v6206_v47 = vcombine.low %v398_v40, %v402_v39  ;;  %v6858_v39 = vld [vmem:[#allocation8 + $0xc] ss:$24 sps:$4 sm:$0xff]   ;;  %v6862_v45 = vld [vmem:[#allocation8 + $0x38] ss:$24 sps:$4 sm:$0xff]  }
 0x202   :  { %v500_v51 = vrot.slane %v7649_v24, %v499_v46 }
 0x204   :  { %2916 = vmatpush1.bf16.msra.mxu1 %v6102_v49  ;;  %v414_v49 = vld [vmem:[#allocation5 + $0xa18] sm:$0xff] }
 0x205   :  { %2917 = vmatprep.subr.bf16.mxu1 %v6111_v50  ;;  %v418_v50 = vld [vmem:[#allocation5 + $0xa38] sm:$0xff] }
 0x206   :  { %v6222_v60 = vcombine.low %v414_v49, %v418_v50 }
 0x208   :  { %2918 = vmatpush1.bf16.msra.mxu1 %v6110_v12 }
 0x209   :  { %2919 = vmatprep.subr.bf16.mxu1 %v6119_v52  ;;  %v6223_v52 = vcombine.high %v414_v49, %v418_v50  ;;  %v6874_v49 = vld [vmem:[#allocation8 + $0x98] ss:$24 sps:$4 sm:$0xff]   ;;  %v6882_v50 = vld [vmem:[#allocation8 + $0xcc] ss:$24 sps:$4 sm:$0xff]  }
 0x20c   :  { %2920 = vmatpush1.bf16.msra.mxu1 %v6118_v1  ;;  %v422_v1 = vld [vmem:[#allocation5 + $0xa58] sm:$0xff] }
 0x20d   :  { %2921 = vmatprep.subr.bf16.mxu1 %v6127_v55  ;;  %v426_v55 = vld [vmem:[#allocation5 + $0xa78] sm:$0xff] }
 0x20e   :  { %v6231_v63 = vcombine.high %v422_v1, %v426_v55 }
 0x210   :  { %2922 = vmatpush1.bf16.msra.mxu1 %v6126_v59 }
 0x211   :  { %2923 = vmatprep.subr.bf16.mxu1 %v6135_v8 }
 0x214   :  { %2924 = vmatpush1.bf16.msra.mxu1 %v6134_v61 }
 0x215   :  { %2925 = vmatprep.subr.bf16.mxu1 %v6143_v62 }
 0x218   :  { %2926 = vmatpush1.bf16.msra.mxu1 %v6142_v2  ;;  %v430_v2 = vld [vmem:[#allocation5 + $0xa98] sm:$0xff] }
 0x219   :  { %2927 = vmatprep.subr.bf16.mxu1 %v6151_v5  ;;  %v434_v5 = vld [vmem:[#allocation5 + $0xab8] sm:$0xff] }
 0x21a   :  { %v6239_v14 = vcombine.high %v430_v2, %v434_v5 }
 0x21c   :  { %2928 = vmatpush1.bf16.msra.mxu1 %v6150_v9  ;;  %v6230_v9 = vcombine.low %v422_v1, %v426_v55  ;;  %v6886_v1 = vld [vmem:[#allocation8 + $0xf8] ss:$24 sps:$4 sm:$0xff]   ;;  %v6894_v55 = vld [vmem:[#allocation8 + $0x12c] ss:$24 sps:$4 sm:$0xff]  }
 0x21d   :  { %2940 = vmatprep.subr.bf16.mxu1 %v6159_v13 }
 0x21f   :  { %2930 = vmatmul.mubr.bf16.vlgmr.msra.gmra.mrb[8].mxu1 %v7630_v28  ;;  %v394_v28 = vld [vmem:[#allocation5 + $0x978] sm:$0xff] }
 0x220   :  { %2941 = vmatpush1.bf16.msra.mxu1 %v6158_v16  ;;  %2972 = vmatprep.mubr.bf16.mxu1 %v7365_v21  ;;  %v6199_v37 = vcombine.high %v390_v35, %v394_v28  ;;  %v6198_v44 = vcombine.low %v390_v35, %v394_v28  ;;  %v442_v16 = vld [vmem:[#allocation5 + $0xaf8] sm:$0xff] }
 0x221   :  { %2942 = vmatprep.subr.bf16.mxu1 %v6167_v17  ;;  %v6238_v17 = vcombine.low %v430_v2, %v434_v5  ;;  %v6247_v38 = vcombine.high %v438_v15, %v442_v16  ;;  %v6246_v21 = vcombine.low %v438_v15, %v442_v16  ;;  %v470_v35 = vld [vmem:[#allocation5 + $0xbd8] sm:$0xff]  ;;  %v6906_v15 = vld [vmem:[#allocation8 + $0x18c] ss:$24 sps:$4 sm:$0xff]  }
 0x222   :  { %v474_v28 = vld [vmem:[#allocation5 + $0xbf8] sm:$0xff] }
 0x223   :  { %v6278_v40 = vcombine.low %v470_v35, %v474_v28 }
 0x224   :  { %2943 = vmatpush1.bf16.msra.mxu1 %v6166_v20  ;;  %v450_v20 = vld [vmem:[#allocation5 + $0xb38] sm:$0xff] }
 0x225   :  { %2944 = vmatprep.subr.bf16.mxu1 %v6175_v23  ;;  %v6255_v23 = vcombine.high %v446_v19, %v450_v20 }
 0x228   :  { %2945 = vmatpush1.bf16.msra.mxu1 %v6174_v29  ;;  %v6254_v29 = vcombine.low %v446_v19, %v450_v20  ;;  %v6904_v19 = vld [vmem:[#allocation8 + $0x188] ss:$24 sps:$4 sm:$0xff]   ;;  %v6912_v20 = vld [vmem:[#allocation8 + $0x1bc] ss:$24 sps:$4 sm:$0xff]  }
 0x229   :  { %2946 = vmatprep.subr.bf16.mxu1 %v6183_v30  ;;  %v6263_v30 = vcombine.high %v454_v26, %v458_v27 }
 0x22c   :  { %2947 = vmatpush1.bf16.msra.mxu1 %v6182_v33  ;;  %v6262_v33 = vcombine.low %v454_v26, %v458_v27  ;;  %v6910_v26 = vld [vmem:[#allocation8 + $0x1b8] ss:$24 sps:$4 sm:$0xff]   ;;  %v6918_v27 = vld [vmem:[#allocation8 + $0x1ec] ss:$24 sps:$4 sm:$0xff]  }
 0x22d   :  { %2948 = vmatprep.subr.bf16.mxu1 %v6191_v34  ;;  %v6271_v34 = vcombine.high %v462_v31, %v466_v32 }
 0x230   :  { %2949 = vmatpush1.bf16.msra.mxu1 %v6190_v36  ;;  %v6270_v36 = vcombine.low %v462_v31, %v466_v32  ;;  %v6916_v31 = vld [vmem:[#allocation8 + $0x1e8] ss:$24 sps:$4 sm:$0xff]   ;;  %v6924_v32 = vld [vmem:[#allocation8 + $0x21c] ss:$24 sps:$4 sm:$0xff]  }
 0x231   :  { %2950 = vmatprep.subr.bf16.mxu1 %v6199_v37  ;;  %v6279_v37 = vcombine.high %v470_v35, %v474_v28  ;;  %v6922_v35 = vld [vmem:[#allocation8 + $0x218] ss:$24 sps:$4 sm:$0xff]   ;;  %v6930_v28 = vld [vmem:[#allocation8 + $0x24c] ss:$24 sps:$4 sm:$0xff]  }
 0x234   :  { %2951 = vmatpush1.bf16.msra.mxu1 %v6198_v44  ;;  %v6856_v44 = vld [vmem:[#allocation8 + $0x8] ss:$24 sps:$4 sm:$0xff]  }
 0x235   :  { %2952 = vmatprep.subr.bf16.mxu1 %v6207_v41  ;;  %v6864_v41 = vld [vmem:[#allocation8 + $0x3c] ss:$24 sps:$4 sm:$0xff]  }
 0x238   :  { %2953 = vmatpush1.bf16.msra.mxu1 %v6206_v47  ;;  %v6870_v47 = vld [vmem:[#allocation8 + $0x6c] ss:$24 sps:$4 sm:$0xff]  }
 0x239   :  { %v2845_v12 = vpop.f32.mrb[4].mxu0  ;;  %2954 = vmatprep.subr.bf16.mxu1 %v6215_v48  ;;  %v6868_v48 = vld [vmem:[#allocation8 + $0x68] ss:$24 sps:$4 sm:$0xff]  }
 0x23a   :  { %v6676_v53 = vadd.f32 %v2845_v12, %v496_v3  ;;  %v2847_v54 = vpop.f32.mrb[5].mxu0  ;;  %v491_v12 = vsub.s32 3, %v7646_v18 }
 0x23b   :  { %v6677_v56 = vadd.f32 %v2847_v54, %v500_v51  ;;  %v2849_v57 = vpop.f32.mrb[6].mxu0 }
 0x23c   :  { %v2987_v59 = vmax.f32 %v6676_v53, 0.0  ;;  %v6678_v8 = vadd.f32 %v2849_v57, %v496_v3  ;;  %v2851_v10 = vpop.f32.mrb[7].mxu0  ;;  %2955 = vmatpush1.bf16.msra.mxu1 %v6214_v11  ;;  %v6876_v3 = vld [vmem:[#allocation8 + $0x9c] ss:$24 sps:$4 sm:$0xff]   ;;  %v6880_v11 = vld [vmem:[#allocation8 + $0xc8] ss:$24 sps:$4 sm:$0xff]   ;;  %v492_v54 = vrot.slane %v7649_v24, %v491_v12 }
 0x23d   :  { %v2988_v61 = vmax.f32 %v6677_v56, 0.0  ;;  %v6679_v62 = vadd.f32 %v2851_v10, %v500_v51  ;;  %2956 = vmatprep.subr.bf16.mxu1 %v6223_v52  ;;  %v487_v51 = vsub.s32 2, %v7646_v18  ;;  %v6888_v52 = vld [vmem:[#allocation8 + $0xfc] ss:$24 sps:$4 sm:$0xff]  }
 0x23e   :  { %v2995_v0 = vmax.f32 %v6678_v8, 0.0 }
 0x23f   :  { %v2996_v6 = vmax.f32 %v6679_v62, 0.0  ;;  %v488_v53 = vrot.slane %v7649_v24, %v487_v51  ;;  %v6898_v24 = vld [vmem:[#allocation8 + $0x158] ss:$24 sps:$4 sm:$0xff]  }
 0x240   :  { %v7677_v7 = vpack.c.bf16 %v2995_v0, %v2987_v59  ;;  %2957 = vmatpush1.bf16.msra.mxu1 %v6222_v60  ;;  %v6892_v60 = vld [vmem:[#allocation8 + $0x128] ss:$24 sps:$4 sm:$0xff]  }
 0x241   :  { %v7679_v13 = vpack.c.bf16 %v2996_v6, %v2988_v61  ;;  %2958 = vmatprep.subr.bf16.mxu1 %v6231_v63  ;;  %v6900_v63 = vld [vmem:[#allocation8 + $0x15c] ss:$24 sps:$4 sm:$0xff]  }
 0x244   :  { %2959 = vmatpush1.bf16.msra.mxu1 %v6230_v9 }
 0x245   :  { %2960 = vmatprep.subr.bf16.mxu1 %v6239_v14 }
 0x248   :  { %2961 = vmatpush1.bf16.msra.mxu1 %v6238_v17  ;;  %v6901_v17 = vld [vmem:[#allocation8 + $0x600] ss:$24 sps:$4 sm:$0xff]  }
 0x249   :  { %2962 = vmatprep.subr.bf16.mxu1 %v6247_v38  ;;  %v6909_v38 = vld [vmem:[#allocation8 + $0x634] ss:$24 sps:$4 sm:$0xff]  }
 0x24c   :  { %2963 = vmatpush1.bf16.msra.mxu1 %v6246_v21  ;;  %v6907_v21 = vld [vmem:[#allocation8 + $0x630] ss:$24 sps:$4 sm:$0xff]  }
 0x24d   :  { %2964 = vmatprep.subr.bf16.mxu1 %v6255_v23  ;;  %v6915_v23 = vld [vmem:[#allocation8 + $0x664] ss:$24 sps:$4 sm:$0xff]  }
 0x250   :  { %2965 = vmatpush1.bf16.msra.mxu1 %v6254_v29  ;;  %v6913_v29 = vld [vmem:[#allocation8 + $0x660] ss:$24 sps:$4 sm:$0xff]  }
 0x251   :  { %2966 = vmatprep.subr.bf16.mxu1 %v6263_v30  ;;  %v6921_v30 = vld [vmem:[#allocation8 + $0x694] ss:$24 sps:$4 sm:$0xff]  }
 0x254   :  { %2967 = vmatpush1.bf16.msra.mxu1 %v6262_v33  ;;  %v6919_v33 = vld [vmem:[#allocation8 + $0x690] ss:$24 sps:$4 sm:$0xff]  }
 0x255   :  { %2968 = vmatprep.subr.bf16.mxu1 %v6271_v34  ;;  %v6927_v34 = vld [vmem:[#allocation8 + $0x6c4] ss:$24 sps:$4 sm:$0xff]  }
 0x258   :  { %2969 = vmatpush1.bf16.msra.mxu1 %v6270_v36  ;;  %v6925_v36 = vld [vmem:[#allocation8 + $0x6c0] ss:$24 sps:$4 sm:$0xff]  }
 0x259   :  { %2970 = vmatprep.subr.bf16.mxu1 %v6279_v37  ;;  %v6933_v37 = vld [vmem:[#allocation8 + $0x6f4] ss:$24 sps:$4 sm:$0xff]  }
 0x25c   :  { %2971 = vmatpush1.bf16.msra.mxu1 %v6278_v40  ;;  %v6928_v40 = vld [vmem:[#allocation8 + $0x248] ss:$24 sps:$4 sm:$0xff]  }
 0x25d   :  { %5515 = vmatprep.subr.bf16.mxu1 %v6858_v39  ;;  %v6936_v39 = vld [vmem:[#allocation8 + $0x27c] ss:$24 sps:$4 sm:$0xff]  }
 0x25f   :  { %2973 = vmatmul.mubr.bf16.vlgmr.msra.gmra.mrb[8].mxu1 %v7366_v43  ;;  %v6934_v43 = vld [vmem:[#allocation8 + $0x278] ss:$24 sps:$4 sm:$0xff]  }
 0x260   :  { %5516 = vmatpush1.bf16.msra.mxu1 %v6856_v44  ;;  %5547 = vmatprep.mubr.bf16.mxu1 %v7664_v4  ;;  %v6931_v44 = vld [vmem:[#allocation8 + $0x6f0] ss:$24 sps:$4 sm:$0xff]  }
 0x261   :  { %5517 = vmatprep.subr.bf16.mxu1 %v6864_v41  ;;  %v6939_v41 = vld [vmem:[#allocation8 + $0x724] ss:$24 sps:$4 sm:$0xff]  }
 0x264   :  { %5518 = vmatpush1.bf16.msra.mxu1 %v6862_v45  ;;  %v6942_v45 = vld [vmem:[#allocation8 + $0x2ac] ss:$24 sps:$4 sm:$0xff]  }
 0x265   :  { %5519 = vmatprep.subr.bf16.mxu1 %v6870_v47  ;;  %v6937_v47 = vld [vmem:[#allocation8 + $0x720] ss:$24 sps:$4 sm:$0xff]  }
 0x268   :  { %5520 = vmatpush1.bf16.msra.mxu1 %v6868_v48  ;;  %v6945_v48 = vld [vmem:[#allocation8 + $0x754] ss:$24 sps:$4 sm:$0xff]  }
 0x269   :  { %5521 = vmatprep.subr.bf16.mxu1 %v6876_v3  ;;  %v6940_v3 = vld [vmem:[#allocation8 + $0x2a8] ss:$24 sps:$4 sm:$0xff]  }
 0x26c   :  { %5522 = vmatpush1.bf16.msra.mxu1 %v6874_v49  ;;  %v6948_v49 = vld [vmem:[#allocation8 + $0x2dc] ss:$24 sps:$4 sm:$0xff]  }
 0x26d   :  { %5523 = vmatprep.subr.bf16.mxu1 %v6882_v50  ;;  %v6943_v50 = vld [vmem:[#allocation8 + $0x750] ss:$24 sps:$4 sm:$0xff]  }
 0x270   :  { %5524 = vmatpush1.bf16.msra.mxu1 %v6880_v11  ;;  %v6951_v11 = vld [vmem:[#allocation8 + $0x784] ss:$24 sps:$4 sm:$0xff]  }
 0x271   :  { %5525 = vmatprep.subr.bf16.mxu1 %v6888_v52  ;;  %v6946_v52 = vld [vmem:[#allocation8 + $0x2d8] ss:$24 sps:$4 sm:$0xff]  }
 0x272   :  { %v2716_v56 = vpop.f32.mrb[4].mxu1 }
 0x273   :  { %v6672_v57 = vadd.f32 %v2716_v56, %v488_v53  ;;  %v2718_v59 = vpop.f32.mrb[5].mxu1  ;;  %v6960_v56 = vld [vmem:[#allocation8 + $0x33c] ss:$24 sps:$4 sm:$0xff]  }
 0x274   :  { %v6673_v8 = vadd.f32 %v2718_v59, %v492_v54  ;;  %v2720_v10 = vpop.f32.mrb[6].mxu1  ;;  %5526 = vmatpush1.bf16.msra.mxu1 %v6886_v1  ;;  %v6957_v1 = vld [vmem:[#allocation8 + $0x7b4] ss:$24 sps:$4 sm:$0xff]   ;;  %v6963_v59 = vld [vmem:[#allocation8 + $0x7e4] ss:$24 sps:$4 sm:$0xff]  }
 0x275   :  { %v6674_v61 = vadd.f32 %v2720_v10, %v488_v53  ;;  %v2722_v62 = vpop.f32.mrb[7].mxu1  ;;  %5527 = vmatprep.subr.bf16.mxu1 %v6894_v55  ;;  %v2985_v2 = vmax.f32 %v6672_v57, 0.0  ;;  %v6954_v53 = vld [vmem:[#allocation8 + $0x30c] ss:$24 sps:$4 sm:$0xff]   ;;  %v6952_v55 = vld [vmem:[#allocation8 + $0x308] ss:$24 sps:$4 sm:$0xff]  }
 0x276   :  { %v6675_v0 = vadd.f32 %v2722_v62, %v492_v54  ;;  %v2986_v6 = vmax.f32 %v6673_v8, 0.0  ;;  %v6949_v54 = vld [vmem:[#allocation8 + $0x780] ss:$24 sps:$4 sm:$0xff]   ;;  %v6955_v57 = vld [vmem:[#allocation8 + $0x7b0] ss:$24 sps:$4 sm:$0xff]  }
 0x277   :  { %v2993_v5 = vmax.f32 %v6674_v61, 0.0  ;;  %v6958_v8 = vld [vmem:[#allocation8 + $0x338] ss:$24 sps:$4 sm:$0xff]   ;;  %v6966_v10 = vld [vmem:[#allocation8 + $0x36c] ss:$24 sps:$4 sm:$0xff]  }
 0x278   :  { %v2994_v9 = vmax.f32 %v6675_v0, 0.0  ;;  %5528 = vmatpush1.bf16.msra.mxu1 %v6892_v60  ;;  %v6961_v60 = vld [vmem:[#allocation8 + $0x7e0] ss:$24 sps:$4 sm:$0xff]   ;;  %v6969_v61 = vld [vmem:[#allocation8 + $0x814] ss:$24 sps:$4 sm:$0xff]  }
 0x279   :  { %v7690_v14 = vpack.c.bf16 %v2993_v5, %v2985_v2  ;;  %5529 = vmatprep.subr.bf16.mxu1 %v6900_v63  ;;  %v6964_v62 = vld [vmem:[#allocation8 + $0x368] ss:$24 sps:$4 sm:$0xff]   ;;  %v6972_v63 = vld [vmem:[#allocation8 + $0x39c] ss:$24 sps:$4 sm:$0xff]   ;;  %v6970_v5 = vld [vmem:[#allocation8 + $0x398] ss:$24 sps:$4 sm:$0xff]  }
 0x27a   :  { %v7692_v16 = vpack.c.bf16 %v2994_v9, %v2986_v6  ;;  %v6967_v0 = vld [vmem:[#allocation8 + $0x810] ss:$24 sps:$4 sm:$0xff]   ;;  %v6975_v2 = vld [vmem:[#allocation8 + $0x844] ss:$24 sps:$4 sm:$0xff]   ;;  %v6973_v9 = vld [vmem:[#allocation8 + $0x840] ss:$24 sps:$4 sm:$0xff]  }
 0x27b   :  { %v6978_v6 = vld [vmem:[#allocation8 + $0x3cc] ss:$24 sps:$4 sm:$0xff]  }
 0x27c   :  { %5418 = vmatprep.mubr.bf16.mxu0 %v7692_v16  ;;  %5530 = vmatpush1.bf16.msra.mxu1 %v6898_v24  ;;  %v6981_v24 = vld [vmem:[#allocation8 + $0x874] ss:$24 sps:$4 sm:$0xff]  }
 0x27d   :  { %5419 = vmatmul.mubr.bf16.vlgmr.msra.gmra.mrb[8].mxu0 %v7690_v14  ;;  %5531 = vmatprep.subr.bf16.mxu1 %v6906_v15  ;;  %v6976_v15 = vld [vmem:[#allocation8 + $0x3c8] ss:$24 sps:$4 sm:$0xff]  }
 0x27e   :  { %5430 = vmatpush1.bf16.msra.mxu0 %v6901_v17  ;;  %5461 = vmatprep.mubr.bf16.mxu0 %v7679_v13  ;;  %v6984_v17 = vld [vmem:[#allocation8 + $0x3fc] ss:$24 sps:$4 sm:$0xff]  }
 0x27f   :  { %5431 = vmatprep.subr.bf16.mxu0 %v6909_v38  ;;  %v6979_v38 = vld [vmem:[#allocation8 + $0x870] ss:$24 sps:$4 sm:$0xff]  }
 0x280   :  { %5532 = vmatpush1.bf16.msra.mxu1 %v6904_v19  ;;  %v6987_v19 = vld [vmem:[#allocation8 + $0x8a4] ss:$24 sps:$4 sm:$0xff]  }
 0x281   :  { %5533 = vmatprep.subr.bf16.mxu1 %v6912_v20  ;;  %v6982_v20 = vld [vmem:[#allocation8 + $0x3f8] ss:$24 sps:$4 sm:$0xff]  }
 0x282   :  { %5432 = vmatpush1.bf16.msra.mxu0 %v6907_v21  ;;  %v6990_v21 = vld [vmem:[#allocation8 + $0x42c] ss:$24 sps:$4 sm:$0xff]  }
 0x283   :  { %5433 = vmatprep.subr.bf16.mxu0 %v6915_v23  ;;  %v6985_v23 = vld [vmem:[#allocation8 + $0x8a0] ss:$24 sps:$4 sm:$0xff]  }
 0x284   :  { %5534 = vmatpush1.bf16.msra.mxu1 %v6910_v26  ;;  %v6993_v26 = vld [vmem:[#allocation8 + $0x8d4] ss:$24 sps:$4 sm:$0xff]  }
 0x285   :  { %5535 = vmatprep.subr.bf16.mxu1 %v6918_v27  ;;  %v6988_v27 = vld [vmem:[#allocation8 + $0x428] ss:$24 sps:$4 sm:$0xff]  }
 0x286   :  { %5434 = vmatpush1.bf16.msra.mxu0 %v6913_v29  ;;  %v6996_v29 = vld [vmem:[#allocation8 + $0x45c] ss:$24 sps:$4 sm:$0xff]  }
 0x287   :  { %5435 = vmatprep.subr.bf16.mxu0 %v6921_v30  ;;  %v6991_v30 = vld [vmem:[#allocation8 + $0x8d0] ss:$24 sps:$4 sm:$0xff]  }
 0x288   :  { %5536 = vmatpush1.bf16.msra.mxu1 %v6916_v31  ;;  %v7047_v31 = vld [vmem:[#allocation8 + $0x904] ss:$24 sps:$4 sm:$0xff]  }
 0x289   :  { %5537 = vmatprep.subr.bf16.mxu1 %v6924_v32  ;;  %v6994_v32 = vld [vmem:[#allocation8 + $0x458] ss:$24 sps:$4 sm:$0xff]  }
 0x28a   :  { %5436 = vmatpush1.bf16.msra.mxu0 %v6919_v33  ;;  %v6999_v33 = vld [vmem:[#allocation8 + $0x48c] ss:$24 sps:$4 sm:$0xff]  }
 0x28b   :  { %5437 = vmatprep.subr.bf16.mxu0 %v6927_v34  ;;  %v7045_v34 = vld [vmem:[#allocation8 + $0x900] ss:$24 sps:$4 sm:$0xff]  }
 0x28c   :  { %5538 = vmatpush1.bf16.msra.mxu1 %v6922_v35  ;;  %v7053_v35 = vld [vmem:[#allocation8 + $0x934] ss:$24 sps:$4 sm:$0xff]  }
 0x28d   :  { %5539 = vmatprep.subr.bf16.mxu1 %v6930_v28  ;;  %v6997_v28 = vld [vmem:[#allocation8 + $0x488] ss:$24 sps:$4 sm:$0xff]  }
 0x28e   :  { %5438 = vmatpush1.bf16.msra.mxu0 %v6925_v36  ;;  %v7002_v36 = vld [vmem:[#allocation8 + $0x4bc] ss:$24 sps:$4 sm:$0xff]  }
 0x28f   :  { %5439 = vmatprep.subr.bf16.mxu0 %v6933_v37  ;;  %v7051_v37 = vld [vmem:[#allocation8 + $0x930] ss:$24 sps:$4 sm:$0xff]  }
 0x290   :  { %5540 = vmatpush1.bf16.msra.mxu1 %v6928_v40  ;;  %v7059_v40 = vld [vmem:[#allocation8 + $0x964] ss:$24 sps:$4 sm:$0xff]  }
 0x291   :  { %5541 = vmatprep.subr.bf16.mxu1 %v6936_v39  ;;  %v7000_v39 = vld [vmem:[#allocation8 + $0x4b8] ss:$24 sps:$4 sm:$0xff]  }
 0x292   :  { %5440 = vmatpush1.bf16.msra.mxu0 %v6931_v44  ;;  %v7005_v44 = vld [vmem:[#allocation8 + $0x4ec] ss:$24 sps:$4 sm:$0xff]  }
 0x293   :  { %5441 = vmatprep.subr.bf16.mxu0 %v6939_v41  ;;  %v7057_v41 = vld [vmem:[#allocation8 + $0x960] ss:$24 sps:$4 sm:$0xff]  }
 0x294   :  { %5542 = vmatpush1.bf16.msra.mxu1 %v6934_v43  ;;  %v7065_v43 = vld [vmem:[#allocation8 + $0x994] ss:$24 sps:$4 sm:$0xff]  }
 0x295   :  { %5543 = vmatprep.subr.bf16.mxu1 %v6942_v45  ;;  %v7003_v45 = vld [vmem:[#allocation8 + $0x4e8] ss:$24 sps:$4 sm:$0xff]  }
 0x296   :  { %5442 = vmatpush1.bf16.msra.mxu0 %v6937_v47  ;;  %v7008_v47 = vld [vmem:[#allocation8 + $0x51c] ss:$24 sps:$4 sm:$0xff]  }
 0x297   :  { %5443 = vmatprep.subr.bf16.mxu0 %v6945_v48  ;;  %v7063_v48 = vld [vmem:[#allocation8 + $0x990] ss:$24 sps:$4 sm:$0xff]  }
 0x298   :  { %5544 = vmatpush1.bf16.msra.mxu1 %v6940_v3  ;;  %v7071_v3 = vld [vmem:[#allocation8 + $0x9c4] ss:$24 sps:$4 sm:$0xff]  }
 0x299   :  { %5545 = vmatprep.subr.bf16.mxu1 %v6948_v49  ;;  %v7006_v49 = vld [vmem:[#allocation8 + $0x518] ss:$24 sps:$4 sm:$0xff]  }
 0x29a   :  { %5444 = vmatpush1.bf16.msra.mxu0 %v6943_v50  ;;  %v7011_v50 = vld [vmem:[#allocation8 + $0x54c] ss:$24 sps:$4 sm:$0xff]  }
 0x29b   :  { %5445 = vmatprep.subr.bf16.mxu0 %v6951_v11  ;;  %v7069_v11 = vld [vmem:[#allocation8 + $0x9c0] ss:$24 sps:$4 sm:$0xff]  }
 0x29c   :  { %5546 = vmatpush1.bf16.msra.mxu1 %v6946_v52  ;;  %v7077_v52 = vld [vmem:[#allocation8 + $0x9f4] ss:$24 sps:$4 sm:$0xff]  }
 0x29d   :  { %5558 = vmatprep.subr.bf16.mxu1 %v6954_v53  ;;  %v7009_v53 = vld [vmem:[#allocation8 + $0x548] ss:$24 sps:$4 sm:$0xff]  }
 0x29e   :  { %5446 = vmatpush1.bf16.msra.mxu0 %v6949_v54  ;;  %v7014_v54 = vld [vmem:[#allocation8 + $0x57c] ss:$24 sps:$4 sm:$0xff]  }
 0x29f   :  { %5548 = vmatmul.mubr.bf16.vlgmr.msra.gmra.mrb[12].mxu1 %v7662_v58  ;;  %5447 = vmatprep.subr.bf16.mxu0 %v6957_v1  ;;  %v7075_v1 = vld [vmem:[#allocation8 + $0x9f0] ss:$24 sps:$4 sm:$0xff]  }
 0x2a0   :  { %5559 = vmatpush1.bf16.msra.mxu1 %v6952_v55  ;;  %5590 = vmatprep.mubr.bf16.mxu1 %v7692_v16  ;;  %v7083_v55 = vld [vmem:[#allocation8 + $0xa24] ss:$24 sps:$4 sm:$0xff]  }
 0x2a1   :  { %5560 = vmatprep.subr.bf16.mxu1 %v6960_v56  ;;  %v7012_v56 = vld [vmem:[#allocation8 + $0x578] ss:$24 sps:$4 sm:$0xff]  }
 0x2a2   :  { %5448 = vmatpush1.bf16.msra.mxu0 %v6955_v57  ;;  %v7017_v57 = vld [vmem:[#allocation8 + $0x5ac] ss:$24 sps:$4 sm:$0xff]  }
 0x2a3   :  { %5449 = vmatprep.subr.bf16.mxu0 %v6963_v59  ;;  %v7081_v59 = vld [vmem:[#allocation8 + $0xa20] ss:$24 sps:$4 sm:$0xff]  }
 0x2a4   :  { %5561 = vmatpush1.bf16.msra.mxu1 %v6958_v8  ;;  %v7089_v8 = vld [vmem:[#allocation8 + $0xa54] ss:$24 sps:$4 sm:$0xff]  }
 0x2a5   :  { %5562 = vmatprep.subr.bf16.mxu1 %v6966_v10  ;;  %v7015_v10 = vld [vmem:[#allocation8 + $0x5a8] ss:$24 sps:$4 sm:$0xff]  }
 0x2a6   :  { %5450 = vmatpush1.bf16.msra.mxu0 %v6961_v60  ;;  %v7020_v60 = vld [vmem:[#allocation8 + $0x5dc] ss:$24 sps:$4 sm:$0xff]  }
 0x2a7   :  { %5451 = vmatprep.subr.bf16.mxu0 %v6969_v61  ;;  %v7087_v61 = vld [vmem:[#allocation8 + $0xa50] ss:$24 sps:$4 sm:$0xff]  }
 0x2a8   :  { %5563 = vmatpush1.bf16.msra.mxu1 %v6964_v62  ;;  %v7095_v62 = vld [vmem:[#allocation8 + $0xa84] ss:$24 sps:$4 sm:$0xff]  }
 0x2a9   :  { %5564 = vmatprep.subr.bf16.mxu1 %v6972_v63  ;;  %v7018_v63 = vld [vmem:[#allocation8 + $0x5d8] ss:$24 sps:$4 sm:$0xff]  }
 0x2aa   :  { %5452 = vmatpush1.bf16.msra.mxu0 %v6967_v0  ;;  %v7023_v0 = vld [vmem:[#allocation8 + $0x60c] ss:$24 sps:$4 sm:$0xff]  }
 0x2ab   :  { %5453 = vmatprep.subr.bf16.mxu0 %v6975_v2  ;;  %v7093_v2 = vld [vmem:[#allocation8 + $0xa80] ss:$24 sps:$4 sm:$0xff]  }
 0x2ac   :  { %5565 = vmatpush1.bf16.msra.mxu1 %v6970_v5  ;;  %v7101_v5 = vld [vmem:[#allocation8 + $0xab4] ss:$24 sps:$4 sm:$0xff]  }
 0x2ad   :  { %5566 = vmatprep.subr.bf16.mxu1 %v6978_v6  ;;  %v7021_v6 = vld [vmem:[#allocation8 + $0x608] ss:$24 sps:$4 sm:$0xff]  }
 0x2ae   :  { %5454 = vmatpush1.bf16.msra.mxu0 %v6973_v9  ;;  %v7026_v9 = vld [vmem:[#allocation8 + $0x63c] ss:$24 sps:$4 sm:$0xff]  }
 0x2af   :  { %5455 = vmatprep.subr.bf16.mxu0 %v6981_v24  ;;  %v7099_v24 = vld [vmem:[#allocation8 + $0xab0] ss:$24 sps:$4 sm:$0xff]  }
 0x2b0   :  { %5567 = vmatpush1.bf16.msra.mxu1 %v6976_v15  ;;  %v7107_v15 = vld [vmem:[#allocation8 + $0xae4] ss:$24 sps:$4 sm:$0xff]  }
 0x2b1   :  { %5568 = vmatprep.subr.bf16.mxu1 %v6984_v17  ;;  %v7024_v17 = vld [vmem:[#allocation8 + $0x638] ss:$24 sps:$4 sm:$0xff]  }
 0x2b2   :  { %5456 = vmatpush1.bf16.msra.mxu0 %v6979_v38  ;;  %v7029_v38 = vld [vmem:[#allocation8 + $0x66c] ss:$24 sps:$4 sm:$0xff]  }
 0x2b3   :  { %5457 = vmatprep.subr.bf16.mxu0 %v6987_v19  ;;  %v7105_v19 = vld [vmem:[#allocation8 + $0xae0] ss:$24 sps:$4 sm:$0xff]  }
 0x2b4   :  { %5569 = vmatpush1.bf16.msra.mxu1 %v6982_v20  ;;  %v7113_v20 = vld [vmem:[#allocation8 + $0xb14] ss:$24 sps:$4 sm:$0xff]  }
 0x2b5   :  { %5570 = vmatprep.subr.bf16.mxu1 %v6990_v21  ;;  %v7027_v21 = vld [vmem:[#allocation8 + $0x668] ss:$24 sps:$4 sm:$0xff]  }
 0x2b6   :  { %5458 = vmatpush1.bf16.msra.mxu0 %v6985_v23  ;;  %v7032_v23 = vld [vmem:[#allocation8 + $0x69c] ss:$24 sps:$4 sm:$0xff]  }
 0x2b7   :  { %5459 = vmatprep.subr.bf16.mxu0 %v6993_v26  ;;  %v7111_v26 = vld [vmem:[#allocation8 + $0xb10] ss:$24 sps:$4 sm:$0xff]  }
 0x2b8   :  { %5571 = vmatpush1.bf16.msra.mxu1 %v6988_v27  ;;  %v7119_v27 = vld [vmem:[#allocation8 + $0xb44] ss:$24 sps:$4 sm:$0xff]  }
 0x2b9   :  { %5572 = vmatprep.subr.bf16.mxu1 %v6996_v29  ;;  %v7030_v29 = vld [vmem:[#allocation8 + $0x698] ss:$24 sps:$4 sm:$0xff]  }
 0x2ba   :  { %5460 = vmatpush1.bf16.msra.mxu0 %v6991_v30  ;;  %v7035_v30 = vld [vmem:[#allocation8 + $0x6cc] ss:$24 sps:$4 sm:$0xff]  }
 0x2bb   :  { %5472 = vmatprep.subr.bf16.mxu0 %v7047_v31  ;;  %v7117_v31 = vld [vmem:[#allocation8 + $0xb40] ss:$24 sps:$4 sm:$0xff]  }
 0x2bc   :  { %5573 = vmatpush1.bf16.msra.mxu1 %v6994_v32  ;;  %v7125_v32 = vld [vmem:[#allocation8 + $0xb74] ss:$24 sps:$4 sm:$0xff]  }
 0x2bd   :  { %5462 = vmatmul.mubr.bf16.vlgmr.msra.gmra.mrb[8].mxu0 %v7677_v7  ;;  %5574 = vmatprep.subr.bf16.mxu1 %v6999_v33  ;;  %v7033_v33 = vld [vmem:[#allocation8 + $0x6c8] ss:$24 sps:$4 sm:$0xff]  }
 0x2be   :  { %5473 = vmatpush1.bf16.msra.mxu0 %v7045_v34  ;;  %v7038_v34 = vld [vmem:[#allocation8 + $0x6fc] ss:$24 sps:$4 sm:$0xff]  }
 0x2bf   :  { %5474 = vmatprep.subr.bf16.mxu0 %v7053_v35  ;;  %v7123_v35 = vld [vmem:[#allocation8 + $0xb70] ss:$24 sps:$4 sm:$0xff]  }
 0x2c0   :  { %5575 = vmatpush1.bf16.msra.mxu1 %v6997_v28  ;;  %v7131_v28 = vld [vmem:[#allocation8 + $0xba4] ss:$24 sps:$4 sm:$0xff]  }
 0x2c1   :  { %5576 = vmatprep.subr.bf16.mxu1 %v7002_v36  ;;  %v7036_v36 = vld [vmem:[#allocation8 + $0x6f8] ss:$24 sps:$4 sm:$0xff]  }
 0x2c2   :  { %5475 = vmatpush1.bf16.msra.mxu0 %v7051_v37  ;;  %v7041_v37 = vld [vmem:[#allocation8 + $0x72c] ss:$24 sps:$4 sm:$0xff]  }
 0x2c3   :  { %5476 = vmatprep.subr.bf16.mxu0 %v7059_v40  ;;  %v7129_v40 = vld [vmem:[#allocation8 + $0xba0] ss:$24 sps:$4 sm:$0xff]  }
 0x2c4   :  { %5577 = vmatpush1.bf16.msra.mxu1 %v7000_v39  ;;  %v7137_v39 = vld [vmem:[#allocation8 + $0xbd4] ss:$24 sps:$4 sm:$0xff]  }
 0x2c5   :  { %5578 = vmatprep.subr.bf16.mxu1 %v7005_v44  ;;  %v7039_v44 = vld [vmem:[#allocation8 + $0x728] ss:$24 sps:$4 sm:$0xff]  }
 0x2c6   :  { %5477 = vmatpush1.bf16.msra.mxu0 %v7057_v41  ;;  %v7044_v41 = vld [vmem:[#allocation8 + $0x75c] ss:$24 sps:$4 sm:$0xff]  }
 0x2c7   :  { %5478 = vmatprep.subr.bf16.mxu0 %v7065_v43  ;;  %v7135_v43 = vld [vmem:[#allocation8 + $0xbd0] ss:$24 sps:$4 sm:$0xff]  }
 0x2c8   :  { %5579 = vmatpush1.bf16.msra.mxu1 %v7003_v45  ;;  %v7143_v45 = vld [vmem:[#allocation8 + $0x14] ss:$24 sps:$4 sm:$0xff]  }
 0x2c9   :  { %5580 = vmatprep.subr.bf16.mxu1 %v7008_v47  ;;  %v7042_v47 = vld [vmem:[#allocation8 + $0x758] ss:$24 sps:$4 sm:$0xff]  }
 0x2ca   :  { %5479 = vmatpush1.bf16.msra.mxu0 %v7063_v48  ;;  %v7050_v48 = vld [vmem:[#allocation8 + $0x78c] ss:$24 sps:$4 sm:$0xff]  }
 0x2cb   :  { %5480 = vmatprep.subr.bf16.mxu0 %v7071_v3  ;;  %v7048_v3 = vld [vmem:[#allocation8 + $0x788] ss:$24 sps:$4 sm:$0xff]  }
 0x2cc   :  { %5581 = vmatpush1.bf16.msra.mxu1 %v7006_v49  ;;  %v7056_v49 = vld [vmem:[#allocation8 + $0x7bc] ss:$24 sps:$4 sm:$0xff]  }
 0x2cd   :  { %5582 = vmatprep.subr.bf16.mxu1 %v7011_v50  ;;  %v7054_v50 = vld [vmem:[#allocation8 + $0x7b8] ss:$24 sps:$4 sm:$0xff]  }
 0x2ce   :  { %5481 = vmatpush1.bf16.msra.mxu0 %v7069_v11  ;;  %v7062_v11 = vld [vmem:[#allocation8 + $0x7ec] ss:$24 sps:$4 sm:$0xff]  }
 0x2cf   :  { %5482 = vmatprep.subr.bf16.mxu0 %v7077_v52  ;;  %v7060_v52 = vld [vmem:[#allocation8 + $0x7e8] ss:$24 sps:$4 sm:$0xff]  }
 0x2d0   :  { %5583 = vmatpush1.bf16.msra.mxu1 %v7009_v53  ;;  %v7068_v53 = vld [vmem:[#allocation8 + $0x81c] ss:$24 sps:$4 sm:$0xff]  }
 0x2d1   :  { %5584 = vmatprep.subr.bf16.mxu1 %v7014_v54  ;;  %v7066_v54 = vld [vmem:[#allocation8 + $0x818] ss:$24 sps:$4 sm:$0xff]  }
 0x2d2   :  { %5483 = vmatpush1.bf16.msra.mxu0 %v7075_v1  ;;  %v7074_v1 = vld [vmem:[#allocation8 + $0x84c] ss:$24 sps:$4 sm:$0xff]  }
 0x2d3   :  { %5484 = vmatprep.subr.bf16.mxu0 %v7083_v55  ;;  %v7072_v55 = vld [vmem:[#allocation8 + $0x848] ss:$24 sps:$4 sm:$0xff]  }
 0x2d4   :  { %5585 = vmatpush1.bf16.msra.mxu1 %v7012_v56  ;;  %v7080_v56 = vld [vmem:[#allocation8 + $0x87c] ss:$24 sps:$4 sm:$0xff]  }
 0x2d5   :  { %5586 = vmatprep.subr.bf16.mxu1 %v7017_v57  ;;  %v7078_v57 = vld [vmem:[#allocation8 + $0x878] ss:$24 sps:$4 sm:$0xff]  }
 0x2d6   :  { %5485 = vmatpush1.bf16.msra.mxu0 %v7081_v59  ;;  %v7086_v59 = vld [vmem:[#allocation8 + $0x8ac] ss:$24 sps:$4 sm:$0xff]  }
 0x2d7   :  { %5486 = vmatprep.subr.bf16.mxu0 %v7089_v8  ;;  %v7084_v8 = vld [vmem:[#allocation8 + $0x8a8] ss:$24 sps:$4 sm:$0xff]  }
 0x2d8   :  { %5587 = vmatpush1.bf16.msra.mxu1 %v7015_v10  ;;  %v7092_v10 = vld [vmem:[#allocation8 + $0x8dc] ss:$24 sps:$4 sm:$0xff]  }
 0x2d9   :  { %5588 = vmatprep.subr.bf16.mxu1 %v7020_v60  ;;  %v7090_v60 = vld [vmem:[#allocation8 + $0x8d8] ss:$24 sps:$4 sm:$0xff]  }
 0x2da   :  { %5487 = vmatpush1.bf16.msra.mxu0 %v7087_v61  ;;  %v7098_v61 = vld [vmem:[#allocation8 + $0x90c] ss:$24 sps:$4 sm:$0xff]  }
 0x2db   :  { %5488 = vmatprep.subr.bf16.mxu0 %v7095_v62  ;;  %v7096_v62 = vld [vmem:[#allocation8 + $0x908] ss:$24 sps:$4 sm:$0xff]  }
 0x2dc   :  { %5589 = vmatpush1.bf16.msra.mxu1 %v7018_v63  ;;  %v7104_v63 = vld [vmem:[#allocation8 + $0x93c] ss:$24 sps:$4 sm:$0xff]  }
 0x2dd   :  { %5601 = vmatprep.subr.bf16.mxu1 %v7023_v0  ;;  %v7102_v0 = vld [vmem:[#allocation8 + $0x938] ss:$24 sps:$4 sm:$0xff]  }
 0x2de   :  { %5489 = vmatpush1.bf16.msra.mxu0 %v7093_v2  ;;  %v7110_v2 = vld [vmem:[#allocation8 + $0x96c] ss:$24 sps:$4 sm:$0xff]  }
 0x2df   :  { %5591 = vmatmul.mubr.bf16.vlgmr.msra.gmra.mrb[12].mxu1 %v7690_v14  ;;  %5490 = vmatprep.subr.bf16.mxu0 %v7101_v5  ;;  %v7108_v5 = vld [vmem:[#allocation8 + $0x968] ss:$24 sps:$4 sm:$0xff]  }
 0x2e0   :  { %5602 = vmatpush1.bf16.msra.mxu1 %v7021_v6  ;;  %5633 = vmatprep.mubr.bf16.mxu1 %v7679_v13  ;;  %v7116_v6 = vld [vmem:[#allocation8 + $0x99c] ss:$24 sps:$4 sm:$0xff]  }
 0x2e1   :  { %5603 = vmatprep.subr.bf16.mxu1 %v7026_v9  ;;  %v7114_v9 = vld [vmem:[#allocation8 + $0x998] ss:$24 sps:$4 sm:$0xff]  }
 0x2e2   :  { %5491 = vmatpush1.bf16.msra.mxu0 %v7099_v24  ;;  %v7122_v24 = vld [vmem:[#allocation8 + $0x9cc] ss:$24 sps:$4 sm:$0xff]  }
 0x2e3   :  { %5492 = vmatprep.subr.bf16.mxu0 %v7107_v15  ;;  %v503_v15 = vsub.s32 6, %v7646_v18 }
 0x2e4   :  { %5604 = vmatpush1.bf16.msra.mxu1 %v7024_v17  ;;  %v7120_v17 = vld [vmem:[#allocation8 + $0x9c8] ss:$24 sps:$4 sm:$0xff]  }
 0x2e5   :  { %5605 = vmatprep.subr.bf16.mxu1 %v7029_v38  ;;  %v507_v38 = vsub.s32 7, %v7646_v18 }
 0x2e6   :  { %5493 = vmatpush1.bf16.msra.mxu0 %v7105_v19  ;;  %v7128_v19 = vld [vmem:[#allocation8 + $0x9fc] ss:$24 sps:$4 sm:$0xff]  }
 0x2e7   :  { %5494 = vmatprep.subr.bf16.mxu0 %v7113_v20  ;;  %v7367_v20 = vld [vmem:[#allocation7] sm:$0xff] }
 0x2e8   :  { %5606 = vmatpush1.bf16.msra.mxu1 %v7027_v21  ;;  %v504_v21 = vrot.slane %v7367_v20, %v503_v15  ;;  %v7185_v15 = vld [vmem:[#allocation8 + $0x164] ss:$24 sps:$4 sm:$0xff]  }
 0x2e9   :  { %5607 = vmatprep.subr.bf16.mxu1 %v7032_v23  ;;  %v508_v23 = vrot.slane %v7367_v20, %v507_v38  ;;  %v7188_v38 = vld [vmem:[#allocation8 + $0xbdc] ss:$24 sps:$4 sm:$0xff]  }
 0x2ea   :  { %5495 = vmatpush1.bf16.msra.mxu0 %v7111_v26  ;;  %v7126_v26 = vld [vmem:[#allocation8 + $0x9f8] ss:$24 sps:$4 sm:$0xff]   ;;  %v7191_v20 = vld [vmem:[#allocation8 + $0x194] ss:$24 sps:$4 sm:$0xff]  }
 0x2eb   :  { %5496 = vmatprep.subr.bf16.mxu0 %v7119_v27  ;;  %v7134_v27 = vld [vmem:[#allocation8 + $0xa2c] ss:$24 sps:$4 sm:$0xff]  }
 0x2ec   :  { %5608 = vmatpush1.bf16.msra.mxu1 %v7030_v29 }
 0x2ed   :  { %5609 = vmatprep.subr.bf16.mxu1 %v7035_v30 }
 0x2ee   :  { %5497 = vmatpush1.bf16.msra.mxu0 %v7117_v31 }
 0x2ef   :  { %5498 = vmatprep.subr.bf16.mxu0 %v7125_v32 }
 0x2f0   :  { %5610 = vmatpush1.bf16.msra.mxu1 %v7033_v33 }
 0x2f1   :  { %5611 = vmatprep.subr.bf16.mxu1 %v7038_v34  ;;  %v7132_v34 = vld [vmem:[#allocation8 + $0xa28] ss:$24 sps:$4 sm:$0xff]  }
 0x2f2   :  { %5499 = vmatpush1.bf16.msra.mxu0 %v7123_v35 }
 0x2f3   :  { %5500 = vmatprep.subr.bf16.mxu0 %v7131_v28 }
 0x2f4   :  { %5612 = vmatpush1.bf16.msra.mxu1 %v7036_v36  ;;  %v7140_v36 = vld [vmem:[#allocation8 + $0xa5c] ss:$24 sps:$4 sm:$0xff]  }
 0x2f5   :  { %5613 = vmatprep.subr.bf16.mxu1 %v7041_v37 }
 0x2f6   :  { %5501 = vmatpush1.bf16.msra.mxu0 %v7129_v40 }
 0x2f7   :  { %5502 = vmatprep.subr.bf16.mxu0 %v7137_v39 }
 0x2f8   :  { %5614 = vmatpush1.bf16.msra.mxu1 %v7039_v44 }
 0x2f9   :  { %5615 = vmatprep.subr.bf16.mxu1 %v7044_v41 }
 0x2fa   :  { %5503 = vmatpush1.bf16.msra.mxu0 %v7135_v43  ;;  %v7138_v43 = vld [vmem:[#allocation8 + $0xa58] ss:$24 sps:$4 sm:$0xff]  }
 0x2fb   :  { %5687 = vmatprep.subr.bf16.mxu0 %v7143_v45 }
 0x2fc   :  { %5616 = vmatpush1.bf16.msra.mxu1 %v7042_v47 }
 0x2fd   :  { %5617 = vmatprep.subr.bf16.mxu1 %v7050_v48  ;;  %v7141_v48 = vld [vmem:[#allocation8 + $0x10] ss:$24 sps:$4 sm:$0xff]  }
 0x300   :  { %5618 = vmatpush1.bf16.msra.mxu1 %v7048_v3  ;;  %v7146_v3 = vld [vmem:[#allocation8 + $0xa8c] ss:$24 sps:$4 sm:$0xff]  }
 0x301   :  { %5619 = vmatprep.subr.bf16.mxu1 %v7056_v49  ;;  %v7149_v49 = vld [vmem:[#allocation8 + $0x44] ss:$24 sps:$4 sm:$0xff]  }
 0x304   :  { %5620 = vmatpush1.bf16.msra.mxu1 %v7054_v50  ;;  %v7144_v50 = vld [vmem:[#allocation8 + $0xa88] ss:$24 sps:$4 sm:$0xff]  }
 0x305   :  { %5621 = vmatprep.subr.bf16.mxu1 %v7062_v11  ;;  %v7152_v11 = vld [vmem:[#allocation8 + $0xabc] ss:$24 sps:$4 sm:$0xff]  }
 0x308   :  { %5622 = vmatpush1.bf16.msra.mxu1 %v7060_v52  ;;  %v7147_v52 = vld [vmem:[#allocation8 + $0x40] ss:$24 sps:$4 sm:$0xff]  }
 0x309   :  { %5623 = vmatprep.subr.bf16.mxu1 %v7068_v53  ;;  %v7155_v53 = vld [vmem:[#allocation8 + $0x74] ss:$24 sps:$4 sm:$0xff]  }
 0x30c   :  { %5624 = vmatpush1.bf16.msra.mxu1 %v7066_v54  ;;  %v7150_v54 = vld [vmem:[#allocation8 + $0xab8] ss:$24 sps:$4 sm:$0xff]  }
 0x30d   :  { %5625 = vmatprep.subr.bf16.mxu1 %v7074_v1  ;;  %v7158_v1 = vld [vmem:[#allocation8 + $0xaec] ss:$24 sps:$4 sm:$0xff]  }
 0x310   :  { %5626 = vmatpush1.bf16.msra.mxu1 %v7072_v55  ;;  %v7153_v55 = vld [vmem:[#allocation8 + $0x70] ss:$24 sps:$4 sm:$0xff]  }
 0x311   :  { %5627 = vmatprep.subr.bf16.mxu1 %v7080_v56  ;;  %v7161_v56 = vld [vmem:[#allocation8 + $0xa4] ss:$24 sps:$4 sm:$0xff]  }
 0x314   :  { %5628 = vmatpush1.bf16.msra.mxu1 %v7078_v57  ;;  %v7156_v57 = vld [vmem:[#allocation8 + $0xae8] ss:$24 sps:$4 sm:$0xff]  }
 0x315   :  { %5629 = vmatprep.subr.bf16.mxu1 %v7086_v59  ;;  %v7164_v59 = vld [vmem:[#allocation8 + $0xb1c] ss:$24 sps:$4 sm:$0xff]  }
 0x318   :  { %5630 = vmatpush1.bf16.msra.mxu1 %v7084_v8  ;;  %v7159_v8 = vld [vmem:[#allocation8 + $0xa0] ss:$24 sps:$4 sm:$0xff]  }
 0x319   :  { %5631 = vmatprep.subr.bf16.mxu1 %v7092_v10  ;;  %v7162_v10 = vld [vmem:[#allocation8 + $0xb18] ss:$24 sps:$4 sm:$0xff]  }
 0x31c   :  { %5632 = vmatpush1.bf16.msra.mxu1 %v7090_v60  ;;  %v7170_v60 = vld [vmem:[#allocation8 + $0xb4c] ss:$24 sps:$4 sm:$0xff]  }
 0x31d   :  { %5644 = vmatprep.subr.bf16.mxu1 %v7098_v61  ;;  %v7165_v61 = vld [vmem:[#allocation8 + $0xd0] ss:$24 sps:$4 sm:$0xff]  }
 0x31f   :  { %5634 = vmatmul.mubr.bf16.vlgmr.msra.gmra.mrb[12].mxu1 %v7677_v7 }
 0x320   :  { %5645 = vmatpush1.bf16.msra.mxu1 %v7096_v62  ;;  %v7173_v62 = vld [vmem:[#allocation8 + $0x104] ss:$24 sps:$4 sm:$0xff]  }
 0x321   :  { %5646 = vmatprep.subr.bf16.mxu1 %v7104_v63  ;;  %v7168_v63 = vld [vmem:[#allocation8 + $0xb48] ss:$24 sps:$4 sm:$0xff]  }
 0x324   :  { %5647 = vmatpush1.bf16.msra.mxu1 %v7102_v0  ;;  %v7176_v0 = vld [vmem:[#allocation8 + $0xb7c] ss:$24 sps:$4 sm:$0xff]  }
 0x325   :  { %5648 = vmatprep.subr.bf16.mxu1 %v7110_v2  ;;  %v7171_v2 = vld [vmem:[#allocation8 + $0x100] ss:$24 sps:$4 sm:$0xff]  }
 0x328   :  { %5649 = vmatpush1.bf16.msra.mxu1 %v7108_v5  ;;  %v7179_v5 = vld [vmem:[#allocation8 + $0x134] ss:$24 sps:$4 sm:$0xff]  }
 0x329   :  { %5650 = vmatprep.subr.bf16.mxu1 %v7116_v6  ;;  %v7174_v6 = vld [vmem:[#allocation8 + $0xb78] ss:$24 sps:$4 sm:$0xff]  }
 0x32c   :  { %5651 = vmatpush1.bf16.msra.mxu1 %v7114_v9  ;;  %v7182_v9 = vld [vmem:[#allocation8 + $0xbac] ss:$24 sps:$4 sm:$0xff]  }
 0x32d   :  { %5652 = vmatprep.subr.bf16.mxu1 %v7122_v24  ;;  %v7177_v24 = vld [vmem:[#allocation8 + $0x130] ss:$24 sps:$4 sm:$0xff]  }
 0x330   :  { %5653 = vmatpush1.bf16.msra.mxu1 %v7120_v17  ;;  %v7180_v17 = vld [vmem:[#allocation8 + $0xba8] ss:$24 sps:$4 sm:$0xff]  }
 0x331   :  { %5654 = vmatprep.subr.bf16.mxu1 %v7128_v19  ;;  %v7183_v19 = vld [vmem:[#allocation8 + $0x160] ss:$24 sps:$4 sm:$0xff]  }
 0x332   :  { %v2974_v29 = vpop.f32.mrb[8].mxu1 }
 0x333   :  { %v6680_v30 = vadd.f32 %v2974_v29, %v504_v21  ;;  %v2976_v31 = vpop.f32.mrb[9].mxu1  ;;  %v7197_v29 = vld [vmem:[#allocation8 + $0x1f4] ss:$24 sps:$4 sm:$0xff]  }
 0x334   :  { %v6681_v32 = vadd.f32 %v2976_v31, %v508_v23  ;;  %v2978_v33 = vpop.f32.mrb[10].mxu1  ;;  %5655 = vmatpush1.bf16.msra.mxu1 %v7126_v26  ;;  %v7194_v26 = vld [vmem:[#allocation8 + $0x1c4] ss:$24 sps:$4 sm:$0xff]  }
 0x335   :  { %v6682_v35 = vadd.f32 %v2978_v33, %v504_v21  ;;  %v2980_v28 = vpop.f32.mrb[11].mxu1  ;;  %5656 = vmatprep.subr.bf16.mxu1 %v7134_v27  ;;  %v2989_v40 = vmax.f32 %v6680_v30, 0.0  ;;  %v7186_v21 = vld [vmem:[#allocation8 + $0xbd8] ss:$24 sps:$4 sm:$0xff]   ;;  %v7200_v31 = vld [vmem:[#allocation8 + $0x224] ss:$24 sps:$4 sm:$0xff]  }
 0x336   :  { %v6683_v37 = vadd.f32 %v2980_v28, %v508_v23  ;;  %v2990_v44 = vmax.f32 %v6681_v32, 0.0  ;;  %v7189_v23 = vld [vmem:[#allocation8 + $0x190] ss:$24 sps:$4 sm:$0xff]   ;;  %v7192_v27 = vld [vmem:[#allocation8 + $0x1c0] ss:$24 sps:$4 sm:$0xff]  }
 0x337   :  { %v2997_v39 = vmax.f32 %v6682_v35, 0.0  ;;  %v7195_v30 = vld [vmem:[#allocation8 + $0x1f0] ss:$24 sps:$4 sm:$0xff]   ;;  %v7198_v32 = vld [vmem:[#allocation8 + $0x220] ss:$24 sps:$4 sm:$0xff]  }
 0x338   :  { %v2998_v41 = vmax.f32 %v6683_v37, 0.0  ;;  %5657 = vmatpush1.bf16.msra.mxu1 %v7132_v34  ;;  %v7203_v33 = vld [vmem:[#allocation8 + $0x254] ss:$24 sps:$4 sm:$0xff]   ;;  %v7201_v34 = vld [vmem:[#allocation8 + $0x250] ss:$24 sps:$4 sm:$0xff]  }
 0x339   :  { %v7705_v45 = vpack.c.bf16 %v2997_v39, %v2989_v40  ;;  %5658 = vmatprep.subr.bf16.mxu1 %v7140_v36  ;;  %v7206_v35 = vld [vmem:[#allocation8 + $0x284] ss:$24 sps:$4 sm:$0xff]   ;;  %v7204_v28 = vld [vmem:[#allocation8 + $0x280] ss:$24 sps:$4 sm:$0xff]   ;;  %v7209_v36 = vld [vmem:[#allocation8 + $0x2b4] ss:$24 sps:$4 sm:$0xff]  }
 0x33a   :  { %v7707_v47 = vpack.c.bf16 %v2998_v41, %v2990_v44  ;;  %v7207_v37 = vld [vmem:[#allocation8 + $0x2b0] ss:$24 sps:$4 sm:$0xff]   ;;  %v7212_v40 = vld [vmem:[#allocation8 + $0x2e4] ss:$24 sps:$4 sm:$0xff]   ;;  %v7210_v39 = vld [vmem:[#allocation8 + $0x2e0] ss:$24 sps:$4 sm:$0xff]  }
 0x33b   :  { %v7215_v44 = vld [vmem:[#allocation8 + $0x314] ss:$24 sps:$4 sm:$0xff]   ;;  %v7213_v41 = vld [vmem:[#allocation8 + $0x310] ss:$24 sps:$4 sm:$0xff]  }
 0x33c   :  { %5504 = vmatprep.mubr.bf16.mxu0 %v7707_v47  ;;  %5659 = vmatpush1.bf16.msra.mxu1 %v7138_v43  ;;  %v7218_v43 = vld [vmem:[#allocation8 + $0x344] ss:$24 sps:$4 sm:$0xff]  }
 0x33d   :  { %5676 = vmatprep.mubr.bf16.mxu1 %v7707_v47  ;;  %5505 = vmatmul.mubr.bf16.vlgmr.msra.gmra.mrb[8].mxu0 %v7705_v45 }
 0x33e   :  { %5688 = vmatpush1.bf16.msra.mxu0 %v7141_v48  ;;  %5719 = vmatprep.mubr.bf16.mxu0 %v7664_v4  ;;  %v7167_v4 = vld [vmem:[#allocation8 + $0xd4] ss:$24 sps:$4 sm:$0xff]   ;;  %v7216_v48 = vld [vmem:[#allocation8 + $0x340] ss:$24 sps:$4 sm:$0xff]  }
 0x33f   :  { %5660 = vmatprep.subr.bf16.mxu1 %v7146_v3  ;;  %5689 = vmatprep.subr.bf16.mxu0 %v7149_v49  ;;  %v7221_v3 = vld [vmem:[#allocation8 + $0x374] ss:$24 sps:$4 sm:$0xff]   ;;  %v7219_v49 = vld [vmem:[#allocation8 + $0x370] ss:$24 sps:$4 sm:$0xff]  }
 0x340   :  { %5661 = vmatpush1.bf16.msra.mxu1 %v7144_v50  ;;  %v7224_v50 = vld [vmem:[#allocation8 + $0x3a4] ss:$24 sps:$4 sm:$0xff]  }
 0x341   :  { %5662 = vmatprep.subr.bf16.mxu1 %v7152_v11  ;;  %v7222_v11 = vld [vmem:[#allocation8 + $0x3a0] ss:$24 sps:$4 sm:$0xff]  }
 0x342   :  { %5690 = vmatpush1.bf16.msra.mxu0 %v7147_v52  ;;  %v7227_v52 = vld [vmem:[#allocation8 + $0x3d4] ss:$24 sps:$4 sm:$0xff]  }
 0x343   :  { %5691 = vmatprep.subr.bf16.mxu0 %v7155_v53  ;;  %v7225_v53 = vld [vmem:[#allocation8 + $0x3d0] ss:$24 sps:$4 sm:$0xff]  }
 0x344   :  { %5663 = vmatpush1.bf16.msra.mxu1 %v7150_v54  ;;  %v7230_v54 = vld [vmem:[#allocation8 + $0x404] ss:$24 sps:$4 sm:$0xff]  }
 0x345   :  { %5664 = vmatprep.subr.bf16.mxu1 %v7158_v1  ;;  %v7233_v1 = vld [vmem:[#allocation8 + $0x434] ss:$24 sps:$4 sm:$0xff]  }
 0x346   :  { %5692 = vmatpush1.bf16.msra.mxu0 %v7153_v55  ;;  %v7236_v55 = vld [vmem:[#allocation8 + $0x464] ss:$24 sps:$4 sm:$0xff]  }
 0x347   :  { %5693 = vmatprep.subr.bf16.mxu0 %v7161_v56  ;;  %v7234_v56 = vld [vmem:[#allocation8 + $0x460] ss:$24 sps:$4 sm:$0xff]  }
 0x348   :  { %5665 = vmatpush1.bf16.msra.mxu1 %v7156_v57  ;;  %v7239_v57 = vld [vmem:[#allocation8 + $0x494] ss:$24 sps:$4 sm:$0xff]  }
 0x349   :  { %5666 = vmatprep.subr.bf16.mxu1 %v7164_v59  ;;  %v7237_v59 = vld [vmem:[#allocation8 + $0x490] ss:$24 sps:$4 sm:$0xff]  }
 0x34a   :  { %5694 = vmatpush1.bf16.msra.mxu0 %v7159_v8  ;;  %v7242_v8 = vld [vmem:[#allocation8 + $0x4c4] ss:$24 sps:$4 sm:$0xff]  }
 0x34b   :  { %5695 = vmatprep.subr.bf16.mxu0 %v7167_v4  ;;  %v7240_v4 = vld [vmem:[#allocation8 + $0x4c0] ss:$24 sps:$4 sm:$0xff]  }
 0x34c   :  { %5667 = vmatpush1.bf16.msra.mxu1 %v7162_v10  ;;  %v7245_v10 = vld [vmem:[#allocation8 + $0x4f4] ss:$24 sps:$4 sm:$0xff]  }
 0x34d   :  { %5668 = vmatprep.subr.bf16.mxu1 %v7170_v60  ;;  %v7243_v60 = vld [vmem:[#allocation8 + $0x4f0] ss:$24 sps:$4 sm:$0xff]  }
 0x34e   :  { %5696 = vmatpush1.bf16.msra.mxu0 %v7165_v61  ;;  %v7248_v61 = vld [vmem:[#allocation8 + $0x524] ss:$24 sps:$4 sm:$0xff]  }
 0x34f   :  { %5697 = vmatprep.subr.bf16.mxu0 %v7173_v62  ;;  %v7246_v62 = vld [vmem:[#allocation8 + $0x520] ss:$24 sps:$4 sm:$0xff]  }
 0x350   :  { %5669 = vmatpush1.bf16.msra.mxu1 %v7168_v63  ;;  %v7251_v63 = vld [vmem:[#allocation8 + $0x554] ss:$24 sps:$4 sm:$0xff]  }
 0x351   :  { %5670 = vmatprep.subr.bf16.mxu1 %v7176_v0  ;;  %v7249_v0 = vld [vmem:[#allocation8 + $0x550] ss:$24 sps:$4 sm:$0xff]  }
 0x352   :  { %5698 = vmatpush1.bf16.msra.mxu0 %v7171_v2  ;;  %v7254_v2 = vld [vmem:[#allocation8 + $0x584] ss:$24 sps:$4 sm:$0xff]  }
 0x353   :  { %5699 = vmatprep.subr.bf16.mxu0 %v7179_v5  ;;  %v7252_v5 = vld [vmem:[#allocation8 + $0x580] ss:$24 sps:$4 sm:$0xff]  }
 0x354   :  { %5671 = vmatpush1.bf16.msra.mxu1 %v7174_v6  ;;  %v7257_v6 = vld [vmem:[#allocation8 + $0x5b4] ss:$24 sps:$4 sm:$0xff]  }
 0x355   :  { %5672 = vmatprep.subr.bf16.mxu1 %v7182_v9  ;;  %v7255_v9 = vld [vmem:[#allocation8 + $0x5b0] ss:$24 sps:$4 sm:$0xff]  }
 0x356   :  { %5700 = vmatpush1.bf16.msra.mxu0 %v7177_v24  ;;  %v7260_v24 = vld [vmem:[#allocation8 + $0x5e4] ss:$24 sps:$4 sm:$0xff]  }
 0x357   :  { %5701 = vmatprep.subr.bf16.mxu0 %v7185_v15  ;;  %v7258_v15 = vld [vmem:[#allocation8 + $0x5e0] ss:$24 sps:$4 sm:$0xff]  }
 0x358   :  { %5673 = vmatpush1.bf16.msra.mxu1 %v7180_v17  ;;  %v7263_v17 = vld [vmem:[#allocation8 + $0x614] ss:$24 sps:$4 sm:$0xff]  }
 0x359   :  { %5674 = vmatprep.subr.bf16.mxu1 %v7188_v38  ;;  %v7261_v38 = vld [vmem:[#allocation8 + $0x610] ss:$24 sps:$4 sm:$0xff]  }
 0x35a   :  { %5702 = vmatpush1.bf16.msra.mxu0 %v7183_v19  ;;  %v7266_v19 = vld [vmem:[#allocation8 + $0x644] ss:$24 sps:$4 sm:$0xff]  }
 0x35b   :  { %5703 = vmatprep.subr.bf16.mxu0 %v7191_v20  ;;  %v7264_v20 = vld [vmem:[#allocation8 + $0x640] ss:$24 sps:$4 sm:$0xff]  }
 0x35c   :  { %5675 = vmatpush1.bf16.msra.mxu1 %v7186_v21  ;;  %v7269_v21 = vld [vmem:[#allocation8 + $0x674] ss:$24 sps:$4 sm:$0xff]  }
 0x35e   :  { %5704 = vmatpush1.bf16.msra.mxu0 %v7189_v23  ;;  %v7267_v23 = vld [vmem:[#allocation8 + $0x670] ss:$24 sps:$4 sm:$0xff]  }
 0x35f   :  { %5677 = vmatmul.mubr.bf16.vlgmr.msra.gmra.mrb[12].mxu1 %v7705_v45  ;;  %5705 = vmatprep.subr.bf16.mxu0 %v7194_v26  ;;  %v7272_v26 = vld [vmem:[#allocation8 + $0x6a4] ss:$24 sps:$4 sm:$0xff]  }
 0x362   :  { %5706 = vmatpush1.bf16.msra.mxu0 %v7192_v27  ;;  %v7270_v27 = vld [vmem:[#allocation8 + $0x6a0] ss:$24 sps:$4 sm:$0xff]  }
 0x363   :  { %5707 = vmatprep.subr.bf16.mxu0 %v7197_v29  ;;  %v7275_v29 = vld [vmem:[#allocation8 + $0x6d4] ss:$24 sps:$4 sm:$0xff]  }
 0x366   :  { %5708 = vmatpush1.bf16.msra.mxu0 %v7195_v30  ;;  %v7273_v30 = vld [vmem:[#allocation8 + $0x6d0] ss:$24 sps:$4 sm:$0xff]  }
 0x367   :  { %5709 = vmatprep.subr.bf16.mxu0 %v7200_v31  ;;  %v7278_v31 = vld [vmem:[#allocation8 + $0x704] ss:$24 sps:$4 sm:$0xff]  }
 0x36a   :  { %5710 = vmatpush1.bf16.msra.mxu0 %v7198_v32  ;;  %v7281_v32 = vld [vmem:[#allocation8 + $0x734] ss:$24 sps:$4 sm:$0xff]  }
 0x36b   :  { %5711 = vmatprep.subr.bf16.mxu0 %v7203_v33  ;;  %v7284_v33 = vld [vmem:[#allocation8 + $0x764] ss:$24 sps:$4 sm:$0xff]  }
 0x36e   :  { %5712 = vmatpush1.bf16.msra.mxu0 %v7201_v34  ;;  %v7282_v34 = vld [vmem:[#allocation8 + $0x760] ss:$24 sps:$4 sm:$0xff]  }
 0x36f   :  { %5713 = vmatprep.subr.bf16.mxu0 %v7206_v35  ;;  %v7287_v35 = vld [vmem:[#allocation8 + $0x794] ss:$24 sps:$4 sm:$0xff]  }
 0x372   :  { %5714 = vmatpush1.bf16.msra.mxu0 %v7204_v28  ;;  %v7285_v28 = vld [vmem:[#allocation8 + $0x790] ss:$24 sps:$4 sm:$0xff]  }
 0x373   :  { %5715 = vmatprep.subr.bf16.mxu0 %v7209_v36  ;;  %v7290_v36 = vld [vmem:[#allocation8 + $0x7c4] ss:$24 sps:$4 sm:$0xff]  }
 0x376   :  { %5716 = vmatpush1.bf16.msra.mxu0 %v7207_v37  ;;  %v7288_v37 = vld [vmem:[#allocation8 + $0x7c0] ss:$24 sps:$4 sm:$0xff]  }
 0x377   :  { %5717 = vmatprep.subr.bf16.mxu0 %v7212_v40  ;;  %v7293_v40 = vld [vmem:[#allocation8 + $0x7f4] ss:$24 sps:$4 sm:$0xff]  }
 0x37a   :  { %5718 = vmatpush1.bf16.msra.mxu0 %v7210_v39  ;;  %v7291_v39 = vld [vmem:[#allocation8 + $0x7f0] ss:$24 sps:$4 sm:$0xff]  }
 0x37b   :  { %5730 = vmatprep.subr.bf16.mxu0 %v7215_v44  ;;  %v7296_v44 = vld [vmem:[#allocation8 + $0x824] ss:$24 sps:$4 sm:$0xff]  }
 0x37d   :  { %5720 = vmatmul.mubr.bf16.vlgmr.msra.gmra.mrb[12].mxu0 %v7662_v58  ;;  %v7228_v58 = vld [vmem:[#allocation8 + $0x400] ss:$24 sps:$4 sm:$0xff]  }
 0x37e   :  { %5731 = vmatpush1.bf16.msra.mxu0 %v7213_v41  ;;  %5762 = vmatprep.mubr.bf16.mxu0 %v7692_v16  ;;  %v7231_v16 = vld [vmem:[#allocation8 + $0x430] ss:$24 sps:$4 sm:$0xff]   ;;  %v7294_v41 = vld [vmem:[#allocation8 + $0x820] ss:$24 sps:$4 sm:$0xff]  }
 0x37f   :  { %5732 = vmatprep.subr.bf16.mxu0 %v7218_v43  ;;  %v7299_v43 = vld [vmem:[#allocation8 + $0x854] ss:$24 sps:$4 sm:$0xff]  }
 0x382   :  { %5733 = vmatpush1.bf16.msra.mxu0 %v7216_v48  ;;  %v7297_v48 = vld [vmem:[#allocation8 + $0x850] ss:$24 sps:$4 sm:$0xff]  }
 0x383   :  { %5734 = vmatprep.subr.bf16.mxu0 %v7221_v3  ;;  %v7302_v3 = vld [vmem:[#allocation8 + $0x884] ss:$24 sps:$4 sm:$0xff]  }
 0x386   :  { %5735 = vmatpush1.bf16.msra.mxu0 %v7219_v49  ;;  %v7300_v49 = vld [vmem:[#allocation8 + $0x880] ss:$24 sps:$4 sm:$0xff]  }
 0x387   :  { %5736 = vmatprep.subr.bf16.mxu0 %v7224_v50  ;;  %v7305_v50 = vld [vmem:[#allocation8 + $0x8b4] ss:$24 sps:$4 sm:$0xff]  }
 0x38a   :  { %5737 = vmatpush1.bf16.msra.mxu0 %v7222_v11  ;;  %v7303_v11 = vld [vmem:[#allocation8 + $0x8b0] ss:$24 sps:$4 sm:$0xff]  }
 0x38b   :  { %5738 = vmatprep.subr.bf16.mxu0 %v7227_v52  ;;  %v7308_v52 = vld [vmem:[#allocation8 + $0x8e4] ss:$24 sps:$4 sm:$0xff]  }
 0x38e   :  { %5739 = vmatpush1.bf16.msra.mxu0 %v7225_v53  ;;  %v7306_v53 = vld [vmem:[#allocation8 + $0x8e0] ss:$24 sps:$4 sm:$0xff]  }
 0x38f   :  { %5740 = vmatprep.subr.bf16.mxu0 %v7230_v54  ;;  %v7311_v54 = vld [vmem:[#allocation8 + $0x914] ss:$24 sps:$4 sm:$0xff]  }
 0x392   :  { %5741 = vmatpush1.bf16.msra.mxu0 %v7228_v58  ;;  %v7309_v58 = vld [vmem:[#allocation8 + $0x910] ss:$24 sps:$4 sm:$0xff]  }
 0x393   :  { %5742 = vmatprep.subr.bf16.mxu0 %v7233_v1  ;;  %v7314_v1 = vld [vmem:[#allocation8 + $0x944] ss:$24 sps:$4 sm:$0xff]  }
 0x396   :  { %5743 = vmatpush1.bf16.msra.mxu0 %v7231_v16  ;;  %v7312_v16 = vld [vmem:[#allocation8 + $0x940] ss:$24 sps:$4 sm:$0xff]  }
 0x397   :  { %5744 = vmatprep.subr.bf16.mxu0 %v7236_v55  ;;  %v7317_v55 = vld [vmem:[#allocation8 + $0x974] ss:$24 sps:$4 sm:$0xff]  }
 0x39a   :  { %5745 = vmatpush1.bf16.msra.mxu0 %v7234_v56  ;;  %v7315_v56 = vld [vmem:[#allocation8 + $0x970] ss:$24 sps:$4 sm:$0xff]  }
 0x39b   :  { %5746 = vmatprep.subr.bf16.mxu0 %v7239_v57  ;;  %v7320_v57 = vld [vmem:[#allocation8 + $0x9a4] ss:$24 sps:$4 sm:$0xff]  }
 0x39e   :  { %5747 = vmatpush1.bf16.msra.mxu0 %v7237_v59  ;;  %v7318_v59 = vld [vmem:[#allocation8 + $0x9a0] ss:$24 sps:$4 sm:$0xff]  }
 0x39f   :  { %5748 = vmatprep.subr.bf16.mxu0 %v7242_v8  ;;  %v7323_v8 = vld [vmem:[#allocation8 + $0x9d4] ss:$24 sps:$4 sm:$0xff]  }
 0x3a2   :  { %5749 = vmatpush1.bf16.msra.mxu0 %v7240_v4  ;;  %v7321_v4 = vld [vmem:[#allocation8 + $0x9d0] ss:$24 sps:$4 sm:$0xff]  }
 0x3a3   :  { %5750 = vmatprep.subr.bf16.mxu0 %v7245_v10  ;;  %v7720_v10 = vld [vmem:[#allocation10] sm:$0x3f] }
 0x3a6   :  { %5751 = vmatpush1.bf16.msra.mxu0 %v7243_v60  ;;  %v7324_v60 = vld [vmem:[#allocation8 + $0xa00] ss:$24 sps:$4 sm:$0xff]  }
 0x3a7   :  { %5752 = vmatprep.subr.bf16.mxu0 %v7248_v61  ;;  %v3400_v61 = vrot.slane %v7720_v10, %v483_v25  ;;  %v7330_v25 = vld [vmem:[#allocation8 + $0xa60] ss:$24 sps:$4 sm:$0xff]  }
 0x3aa   :  { %5753 = vmatpush1.bf16.msra.mxu0 %v7246_v62  ;;  %v7329_v62 = vld [vmem:[#allocation8 + $0xa34] ss:$24 sps:$4 sm:$0xff]  }
 0x3ab   :  { %5754 = vmatprep.subr.bf16.mxu0 %v7251_v63 }
 0x3ae   :  { %5755 = vmatpush1.bf16.msra.mxu0 %v7249_v0 }
 0x3af   :  { %5756 = vmatprep.subr.bf16.mxu0 %v7254_v2 }
 0x3b2   :  { %5757 = vmatpush1.bf16.msra.mxu0 %v7252_v5 }
 0x3b3   :  { %5758 = vmatprep.subr.bf16.mxu0 %v7257_v6 }
 0x3b6   :  { %5759 = vmatpush1.bf16.msra.mxu0 %v7255_v9  ;;  %v7327_v9 = vld [vmem:[#allocation8 + $0xa30] ss:$24 sps:$4 sm:$0xff]  }
 0x3b7   :  { %5760 = vmatprep.subr.bf16.mxu0 %v7260_v24 }
 0x3ba   :  { %5761 = vmatpush1.bf16.msra.mxu0 %v7258_v15 }
 0x3bb   :  { %5773 = vmatprep.subr.bf16.mxu0 %v7263_v17 }
 0x3bd   :  { %5763 = vmatmul.mubr.bf16.vlgmr.msra.gmra.mrb[12].mxu0 %v7690_v14  ;;  %v7276_v14 = vld [vmem:[#allocation8 + $0x700] ss:$24 sps:$4 sm:$0xff]  }
 0x3be   :  { %5774 = vmatpush1.bf16.msra.mxu0 %v7261_v38  ;;  %5805 = vmatprep.mubr.bf16.mxu0 %v7679_v13  ;;  %v7279_v13 = vld [vmem:[#allocation8 + $0x730] ss:$24 sps:$4 sm:$0xff]   ;;  %v7335_v38 = vld [vmem:[#allocation8 + $0xa94] ss:$24 sps:$4 sm:$0xff]  }
 0x3bf   :  { %5775 = vmatprep.subr.bf16.mxu0 %v7266_v19  ;;  %v7333_v19 = vld [vmem:[#allocation8 + $0xa90] ss:$24 sps:$4 sm:$0xff]  }
 0x3c2   :  { %5776 = vmatpush1.bf16.msra.mxu0 %v7264_v20  ;;  %v7338_v20 = vld [vmem:[#allocation8 + $0xac4] ss:$24 sps:$4 sm:$0xff]  }
 0x3c3   :  { %5777 = vmatprep.subr.bf16.mxu0 %v7269_v21  ;;  %v7336_v21 = vld [vmem:[#allocation8 + $0xac0] ss:$24 sps:$4 sm:$0xff]  }
 0x3c6   :  { %5778 = vmatpush1.bf16.msra.mxu0 %v7267_v23  ;;  %v7341_v23 = vld [vmem:[#allocation8 + $0xaf4] ss:$24 sps:$4 sm:$0xff]  }
 0x3c7   :  { %5779 = vmatprep.subr.bf16.mxu0 %v7272_v26  ;;  %v7339_v26 = vld [vmem:[#allocation8 + $0xaf0] ss:$24 sps:$4 sm:$0xff]  }
 0x3ca   :  { %5780 = vmatpush1.bf16.msra.mxu0 %v7270_v27  ;;  %v7344_v27 = vld [vmem:[#allocation8 + $0xb24] ss:$24 sps:$4 sm:$0xff]  }
 0x3cb   :  { %5781 = vmatprep.subr.bf16.mxu0 %v7275_v29  ;;  %v7342_v29 = vld [vmem:[#allocation8 + $0xb20] ss:$24 sps:$4 sm:$0xff]  }
 0x3ce   :  { %5782 = vmatpush1.bf16.msra.mxu0 %v7273_v30  ;;  %v7347_v30 = vld [vmem:[#allocation8 + $0xb54] ss:$24 sps:$4 sm:$0xff]  }
 0x3cf   :  { %5783 = vmatprep.subr.bf16.mxu0 %v7278_v31  ;;  %v7345_v31 = vld [vmem:[#allocation8 + $0xb50] ss:$24 sps:$4 sm:$0xff]  }
 0x3d2   :  { %5784 = vmatpush1.bf16.msra.mxu0 %v7276_v14  ;;  %v7350_v14 = vld [vmem:[#allocation8 + $0xb84] ss:$24 sps:$4 sm:$0xff]  }
 0x3d3   :  { %5785 = vmatprep.subr.bf16.mxu0 %v7281_v32  ;;  %v7348_v32 = vld [vmem:[#allocation8 + $0xb80] ss:$24 sps:$4 sm:$0xff]  }
 0x3d6   :  { %5786 = vmatpush1.bf16.msra.mxu0 %v7279_v13  ;;  %v3404_v13 = vrot.slane %v7720_v10, %v487_v51  ;;  %v7354_v51 = vld [vmem:[#allocation8 + $0xbe0] ss:$24 sps:$4 sm:$0xff]  }
 0x3d7   :  { %5787 = vmatprep.subr.bf16.mxu0 %v7284_v33  ;;  %v7353_v33 = vld [vmem:[#allocation8 + $0xbb4] ss:$24 sps:$4 sm:$0xff]  }
 0x3da   :  { %5788 = vmatpush1.bf16.msra.mxu0 %v7282_v34  ;;  %v3408_v34 = vrot.slane %v7720_v10, %v491_v12  ;;  %v3412_v12 = vrot.slane %v7720_v10, %v495_v42 }
 0x3db   :  { %5789 = vmatprep.subr.bf16.mxu0 %v7287_v35 }
 0x3de   :  { %5790 = vmatpush1.bf16.msra.mxu0 %v7285_v28  ;;  %v7351_v28 = vld [vmem:[#allocation8 + $0xbb0] ss:$24 sps:$4 sm:$0xff]  }
 0x3df   :  { %5791 = vmatprep.subr.bf16.mxu0 %v7290_v36 }
 0x3e2   :  { %5792 = vmatpush1.bf16.msra.mxu0 %v7288_v37 }
 0x3e3   :  { %5793 = vmatprep.subr.bf16.mxu0 %v7293_v40  ;;  %v7356_v40 = vld [vmem:[#allocation8 + $0xbe4] ss:$24 sps:$4 sm:$0xff]  }
 0x3e6   :  { %5794 = vmatpush1.bf16.msra.mxu0 %v7291_v39 }
 0x3e7   :  { %5795 = vmatprep.subr.bf16.mxu0 %v7296_v44 }
 0x3ea   :  { %5796 = vmatpush1.bf16.msra.mxu0 %v7294_v41 }
 0x3eb   :  { %5797 = vmatprep.subr.bf16.mxu0 %v7299_v43 }
 0x3ee   :  { %5798 = vmatpush1.bf16.msra.mxu0 %v7297_v48 }
 0x3ef   :  { %5799 = vmatprep.subr.bf16.mxu0 %v7302_v3  ;;  %v3416_v3 = vrot.slane %v7720_v10, %v499_v46 }
 0x3f2   :  { %5800 = vmatpush1.bf16.msra.mxu0 %v7300_v49 }
 0x3f3   :  { %5801 = vmatprep.subr.bf16.mxu0 %v7305_v50 }
 0x3f6   :  { %5802 = vmatpush1.bf16.msra.mxu0 %v7303_v11 }
 0x3f7   :  { %5803 = vmatprep.subr.bf16.mxu0 %v7308_v52 }
 0x3fa   :  { %5804 = vmatpush1.bf16.msra.mxu0 %v7306_v53 }
 0x3fb   :  { %5816 = vmatprep.subr.bf16.mxu0 %v7311_v54 }
 0x3fd   :  { %5806 = vmatmul.mubr.bf16.vlgmr.msra.gmra.mrb[12].mxu0 %v7677_v7  ;;  %v7326_v7 = vld [vmem:[#allocation8 + $0xa04] ss:$24 sps:$4 sm:$0xff]  }
 0x3fe   :  { %5817 = vmatpush1.bf16.msra.mxu0 %v7309_v58  ;;  %5848 = vmatprep.mubr.bf16.mxu0 %v7707_v47  ;;  %v3396_v47 = vrot.slane %v7720_v10, %v479_v22  ;;  %v7332_v22 = vld [vmem:[#allocation8 + $0xa64] ss:$24 sps:$4 sm:$0xff]  }
 0x3ff   :  { %5818 = vmatprep.subr.bf16.mxu0 %v7314_v1 }
 0x402   :  { %5819 = vmatpush1.bf16.msra.mxu0 %v7312_v16 }
 0x403   :  { %5820 = vmatprep.subr.bf16.mxu0 %v7317_v55 }
 0x406   :  { %5821 = vmatpush1.bf16.msra.mxu0 %v7315_v56 }
 0x407   :  { %5822 = vmatprep.subr.bf16.mxu0 %v7320_v57 }
 0x40a   :  { %5823 = vmatpush1.bf16.msra.mxu0 %v7318_v59 }
 0x40b   :  { %5824 = vmatprep.subr.bf16.mxu0 %v7323_v8 }
 0x40e   :  { %5825 = vmatpush1.bf16.msra.mxu0 %v7321_v4 }
 0x40f   :  { %5826 = vmatprep.subr.bf16.mxu0 %v7326_v7 }
 0x410   :  { %v5506_v63 = vpop.f32.mrb[8].mxu0 }
 0x411   :  { %v6684_v0 = vadd.f32 %v5506_v63, %v3396_v47  ;;  %v5508_v2 = vpop.f32.mrb[9].mxu0 }
 0x412   :  { %v6685_v5 = vadd.f32 %v5508_v2, %v3400_v61  ;;  %5827 = vmatpush1.bf16.msra.mxu0 %v7324_v60  ;;  %v5510_v6 = vpop.f32.mrb[10].mxu0 }
 0x413   :  { %5859 = vst [vmem:[#allocation11] sm:$0xff] %v6684_v0  ;;  %v6686_v24 = vadd.f32 %v5510_v6, %v3396_v47  ;;  %v5512_v15 = vpop.f32.mrb[11].mxu0  ;;  %5828 = vmatprep.subr.bf16.mxu0 %v7329_v62 }
 0x414   :  { %5860 = vst [vmem:[#allocation11 + $0x8] sm:$0xff] %v6685_v5  ;;  %v6687_v17 = vadd.f32 %v5512_v15, %v3400_v61 }
 0x415   :  { %5865 = vst [vmem:[#allocation11 + $0x30] sm:$0xff] %v6686_v24 }
 0x416   :  { %5866 = vst [vmem:[#allocation11 + $0x38] sm:$0xff] %v6687_v17  ;;  %5829 = vmatpush1.bf16.msra.mxu0 %v7327_v9 }
 0x417   :  { %5830 = vmatprep.subr.bf16.mxu0 %v7332_v22 }
 0x41a   :  { %5831 = vmatpush1.bf16.msra.mxu0 %v7330_v25 }
 0x41b   :  { %5832 = vmatprep.subr.bf16.mxu0 %v7335_v38 }
 0x41e   :  { %5833 = vmatpush1.bf16.msra.mxu0 %v7333_v19 }
 0x41f   :  { %5834 = vmatprep.subr.bf16.mxu0 %v7338_v20 }
 0x422   :  { %5835 = vmatpush1.bf16.msra.mxu0 %v7336_v21 }
 0x423   :  { %5836 = vmatprep.subr.bf16.mxu0 %v7341_v23 }
 0x426   :  { %5837 = vmatpush1.bf16.msra.mxu0 %v7339_v26 }
 0x427   :  { %5838 = vmatprep.subr.bf16.mxu0 %v7344_v27 }
 0x42a   :  { %5839 = vmatpush1.bf16.msra.mxu0 %v7342_v29 }
 0x42b   :  { %5840 = vmatprep.subr.bf16.mxu0 %v7347_v30 }
 0x42e   :  { %5841 = vmatpush1.bf16.msra.mxu0 %v7345_v31 }
 0x42f   :  { %5842 = vmatprep.subr.bf16.mxu0 %v7350_v14 }
 0x432   :  { %5843 = vmatpush1.bf16.msra.mxu0 %v7348_v32  ;;  %v5678_v35 = vpop.f32.mrb[12].mxu1 }
 0x433   :  { %v6688_v36 = vadd.f32 %v5678_v35, %v3404_v13  ;;  %v5680_v37 = vpop.f32.mrb[13].mxu1  ;;  %5844 = vmatprep.subr.bf16.mxu0 %v7353_v33 }
 0x434   :  { %v6689_v39 = vadd.f32 %v5680_v37, %v3408_v34  ;;  %v5682_v44 = vpop.f32.mrb[14].mxu1 }
 0x435   :  { %5861 = vst [vmem:[#allocation11 + $0x10] sm:$0xff] %v6688_v36  ;;  %v6690_v41 = vadd.f32 %v5682_v44, %v3404_v13  ;;  %v5684_v43 = vpop.f32.mrb[15].mxu1 }
 0x436   :  { %5862 = vst [vmem:[#allocation11 + $0x18] sm:$0xff] %v6689_v39  ;;  %v6691_v48 = vadd.f32 %v5684_v43, %v3408_v34  ;;  %5845 = vmatpush1.bf16.msra.mxu0 %v7351_v28 }
 0x437   :  { %5867 = vst [vmem:[#allocation11 + $0x40] sm:$0xff] %v6690_v41  ;;  %5846 = vmatprep.subr.bf16.mxu0 %v7356_v40 }
 0x438   :  { %5868 = vst [vmem:[#allocation11 + $0x48] sm:$0xff] %v6691_v48 }
 0x43a   :  { %5847 = vmatpush1.bf16.msra.mxu0 %v7354_v51 }
 0x43d   :  { %5849 = vmatmul.mubr.bf16.vlgmr.msra.gmra.mrb[12].mxu0 %v7705_v45 }
 0x510   :  { %v5850_v49 = vpop.f32.mrb[12].mxu0 }
 0x511   :  { %v6692_v50 = vadd.f32 %v5850_v49, %v3412_v12  ;;  %v5852_v11 = vpop.f32.mrb[13].mxu0 }
 0x512   :  { %v6693_v52 = vadd.f32 %v5852_v11, %v3416_v3  ;;  %v5854_v53 = vpop.f32.mrb[14].mxu0 }
 0x513   :  { %5863 = vst [vmem:[#allocation11 + $0x20] sm:$0xff] %v6692_v50  ;;  %v6694_v54 = vadd.f32 %v5854_v53, %v3412_v12  ;;  %v5856_v58 = vpop.f32.mrb[15].mxu0 }
 0x514   :  { %5864 = vst [vmem:[#allocation11 + $0x28] sm:$0xff] %v6693_v52  ;;  %v6695_v45 = vadd.f32 %v5856_v58, %v3416_v3 }
 0x515   :  { %5869 = vst [vmem:[#allocation11 + $0x50] sm:$0xff] %v6694_v54 }
 0x516   :  { %5870 = vst [vmem:[#allocation11 + $0x58] sm:$0xff] %v6695_v45 }
 0x517   :  { %7489 = shalt.err (!%p7486_p2)
}
 0x518   :  { %s7490_s30 = scalar_lea.hbm %s7758_s5, 1536 }
 0x519   :  { %p7491_p3 = scmp.ne.s32.totalorder %s7758_s5, %s7490_s30  ;;  %p7494_p4 = scmp.lt.u32.totalorder %s7490_s30, %s7758_s5 }
 0x51b   :  { %p7496_p5 = pnand %p7494_p4, %p7491_p3 }
 0x51d   :  { %7499 = shalt.err (!%p7496_p5)
}
 0x51e   :  { %s7518_s11 = smov 768   ;;  %s7519_s12 = smov 48  }
 0x51f   :  { %5882 = dma.vmem_to_hbm [thread:$0]  %s5877_s27, 1536, %s7758_s5, [#allocation4], %s7518_s11, %s7518_s11, %s7519_s12  }
 0x520   :  { %7506 = dma.done.wait [#allocation4], 1536  }
 0x521   :  { %7507 = vsyncadd [#allocation4], 4294965760 }
 0x522   :  { %5886 = vsyncpa [#allocation3], 1 }
 0x523   :  { %5887 = vsyncpa [#allocation6], 1 }
 0x524   :  { %5888 = vsyncpa [#allocation9], 1 }
 0x525   :  { %5889 = vsyncpa [#allocation4], 1 }

</bundles_post_ra>
